<compile_context>
chip_gen: v7x
topology: tpu7x:2x2x1
jax: 0.10.0
libtpu: 0.0.40
codegen_flags: <defaults>
</compile_context>

<pallas_src>
import functools
import math

import jax
import jax.numpy as jnp
from jax import lax
from jax.experimental import pallas as pl
from jax.experimental.pallas import tpu as pltpu

_LN_EPS = 1e-5
_INV_SQRT2 = 1.0 / math.sqrt(2.0)

# Abramowitz & Stegun 7.1.26 erf polynomial (|abs err| < 1.5e-7), matching PyTorch's exact-erf
# GELU using only exp / mul / add / one divide.
_ERF_A1 = 0.254829592
_ERF_A2 = -0.284496736
_ERF_A3 = 1.421413741
_ERF_A4 = -1.453152027
_ERF_A5 = 1.061405429
_ERF_P = 0.3275911


def _erf(x):
    s = jnp.where(x >= 0.0, 1.0, -1.0)
    ax = jnp.abs(x)
    t = 1.0 / (1.0 + _ERF_P * ax)
    poly = ((((_ERF_A5 * t + _ERF_A4) * t + _ERF_A3) * t + _ERF_A2) * t + _ERF_A1) * t
    return s * (1.0 - poly * jnp.exp(-ax * ax))


def _gelu(x):
    return 0.5 * x * (1.0 + _erf(x * _INV_SQRT2))


def _layernorm(x, w, b):
    mu = jnp.mean(x, axis=-1, keepdims=True)
    var = jnp.mean((x - mu) ** 2, axis=-1, keepdims=True)
    return (x - mu) / jnp.sqrt(var + _LN_EPS) * w + b


def _ssvepformer_kernel(BB, C2, F2, K, pad, H, OUTW,
                        x_ref,
                        w_comb_ref, b_comb_ref, lnc_w_ref, lnc_b_ref, pseg_ref,
                        w_cnn_ref, halo_ref, b_cnn_ref, lne_w_ref, lne_b_ref,
                        w_lin_ref, b_lin_ref,
                        w1_ref, b1_ref, ph_ref, lnm_w_ref, lnm_b_ref,
                        w2_ref, b2_ref,
                        out_ref):
    bf16 = jnp.bfloat16
    BBF2 = BB * F2

    def seg_ln(v, p_ref, w, b):
        # Segmented LayerNorm over each 2F (or H) lane segment: the two reduction passes are
        # block-diagonal averaging matmuls (MXU) instead of cross-lane XLU reductions.
        p = p_ref[...]
        mu = jnp.dot(v, p, preferred_element_type=jnp.float32)
        d = v - mu
        var = jnp.dot(d * d, p, preferred_element_type=jnp.float32)
        return d * lax.rsqrt(var + _LN_EPS) * w + b

    # hoisted loads of the small per-lane LN / bias vectors (reused across the unrolled
    # 2-iteration encoder)
    lnc_w = lnc_w_ref[...]
    lnc_b = lnc_b_ref[...]
    lne_w = lne_w_ref[...]
    lne_b = lne_b_ref[...]
    b_cnn = b_cnn_ref[...]
    b_lin = b_lin_ref[...]
    w_lin = w_lin_ref[...]
    halo = halo_ref[...]                                               # (K, BB*2F) 0/1 masks

    x = x_ref[...]                                                     # (C, BB*2F) f32

    # --- channel combination: 1x1 Conv1d == (2C, C) @ (C, BB*2F)  ->  seg-LN -> GELU ---
    y = jnp.dot(w_comb_ref[...], x.astype(bf16),
                preferred_element_type=jnp.float32) + b_comb_ref[...]
    y = _gelu(seg_ln(y, pseg_ref, lnc_w, lnc_b))                       # (2C, BB*2F)

    # --- encoder: the SAME layer (shared weights) applied twice ---
    for _ in range(2):
        xn = seg_ln(y, pseg_ref, lne_w, lne_b)

        # k=31 'same' Conv1d as roll-accumulate: shift the lane axis inside each sample's
        # 2F segment (XLU roll + halo mask) and accumulate 31 small MXU matmuls in f32.
        conv = jnp.zeros((C2, BBF2), jnp.float32) + b_cnn
        for k in range(K):
            d = k - pad
            if d == 0:
                sh = xn
            else:
                sh = pltpu.roll(xn, shift=(-d) % BBF2, axis=1) * halo[k:k + 1, :]
            wk = w_cnn_ref[k * C2:(k + 1) * C2, :]                     # (2C, 2C) bf16
            conv = conv + jnp.dot(wk, sh.astype(bf16),
                                  preferred_element_type=jnp.float32)
        y = y + _gelu(seg_ln(conv, pseg_ref, lne_w, lne_b))

        xn2 = seg_ln(y, pseg_ref, lne_w, lne_b)
        lin = jnp.dot(xn2.astype(bf16), w_lin,
                      preferred_element_type=jnp.float32) + b_lin
        y = y + _gelu(lin)

    # --- MLP head: linear1 as per-channel accumulated block matmuls (no flatten relayout) ---
    hp = b1_ref[...]                                                   # (1, BB*H) f32
    for c in range(C2):
        hp = hp + jnp.dot(y[c:c + 1, :].astype(bf16), w1_ref[c],
                          preferred_element_type=jnp.float32)
    hp = _gelu(seg_ln(hp, ph_ref, lnm_w_ref[...], lnm_b_ref[...]))
    res = jnp.dot(hp.astype(bf16), w2_ref[...],
                  preferred_element_type=jnp.float32) + b2_ref[...]    # (1, OUTW)

    # lane-dense output slab: one full unmasked (8, OUTW) store; host reads row 0.
    out_ref[...] = jnp.broadcast_to(res, (8, OUTW))


def ssvepformer_forward(x, params, num_classes, *, block_b=4):
    B, two, C, F = x.shape
    assert two == 2
    F2, C2 = 2 * F, 2 * C
    H = num_classes * 6
    K = 31
    pad = K // 2

    BB = int(max(1, min(block_b, B)))
    nB = -(-B // BB)
    Bp = nB * BB
    BBF2 = BB * F2
    OUTW = max(128, -(-(BB * num_classes) // 128) * 128)

    f32, bf16 = jnp.float32, jnp.bfloat16

    # ---- input: concat the two spectral bands, then pack BB samples along lanes ----
    x_cat = jnp.concatenate([x[:, 0, :, :], x[:, 1, :, :]], axis=2).astype(f32)   # (B, C, 2F)
    if Bp != B:
        x_cat = jnp.concatenate([x_cat, jnp.zeros((Bp - B, C, F2), f32)], axis=0)
    x_pack = (x_cat.reshape(nB, BB, C, F2)
              .transpose(0, 2, 1, 3)
              .reshape(nB * C, BBF2))                       # row = channel, lane = s*2F + f

    # ---- host-side weight layout transforms ----
    p = params
    eye = jnp.eye(BB, dtype=f32)

    def tile_lanes(v, reps):
        return jnp.tile(jnp.asarray(v, f32).reshape(1, -1), (1, reps))

    # block-diagonal segment-averaging matrices for the segmented LayerNorms
    pseg = jnp.kron(eye, jnp.full((F2, F2), 1.0 / F2, f32))            # (BB*2F, BB*2F)
    ph = jnp.kron(eye, jnp.full((H, H), 1.0 / H, f32))                 # (BB*H, BB*H)

    # conv weight stacked as rows (k, out_channel) for aligned sublane slicing
    w_cnn = jnp.transpose(p["w_cnn"], (2, 0, 1)).reshape(K * C2, C2)
    # halo (zero-padding) masks for the 31 shifted taps
    freq = jnp.arange(F2)
    shifts = jnp.arange(K) - pad
    valid = ((freq[None, :] + shifts[:, None] >= 0) &
             (freq[None, :] + shifts[:, None] < F2)).astype(f32)       # (K, 2F)
    halo = jnp.tile(valid, (1, BB))                                    # (K, BB*2F)

    # MLP head: per-channel, per-sample block weights
    w1c = p["w1"].reshape(H, C2, F2).transpose(1, 2, 0)                # (2C, 2F, H)
    w1blk = jax.vmap(lambda m: jnp.kron(eye, m))(w1c)                  # (2C, BB*2F, BB*H)
    w2blk = jnp.kron(eye, p["w2"].T)                                   # (BB*H, BB*ncls)
    w2blk = jnp.pad(w2blk, ((0, 0), (0, OUTW - BB * num_classes)))
    b2t = jnp.pad(tile_lanes(p["b2"], BB), ((0, 0), (0, OUTW - BB * num_classes)))

    weights = [
        p["w_comb"].astype(bf16),                          # (2C, C)
        p["b_comb"].reshape(C2, 1).astype(f32),
        tile_lanes(p["lnc_w"], BB), tile_lanes(p["lnc_b"], BB),
        pseg,
        w_cnn.astype(bf16),                                # (K*2C, 2C)
        halo,                                              # (K, BB*2F)
        p["b_cnn"].reshape(C2, 1).astype(f32),
        tile_lanes(p["lne_w"], BB), tile_lanes(p["lne_b"], BB),
        jnp.kron(eye, p["w_lin"].T).astype(bf16),          # (BB*2F, BB*2F)
        tile_lanes(p["b_lin"], BB),
        w1blk.astype(bf16),                                # (2C, BB*2F, BB*H)
        tile_lanes(p["b1"], BB),
        ph,
        tile_lanes(p["lnm_w"], BB), tile_lanes(p["lnm_b"], BB),
        w2blk.astype(bf16),                                # (BB*H, OUTW)
        b2t,                                               # (1, OUTW)
    ]

    def const_spec(a):
        nd = a.ndim
        return pl.BlockSpec(a.shape, lambda b, _nd=nd: (0,) * _nd)

    in_specs = [pl.BlockSpec((C, BBF2), lambda b: (b, 0))]
    in_specs += [const_spec(w) for w in weights]

    kernel = functools.partial(_ssvepformer_kernel, BB, C2, F2, K, pad, H, OUTW)

    out = pl.pallas_call(
        kernel,
        out_shape=jax.ShapeDtypeStruct((nB * 8, OUTW), f32),
        grid_spec=pltpu.PrefetchScalarGridSpec(
            num_scalar_prefetch=0,
            grid=(nB,),
            in_specs=in_specs,
            out_specs=pl.BlockSpec((8, OUTW), lambda b: (b, 0)),
        ),
        compiler_params=pltpu.CompilerParams(dimension_semantics=("parallel",)),
    )(x_pack, *weights)

    logits = out.reshape(nB, 8, OUTW)[:, 0, :BB * num_classes]
    return logits.reshape(Bp, num_classes)[:B]


def init_params(key, num_classes, img_size):
    """PyTorch-convention parameter shapes."""
    C, F = img_size
    C2, F2 = 2 * C, 2 * F
    H = num_classes * 6
    flat = C2 * F2
    ks = jax.random.split(key, 16)

    def rnd(k, shape, scale=0.1):
        return scale * jax.random.normal(k, shape, dtype=jnp.float32)

    return {
        # channel_combination: Conv1d(C, 2C, 1) + LayerNorm(2F)
        "w_comb": rnd(ks[0], (C2, C)),
        "b_comb": rnd(ks[1], (C2,)),
        "lnc_w": 1.0 + rnd(ks[2], (F2,)),
        "lnc_b": rnd(ks[3], (F2,)),
        # shared encoder layer: Conv1d(2C, 2C, 31, 'same'), LayerNorm(2F), Linear(2F, 2F)
        "w_cnn": rnd(ks[4], (C2, C2, 31), scale=0.05),
        "b_cnn": rnd(ks[5], (C2,)),
        "lne_w": 1.0 + rnd(ks[6], (F2,)),
        "lne_b": rnd(ks[7], (F2,)),
        "w_lin": rnd(ks[8], (F2, F2)),          # Linear.weight (out, in)
        "b_lin": rnd(ks[9], (F2,)),
        # MLP head
        "w1": rnd(ks[10], (H, flat), scale=0.05),
        "b1": rnd(ks[11], (H,)),
        "lnm_w": 1.0 + rnd(ks[12], (H,)),
        "lnm_b": rnd(ks[13], (H,)),
        "w2": rnd(ks[14], (num_classes, H)),
        "b2": rnd(ks[15], (num_classes,)),
    }


def reference_forward(x, p, num_classes):
    """Pure-JAX mirror of the PyTorch forward (inference mode)."""
    B, _, C, F = x.shape
    F2, C2 = 2 * F, 2 * C
    K, pad = 31, 15
    hp = lax.Precision.HIGHEST
    xc = jnp.concatenate([x[:, 0, :, :], x[:, 1, :, :]], axis=2)         # (B, C, 2F)
    y = jnp.einsum("oc,bcf->bof", p["w_comb"], xc, precision=hp) + p["b_comb"][None, :, None]
    y = _gelu(_layernorm(y, p["lnc_w"], p["lnc_b"]))
    for _ in range(2):
        xn = _layernorm(y, p["lne_w"], p["lne_b"])
        xpad = jnp.pad(xn, ((0, 0), (0, 0), (pad, pad)))
        conv = jnp.zeros_like(y)
        for k in range(K):
            conv = conv + jnp.einsum("oi,bif->bof", p["w_cnn"][:, :, k],
                                     xpad[:, :, k:k + F2], precision=hp)
        conv = conv + p["b_cnn"][None, :, None]
        y = y + _gelu(_layernorm(conv, p["lne_w"], p["lne_b"]))
        xn2 = _layernorm(y, p["lne_w"], p["lne_b"])
        y = y + _gelu(jnp.einsum("bcf,gf->bcg", xn2, p["w_lin"], precision=hp) + p["b_lin"])
    flat = y.reshape(B, C2 * F2)
    h = jnp.dot(flat, p["w1"].T, precision=hp) + p["b1"]
    h = _gelu(_layernorm(h, p["lnm_w"], p["lnm_b"]))
    return jnp.dot(h, p["w2"].T, precision=hp) + p["b2"]


if __name__ == "__main__":
    num_classes = 4
    img_size = (8, 16)       # (EEG channels C, frequency bins F)
    B = 8                    # 2 grid steps of 4 lane-packed samples -> both v7x TCs get work

    key = jax.random.PRNGKey(0)
    kx, kp = jax.random.split(key)
    x = jax.random.normal(kx, (B, 2, img_size[0], img_size[1]), dtype=jnp.float32)
    params = init_params(kp, num_classes, img_size)

    out = ssvepformer_forward(x, params, num_classes, block_b=4)
    out = jax.block_until_ready(out)

    assert out.shape == (B, num_classes)
    assert bool(jnp.all(jnp.isfinite(out)))

    ref = reference_forward(x, params, num_classes)
    max_err = float(jnp.max(jnp.abs(out - ref)))
    assert max_err < 5e-2, f"max abs error vs reference: {max_err}"

    print("KERNEL_OK")
</pallas_src>

<mosaic_0001>
module attributes {stable_mosaic.version = 11 : i64} {
  func.func @_ssvepformer_kernel(%arg0: i32, %arg1: memref<8x128xf32, #tpu.memory_space<vmem>>, %arg2: memref<16x8xbf16, #tpu.memory_space<vmem>>, %arg3: memref<16x1xf32, #tpu.memory_space<vmem>>, %arg4: memref<1x128xf32, #tpu.memory_space<vmem>>, %arg5: memref<1x128xf32, #tpu.memory_space<vmem>>, %arg6: memref<128x128xf32, #tpu.memory_space<vmem>>, %arg7: memref<496x16xbf16, #tpu.memory_space<vmem>>, %arg8: memref<31x128xf32, #tpu.memory_space<vmem>>, %arg9: memref<16x1xf32, #tpu.memory_space<vmem>>, %arg10: memref<1x128xf32, #tpu.memory_space<vmem>>, %arg11: memref<1x128xf32, #tpu.memory_space<vmem>>, %arg12: memref<128x128xbf16, #tpu.memory_space<vmem>>, %arg13: memref<1x128xf32, #tpu.memory_space<vmem>>, %arg14: memref<16x128x96xbf16, #tpu.memory_space<vmem>>, %arg15: memref<1x96xf32, #tpu.memory_space<vmem>>, %arg16: memref<96x96xf32, #tpu.memory_space<vmem>>, %arg17: memref<1x96xf32, #tpu.memory_space<vmem>>, %arg18: memref<1x96xf32, #tpu.memory_space<vmem>>, %arg19: memref<96x128xbf16, #tpu.memory_space<vmem>>, %arg20: memref<1x128xf32, #tpu.memory_space<vmem>>, %arg21: memref<8x128xf32, #tpu.memory_space<vmem>>) attributes {dimension_semantics = [#tpu.dimension_semantics<parallel>], iteration_bounds = array<i64: 2>, scalar_prefetch = 0 : i64, scratch_operands = 0 : i64, tpu.core_type = #tpu.core_type<tc>, window_params = [{transform_indices = @transform_0, window_bounds = array<i64: 8, 128>}, {pipeline_mode = #tpu.pipeline_mode<synchronous>, transform_indices = @transform_1, window_bounds = array<i64: 16, 8>}, {pipeline_mode = #tpu.pipeline_mode<synchronous>, transform_indices = @transform_2, window_bounds = array<i64: 16, 1>}, {pipeline_mode = #tpu.pipeline_mode<synchronous>, transform_indices = @transform_3, window_bounds = array<i64: 1, 128>}, {pipeline_mode = #tpu.pipeline_mode<synchronous>, transform_indices = @transform_4, window_bounds = array<i64: 1, 128>}, {pipeline_mode = #tpu.pipeline_mode<synchronous>, transform_indices = @transform_5, window_bounds = array<i64: 128, 128>}, {pipeline_mode = #tpu.pipeline_mode<synchronous>, transform_indices = @transform_6, window_bounds = array<i64: 496, 16>}, {pipeline_mode = #tpu.pipeline_mode<synchronous>, transform_indices = @transform_7, window_bounds = array<i64: 31, 128>}, {pipeline_mode = #tpu.pipeline_mode<synchronous>, transform_indices = @transform_8, window_bounds = array<i64: 16, 1>}, {pipeline_mode = #tpu.pipeline_mode<synchronous>, transform_indices = @transform_9, window_bounds = array<i64: 1, 128>}, {pipeline_mode = #tpu.pipeline_mode<synchronous>, transform_indices = @transform_10, window_bounds = array<i64: 1, 128>}, {pipeline_mode = #tpu.pipeline_mode<synchronous>, transform_indices = @transform_11, window_bounds = array<i64: 128, 128>}, {pipeline_mode = #tpu.pipeline_mode<synchronous>, transform_indices = @transform_12, window_bounds = array<i64: 1, 128>}, {pipeline_mode = #tpu.pipeline_mode<synchronous>, transform_indices = @transform_13, window_bounds = array<i64: 16, 128, 96>}, {pipeline_mode = #tpu.pipeline_mode<synchronous>, transform_indices = @transform_14, window_bounds = array<i64: 1, 96>}, {pipeline_mode = #tpu.pipeline_mode<synchronous>, transform_indices = @transform_15, window_bounds = array<i64: 96, 96>}, {pipeline_mode = #tpu.pipeline_mode<synchronous>, transform_indices = @transform_16, window_bounds = array<i64: 1, 96>}, {pipeline_mode = #tpu.pipeline_mode<synchronous>, transform_indices = @transform_17, window_bounds = array<i64: 1, 96>}, {pipeline_mode = #tpu.pipeline_mode<synchronous>, transform_indices = @transform_18, window_bounds = array<i64: 96, 128>}, {pipeline_mode = #tpu.pipeline_mode<synchronous>, transform_indices = @transform_19, window_bounds = array<i64: 1, 128>}, {transform_indices = @transform_20, window_bounds = array<i64: 8, 128>}]} {
    %c0 = arith.constant 0 : index
    %c0_0 = arith.constant 0 : index
    %0 = vector.load %arg4[%c0, %c0_0] : memref<1x128xf32, #tpu.memory_space<vmem>>, vector<1x128xf32>
    %c0_1 = arith.constant 0 : index
    %c0_2 = arith.constant 0 : index
    %1 = vector.load %arg5[%c0_1, %c0_2] : memref<1x128xf32, #tpu.memory_space<vmem>>, vector<1x128xf32>
    %c0_3 = arith.constant 0 : index
    %c0_4 = arith.constant 0 : index
    %2 = vector.load %arg10[%c0_3, %c0_4] : memref<1x128xf32, #tpu.memory_space<vmem>>, vector<1x128xf32>
    %c0_5 = arith.constant 0 : index
    %c0_6 = arith.constant 0 : index
    %3 = vector.load %arg11[%c0_5, %c0_6] : memref<1x128xf32, #tpu.memory_space<vmem>>, vector<1x128xf32>
    %c0_7 = arith.constant 0 : index
    %c0_8 = arith.constant 0 : index
    %4 = vector.load %arg9[%c0_7, %c0_8] : memref<16x1xf32, #tpu.memory_space<vmem>>, vector<16x1xf32>
    %c0_9 = arith.constant 0 : index
    %c0_10 = arith.constant 0 : index
    %5 = vector.load %arg13[%c0_9, %c0_10] : memref<1x128xf32, #tpu.memory_space<vmem>>, vector<1x128xf32>
    %c0_11 = arith.constant 0 : index
    %c0_12 = arith.constant 0 : index
    %6 = vector.load %arg12[%c0_11, %c0_12] : memref<128x128xbf16, #tpu.memory_space<vmem>>, vector<128x128xbf16>
    %c0_13 = arith.constant 0 : index
    %c0_14 = arith.constant 0 : index
    %7 = vector.load %arg8[%c0_13, %c0_14] : memref<31x128xf32, #tpu.memory_space<vmem>>, vector<31x128xf32>
    %c0_15 = arith.constant 0 : index
    %c0_16 = arith.constant 0 : index
    %8 = vector.load %arg1[%c0_15, %c0_16] : memref<8x128xf32, #tpu.memory_space<vmem>>, vector<8x128xf32>
    %c0_17 = arith.constant 0 : index
    %c0_18 = arith.constant 0 : index
    %9 = vector.load %arg2[%c0_17, %c0_18] : memref<16x8xbf16, #tpu.memory_space<vmem>>, vector<16x8xbf16>
    %10 = arith.truncf %8 : vector<8x128xf32> to vector<8x128xbf16>
    %cst = arith.constant dense<0.000000e+00> : vector<16x128xf32>
    %11 = tpu.matmul %9, %10, %cst {dimension_numbers = #tpu.dot_dimension_numbers<[1], [0], [0], [1], [0, 0, 1, 1], [], []>} : vector<16x8xbf16>, vector<8x128xbf16>, vector<16x128xf32> -> vector<16x128xf32>
    %c0_19 = arith.constant 0 : index
    %c0_20 = arith.constant 0 : index
    %12 = vector.load %arg3[%c0_19, %c0_20] : memref<16x1xf32, #tpu.memory_space<vmem>>, vector<16x1xf32>
    %13 = vector.broadcast %12 : vector<16x1xf32> to vector<16x128xf32>
    %14 = arith.addf %11, %13 : vector<16x128xf32>
    %c0_21 = arith.constant 0 : index
    %c0_22 = arith.constant 0 : index
    %15 = vector.load %arg6[%c0_21, %c0_22] : memref<128x128xf32, #tpu.memory_space<vmem>>, vector<128x128xf32>
    %cst_23 = arith.constant dense<0.000000e+00> : vector<16x128xf32>
    %16 = tpu.matmul %14, %15, %cst_23 {dimension_numbers = #tpu.dot_dimension_numbers<[1], [0], [0], [1], [0, 0, 1, 1], [], []>} : vector<16x128xf32>, vector<128x128xf32>, vector<16x128xf32> -> vector<16x128xf32>
    %17 = arith.subf %14, %16 : vector<16x128xf32>
    %18 = arith.mulf %17, %17 : vector<16x128xf32>
    %cst_24 = arith.constant dense<0.000000e+00> : vector<16x128xf32>
    %19 = tpu.matmul %18, %15, %cst_24 {dimension_numbers = #tpu.dot_dimension_numbers<[1], [0], [0], [1], [0, 0, 1, 1], [], []>} : vector<16x128xf32>, vector<128x128xf32>, vector<16x128xf32> -> vector<16x128xf32>
    %cst_25 = arith.constant 9.99999974E-6 : f32
    %20 = vector.broadcast %cst_25 : f32 to vector<16x128xf32>
    %21 = arith.addf %19, %20 : vector<16x128xf32>
    %22 = math.rsqrt %21 : vector<16x128xf32>
    %23 = arith.mulf %17, %22 : vector<16x128xf32>
    %24 = vector.broadcast %0 : vector<1x128xf32> to vector<16x128xf32>
    %25 = arith.mulf %23, %24 : vector<16x128xf32>
    %26 = vector.broadcast %1 : vector<1x128xf32> to vector<16x128xf32>
    %27 = arith.addf %25, %26 : vector<16x128xf32>
    %cst_26 = arith.constant 5.000000e-01 : f32
    %28 = vector.broadcast %cst_26 : f32 to vector<16x128xf32>
    %29 = arith.mulf %28, %27 : vector<16x128xf32>
    %cst_27 = arith.constant 0.707106769 : f32
    %30 = vector.broadcast %cst_27 : f32 to vector<16x128xf32>
    %31 = arith.mulf %27, %30 : vector<16x128xf32>
    %cst_28 = arith.constant 0.000000e+00 : f32
    %32 = vector.broadcast %cst_28 : f32 to vector<16x128xf32>
    %33 = arith.cmpf oge, %31, %32 : vector<16x128xf32>
    %cst_29 = arith.constant 1.000000e+00 : f32
    %cst_30 = arith.constant -1.000000e+00 : f32
    %34 = vector.broadcast %cst_29 : f32 to vector<16x128xf32>
    %35 = vector.broadcast %cst_30 : f32 to vector<16x128xf32>
    %36 = arith.select %33, %34, %35 : vector<16x128xi1>, vector<16x128xf32>
    %37 = math.absf %31 : vector<16x128xf32>
    %cst_31 = arith.constant 0.327591091 : f32
    %38 = vector.broadcast %cst_31 : f32 to vector<16x128xf32>
    %39 = arith.mulf %38, %37 : vector<16x128xf32>
    %cst_32 = arith.constant 1.000000e+00 : f32
    %40 = vector.broadcast %cst_32 : f32 to vector<16x128xf32>
    %41 = arith.addf %40, %39 : vector<16x128xf32>
    %cst_33 = arith.constant 1.000000e+00 : f32
    %42 = vector.broadcast %cst_33 : f32 to vector<16x128xf32>
    %43 = arith.divf %42, %41 : vector<16x128xf32>
    %cst_34 = arith.constant 1.06140542 : f32
    %44 = vector.broadcast %cst_34 : f32 to vector<16x128xf32>
    %45 = arith.mulf %44, %43 : vector<16x128xf32>
    %cst_35 = arith.constant -1.45315206 : f32
    %46 = vector.broadcast %cst_35 : f32 to vector<16x128xf32>
    %47 = arith.addf %45, %46 : vector<16x128xf32>
    %48 = arith.mulf %47, %43 : vector<16x128xf32>
    %cst_36 = arith.constant 1.42141378 : f32
    %49 = vector.broadcast %cst_36 : f32 to vector<16x128xf32>
    %50 = arith.addf %48, %49 : vector<16x128xf32>
    %51 = arith.mulf %50, %43 : vector<16x128xf32>
    %cst_37 = arith.constant -0.284496725 : f32
    %52 = vector.broadcast %cst_37 : f32 to vector<16x128xf32>
    %53 = arith.addf %51, %52 : vector<16x128xf32>
    %54 = arith.mulf %53, %43 : vector<16x128xf32>
    %cst_38 = arith.constant 0.254829586 : f32
    %55 = vector.broadcast %cst_38 : f32 to vector<16x128xf32>
    %56 = arith.addf %54, %55 : vector<16x128xf32>
    %57 = arith.mulf %56, %43 : vector<16x128xf32>
    %cst_39 = arith.constant 0.000000e+00 : f32
    %58 = vector.broadcast %cst_39 : f32 to vector<16x128xf32>
    %59 = arith.subf %58, %37 : vector<16x128xf32>
    %60 = arith.mulf %59, %37 : vector<16x128xf32>
    %61 = math.exp %60 : vector<16x128xf32>
    %62 = arith.mulf %57, %61 : vector<16x128xf32>
    %cst_40 = arith.constant 1.000000e+00 : f32
    %63 = vector.broadcast %cst_40 : f32 to vector<16x128xf32>
    %64 = arith.subf %63, %62 : vector<16x128xf32>
    %65 = arith.mulf %36, %64 : vector<16x128xf32>
    %cst_41 = arith.constant 1.000000e+00 : f32
    %66 = vector.broadcast %cst_41 : f32 to vector<16x128xf32>
    %67 = arith.addf %66, %65 : vector<16x128xf32>
    %68 = arith.mulf %29, %67 : vector<16x128xf32>
    %c0_42 = arith.constant 0 : index
    %c0_43 = arith.constant 0 : index
    %69 = vector.load %arg6[%c0_42, %c0_43] : memref<128x128xf32, #tpu.memory_space<vmem>>, vector<128x128xf32>
    %cst_44 = arith.constant dense<0.000000e+00> : vector<16x128xf32>
    %70 = tpu.matmul %68, %69, %cst_44 {dimension_numbers = #tpu.dot_dimension_numbers<[1], [0], [0], [1], [0, 0, 1, 1], [], []>} : vector<16x128xf32>, vector<128x128xf32>, vector<16x128xf32> -> vector<16x128xf32>
    %71 = arith.subf %68, %70 : vector<16x128xf32>
    %72 = arith.mulf %71, %71 : vector<16x128xf32>
    %cst_45 = arith.constant dense<0.000000e+00> : vector<16x128xf32>
    %73 = tpu.matmul %72, %69, %cst_45 {dimension_numbers = #tpu.dot_dimension_numbers<[1], [0], [0], [1], [0, 0, 1, 1], [], []>} : vector<16x128xf32>, vector<128x128xf32>, vector<16x128xf32> -> vector<16x128xf32>
    %cst_46 = arith.constant 9.99999974E-6 : f32
    %74 = vector.broadcast %cst_46 : f32 to vector<16x128xf32>
    %75 = arith.addf %73, %74 : vector<16x128xf32>
    %76 = math.rsqrt %75 : vector<16x128xf32>
    %77 = arith.mulf %71, %76 : vector<16x128xf32>
    %78 = vector.broadcast %2 : vector<1x128xf32> to vector<16x128xf32>
    %79 = arith.mulf %77, %78 : vector<16x128xf32>
    %80 = vector.broadcast %3 : vector<1x128xf32> to vector<16x128xf32>
    %81 = arith.addf %79, %80 : vector<16x128xf32>
    %cst_47 = arith.constant 0.000000e+00 : f32
    %82 = vector.broadcast %cst_47 : f32 to vector<16x128xf32>
    %83 = vector.broadcast %4 : vector<16x1xf32> to vector<16x128xf32>
    %84 = arith.addf %82, %83 : vector<16x128xf32>
    %c15_i32 = arith.constant 15 : i32
    %85 = tpu.dynamic_rotate %81 by %c15_i32 dim 1 : vector<16x128xf32>, i32 -> vector<16x128xf32>
    %86 = vector.extract_strided_slice %7 {offsets = [0, 0], sizes = [1, 128], strides = [1, 1]} : vector<31x128xf32> to vector<1x128xf32>
    %87 = vector.broadcast %86 : vector<1x128xf32> to vector<16x128xf32>
    %88 = arith.mulf %85, %87 : vector<16x128xf32>
    %c0_48 = arith.constant 0 : index
    %c0_49 = arith.constant 0 : index
    %89 = vector.load %arg7[%c0_48, %c0_49] : memref<496x16xbf16, #tpu.memory_space<vmem>>, vector<16x16xbf16>
    %90 = arith.truncf %88 : vector<16x128xf32> to vector<16x128xbf16>
    %cst_50 = arith.constant dense<0.000000e+00> : vector<16x128xf32>
    %91 = tpu.matmul %89, %90, %cst_50 {dimension_numbers = #tpu.dot_dimension_numbers<[1], [0], [0], [1], [0, 0, 1, 1], [], []>} : vector<16x16xbf16>, vector<16x128xbf16>, vector<16x128xf32> -> vector<16x128xf32>
    %92 = arith.addf %84, %91 : vector<16x128xf32>
    %c14_i32 = arith.constant 14 : i32
    %93 = tpu.dynamic_rotate %81 by %c14_i32 dim 1 : vector<16x128xf32>, i32 -> vector<16x128xf32>
    %94 = vector.extract_strided_slice %7 {offsets = [1, 0], sizes = [1, 128], strides = [1, 1]} : vector<31x128xf32> to vector<1x128xf32>
    %95 = vector.broadcast %94 : vector<1x128xf32> to vector<16x128xf32>
    %96 = arith.mulf %93, %95 : vector<16x128xf32>
    %c16 = arith.constant 16 : index
    %c0_51 = arith.constant 0 : index
    %97 = vector.load %arg7[%c16, %c0_51] : memref<496x16xbf16, #tpu.memory_space<vmem>>, vector<16x16xbf16>
    %98 = arith.truncf %96 : vector<16x128xf32> to vector<16x128xbf16>
    %cst_52 = arith.constant dense<0.000000e+00> : vector<16x128xf32>
    %99 = tpu.matmul %97, %98, %cst_52 {dimension_numbers = #tpu.dot_dimension_numbers<[1], [0], [0], [1], [0, 0, 1, 1], [], []>} : vector<16x16xbf16>, vector<16x128xbf16>, vector<16x128xf32> -> vector<16x128xf32>
    %100 = arith.addf %92, %99 : vector<16x128xf32>
    %c13_i32 = arith.constant 13 : i32
    %101 = tpu.dynamic_rotate %81 by %c13_i32 dim 1 : vector<16x128xf32>, i32 -> vector<16x128xf32>
    %102 = vector.extract_strided_slice %7 {offsets = [2, 0], sizes = [1, 128], strides = [1, 1]} : vector<31x128xf32> to vector<1x128xf32>
    %103 = vector.broadcast %102 : vector<1x128xf32> to vector<16x128xf32>
    %104 = arith.mulf %101, %103 : vector<16x128xf32>
    %c32 = arith.constant 32 : index
    %c0_53 = arith.constant 0 : index
    %105 = vector.load %arg7[%c32, %c0_53] : memref<496x16xbf16, #tpu.memory_space<vmem>>, vector<16x16xbf16>
    %106 = arith.truncf %104 : vector<16x128xf32> to vector<16x128xbf16>
    %cst_54 = arith.constant dense<0.000000e+00> : vector<16x128xf32>
    %107 = tpu.matmul %105, %106, %cst_54 {dimension_numbers = #tpu.dot_dimension_numbers<[1], [0], [0], [1], [0, 0, 1, 1], [], []>} : vector<16x16xbf16>, vector<16x128xbf16>, vector<16x128xf32> -> vector<16x128xf32>
    %108 = arith.addf %100, %107 : vector<16x128xf32>
    %c12_i32 = arith.constant 12 : i32
    %109 = tpu.dynamic_rotate %81 by %c12_i32 dim 1 : vector<16x128xf32>, i32 -> vector<16x128xf32>
    %110 = vector.extract_strided_slice %7 {offsets = [3, 0], sizes = [1, 128], strides = [1, 1]} : vector<31x128xf32> to vector<1x128xf32>
    %111 = vector.broadcast %110 : vector<1x128xf32> to vector<16x128xf32>
    %112 = arith.mulf %109, %111 : vector<16x128xf32>
    %c48 = arith.constant 48 : index
    %c0_55 = arith.constant 0 : index
    %113 = vector.load %arg7[%c48, %c0_55] : memref<496x16xbf16, #tpu.memory_space<vmem>>, vector<16x16xbf16>
    %114 = arith.truncf %112 : vector<16x128xf32> to vector<16x128xbf16>
    %cst_56 = arith.constant dense<0.000000e+00> : vector<16x128xf32>
    %115 = tpu.matmul %113, %114, %cst_56 {dimension_numbers = #tpu.dot_dimension_numbers<[1], [0], [0], [1], [0, 0, 1, 1], [], []>} : vector<16x16xbf16>, vector<16x128xbf16>, vector<16x128xf32> -> vector<16x128xf32>
    %116 = arith.addf %108, %115 : vector<16x128xf32>
    %c11_i32 = arith.constant 11 : i32
    %117 = tpu.dynamic_rotate %81 by %c11_i32 dim 1 : vector<16x128xf32>, i32 -> vector<16x128xf32>
    %118 = vector.extract_strided_slice %7 {offsets = [4, 0], sizes = [1, 128], strides = [1, 1]} : vector<31x128xf32> to vector<1x128xf32>
    %119 = vector.broadcast %118 : vector<1x128xf32> to vector<16x128xf32>
    %120 = arith.mulf %117, %119 : vector<16x128xf32>
    %c64 = arith.constant 64 : index
    %c0_57 = arith.constant 0 : index
    %121 = vector.load %arg7[%c64, %c0_57] : memref<496x16xbf16, #tpu.memory_space<vmem>>, vector<16x16xbf16>
    %122 = arith.truncf %120 : vector<16x128xf32> to vector<16x128xbf16>
    %cst_58 = arith.constant dense<0.000000e+00> : vector<16x128xf32>
    %123 = tpu.matmul %121, %122, %cst_58 {dimension_numbers = #tpu.dot_dimension_numbers<[1], [0], [0], [1], [0, 0, 1, 1], [], []>} : vector<16x16xbf16>, vector<16x128xbf16>, vector<16x128xf32> -> vector<16x128xf32>
    %124 = arith.addf %116, %123 : vector<16x128xf32>
    %c10_i32 = arith.constant 10 : i32
    %125 = tpu.dynamic_rotate %81 by %c10_i32 dim 1 : vector<16x128xf32>, i32 -> vector<16x128xf32>
    %126 = vector.extract_strided_slice %7 {offsets = [5, 0], sizes = [1, 128], strides = [1, 1]} : vector<31x128xf32> to vector<1x128xf32>
    %127 = vector.broadcast %126 : vector<1x128xf32> to vector<16x128xf32>
    %128 = arith.mulf %125, %127 : vector<16x128xf32>
    %c80 = arith.constant 80 : index
    %c0_59 = arith.constant 0 : index
    %129 = vector.load %arg7[%c80, %c0_59] : memref<496x16xbf16, #tpu.memory_space<vmem>>, vector<16x16xbf16>
    %130 = arith.truncf %128 : vector<16x128xf32> to vector<16x128xbf16>
    %cst_60 = arith.constant dense<0.000000e+00> : vector<16x128xf32>
    %131 = tpu.matmul %129, %130, %cst_60 {dimension_numbers = #tpu.dot_dimension_numbers<[1], [0], [0], [1], [0, 0, 1, 1], [], []>} : vector<16x16xbf16>, vector<16x128xbf16>, vector<16x128xf32> -> vector<16x128xf32>
    %132 = arith.addf %124, %131 : vector<16x128xf32>
    %c9_i32 = arith.constant 9 : i32
    %133 = tpu.dynamic_rotate %81 by %c9_i32 dim 1 : vector<16x128xf32>, i32 -> vector<16x128xf32>
    %134 = vector.extract_strided_slice %7 {offsets = [6, 0], sizes = [1, 128], strides = [1, 1]} : vector<31x128xf32> to vector<1x128xf32>
    %135 = vector.broadcast %134 : vector<1x128xf32> to vector<16x128xf32>
    %136 = arith.mulf %133, %135 : vector<16x128xf32>
    %c96 = arith.constant 96 : index
    %c0_61 = arith.constant 0 : index
    %137 = vector.load %arg7[%c96, %c0_61] : memref<496x16xbf16, #tpu.memory_space<vmem>>, vector<16x16xbf16>
    %138 = arith.truncf %136 : vector<16x128xf32> to vector<16x128xbf16>
    %cst_62 = arith.constant dense<0.000000e+00> : vector<16x128xf32>
    %139 = tpu.matmul %137, %138, %cst_62 {dimension_numbers = #tpu.dot_dimension_numbers<[1], [0], [0], [1], [0, 0, 1, 1], [], []>} : vector<16x16xbf16>, vector<16x128xbf16>, vector<16x128xf32> -> vector<16x128xf32>
    %140 = arith.addf %132, %139 : vector<16x128xf32>
    %c8_i32 = arith.constant 8 : i32
    %141 = tpu.dynamic_rotate %81 by %c8_i32 dim 1 : vector<16x128xf32>, i32 -> vector<16x128xf32>
    %142 = vector.extract_strided_slice %7 {offsets = [7, 0], sizes = [1, 128], strides = [1, 1]} : vector<31x128xf32> to vector<1x128xf32>
    %143 = vector.broadcast %142 : vector<1x128xf32> to vector<16x128xf32>
    %144 = arith.mulf %141, %143 : vector<16x128xf32>
    %c112 = arith.constant 112 : index
    %c0_63 = arith.constant 0 : index
    %145 = vector.load %arg7[%c112, %c0_63] : memref<496x16xbf16, #tpu.memory_space<vmem>>, vector<16x16xbf16>
    %146 = arith.truncf %144 : vector<16x128xf32> to vector<16x128xbf16>
    %cst_64 = arith.constant dense<0.000000e+00> : vector<16x128xf32>
    %147 = tpu.matmul %145, %146, %cst_64 {dimension_numbers = #tpu.dot_dimension_numbers<[1], [0], [0], [1], [0, 0, 1, 1], [], []>} : vector<16x16xbf16>, vector<16x128xbf16>, vector<16x128xf32> -> vector<16x128xf32>
    %148 = arith.addf %140, %147 : vector<16x128xf32>
    %c7_i32 = arith.constant 7 : i32
    %149 = tpu.dynamic_rotate %81 by %c7_i32 dim 1 : vector<16x128xf32>, i32 -> vector<16x128xf32>
    %150 = vector.extract_strided_slice %7 {offsets = [8, 0], sizes = [1, 128], strides = [1, 1]} : vector<31x128xf32> to vector<1x128xf32>
    %151 = vector.broadcast %150 : vector<1x128xf32> to vector<16x128xf32>
    %152 = arith.mulf %149, %151 : vector<16x128xf32>
    %c128 = arith.constant 128 : index
    %c0_65 = arith.constant 0 : index
    %153 = vector.load %arg7[%c128, %c0_65] : memref<496x16xbf16, #tpu.memory_space<vmem>>, vector<16x16xbf16>
    %154 = arith.truncf %152 : vector<16x128xf32> to vector<16x128xbf16>
    %cst_66 = arith.constant dense<0.000000e+00> : vector<16x128xf32>
    %155 = tpu.matmul %153, %154, %cst_66 {dimension_numbers = #tpu.dot_dimension_numbers<[1], [0], [0], [1], [0, 0, 1, 1], [], []>} : vector<16x16xbf16>, vector<16x128xbf16>, vector<16x128xf32> -> vector<16x128xf32>
    %156 = arith.addf %148, %155 : vector<16x128xf32>
    %c6_i32 = arith.constant 6 : i32
    %157 = tpu.dynamic_rotate %81 by %c6_i32 dim 1 : vector<16x128xf32>, i32 -> vector<16x128xf32>
    %158 = vector.extract_strided_slice %7 {offsets = [9, 0], sizes = [1, 128], strides = [1, 1]} : vector<31x128xf32> to vector<1x128xf32>
    %159 = vector.broadcast %158 : vector<1x128xf32> to vector<16x128xf32>
    %160 = arith.mulf %157, %159 : vector<16x128xf32>
    %c144 = arith.constant 144 : index
    %c0_67 = arith.constant 0 : index
    %161 = vector.load %arg7[%c144, %c0_67] : memref<496x16xbf16, #tpu.memory_space<vmem>>, vector<16x16xbf16>
    %162 = arith.truncf %160 : vector<16x128xf32> to vector<16x128xbf16>
    %cst_68 = arith.constant dense<0.000000e+00> : vector<16x128xf32>
    %163 = tpu.matmul %161, %162, %cst_68 {dimension_numbers = #tpu.dot_dimension_numbers<[1], [0], [0], [1], [0, 0, 1, 1], [], []>} : vector<16x16xbf16>, vector<16x128xbf16>, vector<16x128xf32> -> vector<16x128xf32>
    %164 = arith.addf %156, %163 : vector<16x128xf32>
    %c5_i32 = arith.constant 5 : i32
    %165 = tpu.dynamic_rotate %81 by %c5_i32 dim 1 : vector<16x128xf32>, i32 -> vector<16x128xf32>
    %166 = vector.extract_strided_slice %7 {offsets = [10, 0], sizes = [1, 128], strides = [1, 1]} : vector<31x128xf32> to vector<1x128xf32>
    %167 = vector.broadcast %166 : vector<1x128xf32> to vector<16x128xf32>
    %168 = arith.mulf %165, %167 : vector<16x128xf32>
    %c160 = arith.constant 160 : index
    %c0_69 = arith.constant 0 : index
    %169 = vector.load %arg7[%c160, %c0_69] : memref<496x16xbf16, #tpu.memory_space<vmem>>, vector<16x16xbf16>
    %170 = arith.truncf %168 : vector<16x128xf32> to vector<16x128xbf16>
    %cst_70 = arith.constant dense<0.000000e+00> : vector<16x128xf32>
    %171 = tpu.matmul %169, %170, %cst_70 {dimension_numbers = #tpu.dot_dimension_numbers<[1], [0], [0], [1], [0, 0, 1, 1], [], []>} : vector<16x16xbf16>, vector<16x128xbf16>, vector<16x128xf32> -> vector<16x128xf32>
    %172 = arith.addf %164, %171 : vector<16x128xf32>
    %c4_i32 = arith.constant 4 : i32
    %173 = tpu.dynamic_rotate %81 by %c4_i32 dim 1 : vector<16x128xf32>, i32 -> vector<16x128xf32>
    %174 = vector.extract_strided_slice %7 {offsets = [11, 0], sizes = [1, 128], strides = [1, 1]} : vector<31x128xf32> to vector<1x128xf32>
    %175 = vector.broadcast %174 : vector<1x128xf32> to vector<16x128xf32>
    %176 = arith.mulf %173, %175 : vector<16x128xf32>
    %c176 = arith.constant 176 : index
    %c0_71 = arith.constant 0 : index
    %177 = vector.load %arg7[%c176, %c0_71] : memref<496x16xbf16, #tpu.memory_space<vmem>>, vector<16x16xbf16>
    %178 = arith.truncf %176 : vector<16x128xf32> to vector<16x128xbf16>
    %cst_72 = arith.constant dense<0.000000e+00> : vector<16x128xf32>
    %179 = tpu.matmul %177, %178, %cst_72 {dimension_numbers = #tpu.dot_dimension_numbers<[1], [0], [0], [1], [0, 0, 1, 1], [], []>} : vector<16x16xbf16>, vector<16x128xbf16>, vector<16x128xf32> -> vector<16x128xf32>
    %180 = arith.addf %172, %179 : vector<16x128xf32>
    %c3_i32 = arith.constant 3 : i32
    %181 = tpu.dynamic_rotate %81 by %c3_i32 dim 1 : vector<16x128xf32>, i32 -> vector<16x128xf32>
    %182 = vector.extract_strided_slice %7 {offsets = [12, 0], sizes = [1, 128], strides = [1, 1]} : vector<31x128xf32> to vector<1x128xf32>
    %183 = vector.broadcast %182 : vector<1x128xf32> to vector<16x128xf32>
    %184 = arith.mulf %181, %183 : vector<16x128xf32>
    %c192 = arith.constant 192 : index
    %c0_73 = arith.constant 0 : index
    %185 = vector.load %arg7[%c192, %c0_73] : memref<496x16xbf16, #tpu.memory_space<vmem>>, vector<16x16xbf16>
    %186 = arith.truncf %184 : vector<16x128xf32> to vector<16x128xbf16>
    %cst_74 = arith.constant dense<0.000000e+00> : vector<16x128xf32>
    %187 = tpu.matmul %185, %186, %cst_74 {dimension_numbers = #tpu.dot_dimension_numbers<[1], [0], [0], [1], [0, 0, 1, 1], [], []>} : vector<16x16xbf16>, vector<16x128xbf16>, vector<16x128xf32> -> vector<16x128xf32>
    %188 = arith.addf %180, %187 : vector<16x128xf32>
    %c2_i32 = arith.constant 2 : i32
    %189 = tpu.dynamic_rotate %81 by %c2_i32 dim 1 : vector<16x128xf32>, i32 -> vector<16x128xf32>
    %190 = vector.extract_strided_slice %7 {offsets = [13, 0], sizes = [1, 128], strides = [1, 1]} : vector<31x128xf32> to vector<1x128xf32>
    %191 = vector.broadcast %190 : vector<1x128xf32> to vector<16x128xf32>
    %192 = arith.mulf %189, %191 : vector<16x128xf32>
    %c208 = arith.constant 208 : index
    %c0_75 = arith.constant 0 : index
    %193 = vector.load %arg7[%c208, %c0_75] : memref<496x16xbf16, #tpu.memory_space<vmem>>, vector<16x16xbf16>
    %194 = arith.truncf %192 : vector<16x128xf32> to vector<16x128xbf16>
    %cst_76 = arith.constant dense<0.000000e+00> : vector<16x128xf32>
    %195 = tpu.matmul %193, %194, %cst_76 {dimension_numbers = #tpu.dot_dimension_numbers<[1], [0], [0], [1], [0, 0, 1, 1], [], []>} : vector<16x16xbf16>, vector<16x128xbf16>, vector<16x128xf32> -> vector<16x128xf32>
    %196 = arith.addf %188, %195 : vector<16x128xf32>
    %c1_i32 = arith.constant 1 : i32
    %197 = tpu.dynamic_rotate %81 by %c1_i32 dim 1 : vector<16x128xf32>, i32 -> vector<16x128xf32>
    %198 = vector.extract_strided_slice %7 {offsets = [14, 0], sizes = [1, 128], strides = [1, 1]} : vector<31x128xf32> to vector<1x128xf32>
    %199 = vector.broadcast %198 : vector<1x128xf32> to vector<16x128xf32>
    %200 = arith.mulf %197, %199 : vector<16x128xf32>
    %c224 = arith.constant 224 : index
    %c0_77 = arith.constant 0 : index
    %201 = vector.load %arg7[%c224, %c0_77] : memref<496x16xbf16, #tpu.memory_space<vmem>>, vector<16x16xbf16>
    %202 = arith.truncf %200 : vector<16x128xf32> to vector<16x128xbf16>
    %cst_78 = arith.constant dense<0.000000e+00> : vector<16x128xf32>
    %203 = tpu.matmul %201, %202, %cst_78 {dimension_numbers = #tpu.dot_dimension_numbers<[1], [0], [0], [1], [0, 0, 1, 1], [], []>} : vector<16x16xbf16>, vector<16x128xbf16>, vector<16x128xf32> -> vector<16x128xf32>
    %204 = arith.addf %196, %203 : vector<16x128xf32>
    %c240 = arith.constant 240 : index
    %c0_79 = arith.constant 0 : index
    %205 = vector.load %arg7[%c240, %c0_79] : memref<496x16xbf16, #tpu.memory_space<vmem>>, vector<16x16xbf16>
    %206 = arith.truncf %81 : vector<16x128xf32> to vector<16x128xbf16>
    %cst_80 = arith.constant dense<0.000000e+00> : vector<16x128xf32>
    %207 = tpu.matmul %205, %206, %cst_80 {dimension_numbers = #tpu.dot_dimension_numbers<[1], [0], [0], [1], [0, 0, 1, 1], [], []>} : vector<16x16xbf16>, vector<16x128xbf16>, vector<16x128xf32> -> vector<16x128xf32>
    %208 = arith.addf %204, %207 : vector<16x128xf32>
    %c127_i32 = arith.constant 127 : i32
    %209 = tpu.dynamic_rotate %81 by %c127_i32 dim 1 : vector<16x128xf32>, i32 -> vector<16x128xf32>
    %210 = vector.extract_strided_slice %7 {offsets = [16, 0], sizes = [1, 128], strides = [1, 1]} : vector<31x128xf32> to vector<1x128xf32>
    %211 = vector.broadcast %210 : vector<1x128xf32> to vector<16x128xf32>
    %212 = arith.mulf %209, %211 : vector<16x128xf32>
    %c256 = arith.constant 256 : index
    %c0_81 = arith.constant 0 : index
    %213 = vector.load %arg7[%c256, %c0_81] : memref<496x16xbf16, #tpu.memory_space<vmem>>, vector<16x16xbf16>
    %214 = arith.truncf %212 : vector<16x128xf32> to vector<16x128xbf16>
    %cst_82 = arith.constant dense<0.000000e+00> : vector<16x128xf32>
    %215 = tpu.matmul %213, %214, %cst_82 {dimension_numbers = #tpu.dot_dimension_numbers<[1], [0], [0], [1], [0, 0, 1, 1], [], []>} : vector<16x16xbf16>, vector<16x128xbf16>, vector<16x128xf32> -> vector<16x128xf32>
    %216 = arith.addf %208, %215 : vector<16x128xf32>
    %c126_i32 = arith.constant 126 : i32
    %217 = tpu.dynamic_rotate %81 by %c126_i32 dim 1 : vector<16x128xf32>, i32 -> vector<16x128xf32>
    %218 = vector.extract_strided_slice %7 {offsets = [17, 0], sizes = [1, 128], strides = [1, 1]} : vector<31x128xf32> to vector<1x128xf32>
    %219 = vector.broadcast %218 : vector<1x128xf32> to vector<16x128xf32>
    %220 = arith.mulf %217, %219 : vector<16x128xf32>
    %c272 = arith.constant 272 : index
    %c0_83 = arith.constant 0 : index
    %221 = vector.load %arg7[%c272, %c0_83] : memref<496x16xbf16, #tpu.memory_space<vmem>>, vector<16x16xbf16>
    %222 = arith.truncf %220 : vector<16x128xf32> to vector<16x128xbf16>
    %cst_84 = arith.constant dense<0.000000e+00> : vector<16x128xf32>
    %223 = tpu.matmul %221, %222, %cst_84 {dimension_numbers = #tpu.dot_dimension_numbers<[1], [0], [0], [1], [0, 0, 1, 1], [], []>} : vector<16x16xbf16>, vector<16x128xbf16>, vector<16x128xf32> -> vector<16x128xf32>
    %224 = arith.addf %216, %223 : vector<16x128xf32>
    %c125_i32 = arith.constant 125 : i32
    %225 = tpu.dynamic_rotate %81 by %c125_i32 dim 1 : vector<16x128xf32>, i32 -> vector<16x128xf32>
    %226 = vector.extract_strided_slice %7 {offsets = [18, 0], sizes = [1, 128], strides = [1, 1]} : vector<31x128xf32> to vector<1x128xf32>
    %227 = vector.broadcast %226 : vector<1x128xf32> to vector<16x128xf32>
    %228 = arith.mulf %225, %227 : vector<16x128xf32>
    %c288 = arith.constant 288 : index
    %c0_85 = arith.constant 0 : index
    %229 = vector.load %arg7[%c288, %c0_85] : memref<496x16xbf16, #tpu.memory_space<vmem>>, vector<16x16xbf16>
    %230 = arith.truncf %228 : vector<16x128xf32> to vector<16x128xbf16>
    %cst_86 = arith.constant dense<0.000000e+00> : vector<16x128xf32>
    %231 = tpu.matmul %229, %230, %cst_86 {dimension_numbers = #tpu.dot_dimension_numbers<[1], [0], [0], [1], [0, 0, 1, 1], [], []>} : vector<16x16xbf16>, vector<16x128xbf16>, vector<16x128xf32> -> vector<16x128xf32>
    %232 = arith.addf %224, %231 : vector<16x128xf32>
    %c124_i32 = arith.constant 124 : i32
    %233 = tpu.dynamic_rotate %81 by %c124_i32 dim 1 : vector<16x128xf32>, i32 -> vector<16x128xf32>
    %234 = vector.extract_strided_slice %7 {offsets = [19, 0], sizes = [1, 128], strides = [1, 1]} : vector<31x128xf32> to vector<1x128xf32>
    %235 = vector.broadcast %234 : vector<1x128xf32> to vector<16x128xf32>
    %236 = arith.mulf %233, %235 : vector<16x128xf32>
    %c304 = arith.constant 304 : index
    %c0_87 = arith.constant 0 : index
    %237 = vector.load %arg7[%c304, %c0_87] : memref<496x16xbf16, #tpu.memory_space<vmem>>, vector<16x16xbf16>
    %238 = arith.truncf %236 : vector<16x128xf32> to vector<16x128xbf16>
    %cst_88 = arith.constant dense<0.000000e+00> : vector<16x128xf32>
    %239 = tpu.matmul %237, %238, %cst_88 {dimension_numbers = #tpu.dot_dimension_numbers<[1], [0], [0], [1], [0, 0, 1, 1], [], []>} : vector<16x16xbf16>, vector<16x128xbf16>, vector<16x128xf32> -> vector<16x128xf32>
    %240 = arith.addf %232, %239 : vector<16x128xf32>
    %c123_i32 = arith.constant 123 : i32
    %241 = tpu.dynamic_rotate %81 by %c123_i32 dim 1 : vector<16x128xf32>, i32 -> vector<16x128xf32>
    %242 = vector.extract_strided_slice %7 {offsets = [20, 0], sizes = [1, 128], strides = [1, 1]} : vector<31x128xf32> to vector<1x128xf32>
    %243 = vector.broadcast %242 : vector<1x128xf32> to vector<16x128xf32>
    %244 = arith.mulf %241, %243 : vector<16x128xf32>
    %c320 = arith.constant 320 : index
    %c0_89 = arith.constant 0 : index
    %245 = vector.load %arg7[%c320, %c0_89] : memref<496x16xbf16, #tpu.memory_space<vmem>>, vector<16x16xbf16>
    %246 = arith.truncf %244 : vector<16x128xf32> to vector<16x128xbf16>
    %cst_90 = arith.constant dense<0.000000e+00> : vector<16x128xf32>
    %247 = tpu.matmul %245, %246, %cst_90 {dimension_numbers = #tpu.dot_dimension_numbers<[1], [0], [0], [1], [0, 0, 1, 1], [], []>} : vector<16x16xbf16>, vector<16x128xbf16>, vector<16x128xf32> -> vector<16x128xf32>
    %248 = arith.addf %240, %247 : vector<16x128xf32>
    %c122_i32 = arith.constant 122 : i32
    %249 = tpu.dynamic_rotate %81 by %c122_i32 dim 1 : vector<16x128xf32>, i32 -> vector<16x128xf32>
    %250 = vector.extract_strided_slice %7 {offsets = [21, 0], sizes = [1, 128], strides = [1, 1]} : vector<31x128xf32> to vector<1x128xf32>
    %251 = vector.broadcast %250 : vector<1x128xf32> to vector<16x128xf32>
    %252 = arith.mulf %249, %251 : vector<16x128xf32>
    %c336 = arith.constant 336 : index
    %c0_91 = arith.constant 0 : index
    %253 = vector.load %arg7[%c336, %c0_91] : memref<496x16xbf16, #tpu.memory_space<vmem>>, vector<16x16xbf16>
    %254 = arith.truncf %252 : vector<16x128xf32> to vector<16x128xbf16>
    %cst_92 = arith.constant dense<0.000000e+00> : vector<16x128xf32>
    %255 = tpu.matmul %253, %254, %cst_92 {dimension_numbers = #tpu.dot_dimension_numbers<[1], [0], [0], [1], [0, 0, 1, 1], [], []>} : vector<16x16xbf16>, vector<16x128xbf16>, vector<16x128xf32> -> vector<16x128xf32>
    %256 = arith.addf %248, %255 : vector<16x128xf32>
    %c121_i32 = arith.constant 121 : i32
    %257 = tpu.dynamic_rotate %81 by %c121_i32 dim 1 : vector<16x128xf32>, i32 -> vector<16x128xf32>
    %258 = vector.extract_strided_slice %7 {offsets = [22, 0], sizes = [1, 128], strides = [1, 1]} : vector<31x128xf32> to vector<1x128xf32>
    %259 = vector.broadcast %258 : vector<1x128xf32> to vector<16x128xf32>
    %260 = arith.mulf %257, %259 : vector<16x128xf32>
    %c352 = arith.constant 352 : index
    %c0_93 = arith.constant 0 : index
    %261 = vector.load %arg7[%c352, %c0_93] : memref<496x16xbf16, #tpu.memory_space<vmem>>, vector<16x16xbf16>
    %262 = arith.truncf %260 : vector<16x128xf32> to vector<16x128xbf16>
    %cst_94 = arith.constant dense<0.000000e+00> : vector<16x128xf32>
    %263 = tpu.matmul %261, %262, %cst_94 {dimension_numbers = #tpu.dot_dimension_numbers<[1], [0], [0], [1], [0, 0, 1, 1], [], []>} : vector<16x16xbf16>, vector<16x128xbf16>, vector<16x128xf32> -> vector<16x128xf32>
    %264 = arith.addf %256, %263 : vector<16x128xf32>
    %c120_i32 = arith.constant 120 : i32
    %265 = tpu.dynamic_rotate %81 by %c120_i32 dim 1 : vector<16x128xf32>, i32 -> vector<16x128xf32>
    %266 = vector.extract_strided_slice %7 {offsets = [23, 0], sizes = [1, 128], strides = [1, 1]} : vector<31x128xf32> to vector<1x128xf32>
    %267 = vector.broadcast %266 : vector<1x128xf32> to vector<16x128xf32>
    %268 = arith.mulf %265, %267 : vector<16x128xf32>
    %c368 = arith.constant 368 : index
    %c0_95 = arith.constant 0 : index
    %269 = vector.load %arg7[%c368, %c0_95] : memref<496x16xbf16, #tpu.memory_space<vmem>>, vector<16x16xbf16>
    %270 = arith.truncf %268 : vector<16x128xf32> to vector<16x128xbf16>
    %cst_96 = arith.constant dense<0.000000e+00> : vector<16x128xf32>
    %271 = tpu.matmul %269, %270, %cst_96 {dimension_numbers = #tpu.dot_dimension_numbers<[1], [0], [0], [1], [0, 0, 1, 1], [], []>} : vector<16x16xbf16>, vector<16x128xbf16>, vector<16x128xf32> -> vector<16x128xf32>
    %272 = arith.addf %264, %271 : vector<16x128xf32>
    %c119_i32 = arith.constant 119 : i32
    %273 = tpu.dynamic_rotate %81 by %c119_i32 dim 1 : vector<16x128xf32>, i32 -> vector<16x128xf32>
    %274 = vector.extract_strided_slice %7 {offsets = [24, 0], sizes = [1, 128], strides = [1, 1]} : vector<31x128xf32> to vector<1x128xf32>
    %275 = vector.broadcast %274 : vector<1x128xf32> to vector<16x128xf32>
    %276 = arith.mulf %273, %275 : vector<16x128xf32>
    %c384 = arith.constant 384 : index
    %c0_97 = arith.constant 0 : index
    %277 = vector.load %arg7[%c384, %c0_97] : memref<496x16xbf16, #tpu.memory_space<vmem>>, vector<16x16xbf16>
    %278 = arith.truncf %276 : vector<16x128xf32> to vector<16x128xbf16>
    %cst_98 = arith.constant dense<0.000000e+00> : vector<16x128xf32>
    %279 = tpu.matmul %277, %278, %cst_98 {dimension_numbers = #tpu.dot_dimension_numbers<[1], [0], [0], [1], [0, 0, 1, 1], [], []>} : vector<16x16xbf16>, vector<16x128xbf16>, vector<16x128xf32> -> vector<16x128xf32>
    %280 = arith.addf %272, %279 : vector<16x128xf32>
    %c118_i32 = arith.constant 118 : i32
    %281 = tpu.dynamic_rotate %81 by %c118_i32 dim 1 : vector<16x128xf32>, i32 -> vector<16x128xf32>
    %282 = vector.extract_strided_slice %7 {offsets = [25, 0], sizes = [1, 128], strides = [1, 1]} : vector<31x128xf32> to vector<1x128xf32>
    %283 = vector.broadcast %282 : vector<1x128xf32> to vector<16x128xf32>
    %284 = arith.mulf %281, %283 : vector<16x128xf32>
    %c400 = arith.constant 400 : index
    %c0_99 = arith.constant 0 : index
    %285 = vector.load %arg7[%c400, %c0_99] : memref<496x16xbf16, #tpu.memory_space<vmem>>, vector<16x16xbf16>
    %286 = arith.truncf %284 : vector<16x128xf32> to vector<16x128xbf16>
    %cst_100 = arith.constant dense<0.000000e+00> : vector<16x128xf32>
    %287 = tpu.matmul %285, %286, %cst_100 {dimension_numbers = #tpu.dot_dimension_numbers<[1], [0], [0], [1], [0, 0, 1, 1], [], []>} : vector<16x16xbf16>, vector<16x128xbf16>, vector<16x128xf32> -> vector<16x128xf32>
    %288 = arith.addf %280, %287 : vector<16x128xf32>
    %c117_i32 = arith.constant 117 : i32
    %289 = tpu.dynamic_rotate %81 by %c117_i32 dim 1 : vector<16x128xf32>, i32 -> vector<16x128xf32>
    %290 = vector.extract_strided_slice %7 {offsets = [26, 0], sizes = [1, 128], strides = [1, 1]} : vector<31x128xf32> to vector<1x128xf32>
    %291 = vector.broadcast %290 : vector<1x128xf32> to vector<16x128xf32>
    %292 = arith.mulf %289, %291 : vector<16x128xf32>
    %c416 = arith.constant 416 : index
    %c0_101 = arith.constant 0 : index
    %293 = vector.load %arg7[%c416, %c0_101] : memref<496x16xbf16, #tpu.memory_space<vmem>>, vector<16x16xbf16>
    %294 = arith.truncf %292 : vector<16x128xf32> to vector<16x128xbf16>
    %cst_102 = arith.constant dense<0.000000e+00> : vector<16x128xf32>
    %295 = tpu.matmul %293, %294, %cst_102 {dimension_numbers = #tpu.dot_dimension_numbers<[1], [0], [0], [1], [0, 0, 1, 1], [], []>} : vector<16x16xbf16>, vector<16x128xbf16>, vector<16x128xf32> -> vector<16x128xf32>
    %296 = arith.addf %288, %295 : vector<16x128xf32>
    %c116_i32 = arith.constant 116 : i32
    %297 = tpu.dynamic_rotate %81 by %c116_i32 dim 1 : vector<16x128xf32>, i32 -> vector<16x128xf32>
    %298 = vector.extract_strided_slice %7 {offsets = [27, 0], sizes = [1, 128], strides = [1, 1]} : vector<31x128xf32> to vector<1x128xf32>
    %299 = vector.broadcast %298 : vector<1x128xf32> to vector<16x128xf32>
    %300 = arith.mulf %297, %299 : vector<16x128xf32>
    %c432 = arith.constant 432 : index
    %c0_103 = arith.constant 0 : index
    %301 = vector.load %arg7[%c432, %c0_103] : memref<496x16xbf16, #tpu.memory_space<vmem>>, vector<16x16xbf16>
    %302 = arith.truncf %300 : vector<16x128xf32> to vector<16x128xbf16>
    %cst_104 = arith.constant dense<0.000000e+00> : vector<16x128xf32>
    %303 = tpu.matmul %301, %302, %cst_104 {dimension_numbers = #tpu.dot_dimension_numbers<[1], [0], [0], [1], [0, 0, 1, 1], [], []>} : vector<16x16xbf16>, vector<16x128xbf16>, vector<16x128xf32> -> vector<16x128xf32>
    %304 = arith.addf %296, %303 : vector<16x128xf32>
    %c115_i32 = arith.constant 115 : i32
    %305 = tpu.dynamic_rotate %81 by %c115_i32 dim 1 : vector<16x128xf32>, i32 -> vector<16x128xf32>
    %306 = vector.extract_strided_slice %7 {offsets = [28, 0], sizes = [1, 128], strides = [1, 1]} : vector<31x128xf32> to vector<1x128xf32>
    %307 = vector.broadcast %306 : vector<1x128xf32> to vector<16x128xf32>
    %308 = arith.mulf %305, %307 : vector<16x128xf32>
    %c448 = arith.constant 448 : index
    %c0_105 = arith.constant 0 : index
    %309 = vector.load %arg7[%c448, %c0_105] : memref<496x16xbf16, #tpu.memory_space<vmem>>, vector<16x16xbf16>
    %310 = arith.truncf %308 : vector<16x128xf32> to vector<16x128xbf16>
    %cst_106 = arith.constant dense<0.000000e+00> : vector<16x128xf32>
    %311 = tpu.matmul %309, %310, %cst_106 {dimension_numbers = #tpu.dot_dimension_numbers<[1], [0], [0], [1], [0, 0, 1, 1], [], []>} : vector<16x16xbf16>, vector<16x128xbf16>, vector<16x128xf32> -> vector<16x128xf32>
    %312 = arith.addf %304, %311 : vector<16x128xf32>
    %c114_i32 = arith.constant 114 : i32
    %313 = tpu.dynamic_rotate %81 by %c114_i32 dim 1 : vector<16x128xf32>, i32 -> vector<16x128xf32>
    %314 = vector.extract_strided_slice %7 {offsets = [29, 0], sizes = [1, 128], strides = [1, 1]} : vector<31x128xf32> to vector<1x128xf32>
    %315 = vector.broadcast %314 : vector<1x128xf32> to vector<16x128xf32>
    %316 = arith.mulf %313, %315 : vector<16x128xf32>
    %c464 = arith.constant 464 : index
    %c0_107 = arith.constant 0 : index
    %317 = vector.load %arg7[%c464, %c0_107] : memref<496x16xbf16, #tpu.memory_space<vmem>>, vector<16x16xbf16>
    %318 = arith.truncf %316 : vector<16x128xf32> to vector<16x128xbf16>
    %cst_108 = arith.constant dense<0.000000e+00> : vector<16x128xf32>
    %319 = tpu.matmul %317, %318, %cst_108 {dimension_numbers = #tpu.dot_dimension_numbers<[1], [0], [0], [1], [0, 0, 1, 1], [], []>} : vector<16x16xbf16>, vector<16x128xbf16>, vector<16x128xf32> -> vector<16x128xf32>
    %320 = arith.addf %312, %319 : vector<16x128xf32>
    %c113_i32 = arith.constant 113 : i32
    %321 = tpu.dynamic_rotate %81 by %c113_i32 dim 1 : vector<16x128xf32>, i32 -> vector<16x128xf32>
    %322 = vector.extract_strided_slice %7 {offsets = [30, 0], sizes = [1, 128], strides = [1, 1]} : vector<31x128xf32> to vector<1x128xf32>
    %323 = vector.broadcast %322 : vector<1x128xf32> to vector<16x128xf32>
    %324 = arith.mulf %321, %323 : vector<16x128xf32>
    %c480 = arith.constant 480 : index
    %c0_109 = arith.constant 0 : index
    %325 = vector.load %arg7[%c480, %c0_109] : memref<496x16xbf16, #tpu.memory_space<vmem>>, vector<16x16xbf16>
    %326 = arith.truncf %324 : vector<16x128xf32> to vector<16x128xbf16>
    %cst_110 = arith.constant dense<0.000000e+00> : vector<16x128xf32>
    %327 = tpu.matmul %325, %326, %cst_110 {dimension_numbers = #tpu.dot_dimension_numbers<[1], [0], [0], [1], [0, 0, 1, 1], [], []>} : vector<16x16xbf16>, vector<16x128xbf16>, vector<16x128xf32> -> vector<16x128xf32>
    %328 = arith.addf %320, %327 : vector<16x128xf32>
    %c0_111 = arith.constant 0 : index
    %c0_112 = arith.constant 0 : index
    %329 = vector.load %arg6[%c0_111, %c0_112] : memref<128x128xf32, #tpu.memory_space<vmem>>, vector<128x128xf32>
    %cst_113 = arith.constant dense<0.000000e+00> : vector<16x128xf32>
    %330 = tpu.matmul %328, %329, %cst_113 {dimension_numbers = #tpu.dot_dimension_numbers<[1], [0], [0], [1], [0, 0, 1, 1], [], []>} : vector<16x128xf32>, vector<128x128xf32>, vector<16x128xf32> -> vector<16x128xf32>
    %331 = arith.subf %328, %330 : vector<16x128xf32>
    %332 = arith.mulf %331, %331 : vector<16x128xf32>
    %cst_114 = arith.constant dense<0.000000e+00> : vector<16x128xf32>
    %333 = tpu.matmul %332, %329, %cst_114 {dimension_numbers = #tpu.dot_dimension_numbers<[1], [0], [0], [1], [0, 0, 1, 1], [], []>} : vector<16x128xf32>, vector<128x128xf32>, vector<16x128xf32> -> vector<16x128xf32>
    %cst_115 = arith.constant 9.99999974E-6 : f32
    %334 = vector.broadcast %cst_115 : f32 to vector<16x128xf32>
    %335 = arith.addf %333, %334 : vector<16x128xf32>
    %336 = math.rsqrt %335 : vector<16x128xf32>
    %337 = arith.mulf %331, %336 : vector<16x128xf32>
    %338 = vector.broadcast %2 : vector<1x128xf32> to vector<16x128xf32>
    %339 = arith.mulf %337, %338 : vector<16x128xf32>
    %340 = vector.broadcast %3 : vector<1x128xf32> to vector<16x128xf32>
    %341 = arith.addf %339, %340 : vector<16x128xf32>
    %cst_116 = arith.constant 5.000000e-01 : f32
    %342 = vector.broadcast %cst_116 : f32 to vector<16x128xf32>
    %343 = arith.mulf %342, %341 : vector<16x128xf32>
    %cst_117 = arith.constant 0.707106769 : f32
    %344 = vector.broadcast %cst_117 : f32 to vector<16x128xf32>
    %345 = arith.mulf %341, %344 : vector<16x128xf32>
    %cst_118 = arith.constant 0.000000e+00 : f32
    %346 = vector.broadcast %cst_118 : f32 to vector<16x128xf32>
    %347 = arith.cmpf oge, %345, %346 : vector<16x128xf32>
    %cst_119 = arith.constant 1.000000e+00 : f32
    %cst_120 = arith.constant -1.000000e+00 : f32
    %348 = vector.broadcast %cst_119 : f32 to vector<16x128xf32>
    %349 = vector.broadcast %cst_120 : f32 to vector<16x128xf32>
    %350 = arith.select %347, %348, %349 : vector<16x128xi1>, vector<16x128xf32>
    %351 = math.absf %345 : vector<16x128xf32>
    %cst_121 = arith.constant 0.327591091 : f32
    %352 = vector.broadcast %cst_121 : f32 to vector<16x128xf32>
    %353 = arith.mulf %352, %351 : vector<16x128xf32>
    %cst_122 = arith.constant 1.000000e+00 : f32
    %354 = vector.broadcast %cst_122 : f32 to vector<16x128xf32>
    %355 = arith.addf %354, %353 : vector<16x128xf32>
    %cst_123 = arith.constant 1.000000e+00 : f32
    %356 = vector.broadcast %cst_123 : f32 to vector<16x128xf32>
    %357 = arith.divf %356, %355 : vector<16x128xf32>
    %cst_124 = arith.constant 1.06140542 : f32
    %358 = vector.broadcast %cst_124 : f32 to vector<16x128xf32>
    %359 = arith.mulf %358, %357 : vector<16x128xf32>
    %cst_125 = arith.constant -1.45315206 : f32
    %360 = vector.broadcast %cst_125 : f32 to vector<16x128xf32>
    %361 = arith.addf %359, %360 : vector<16x128xf32>
    %362 = arith.mulf %361, %357 : vector<16x128xf32>
    %cst_126 = arith.constant 1.42141378 : f32
    %363 = vector.broadcast %cst_126 : f32 to vector<16x128xf32>
    %364 = arith.addf %362, %363 : vector<16x128xf32>
    %365 = arith.mulf %364, %357 : vector<16x128xf32>
    %cst_127 = arith.constant -0.284496725 : f32
    %366 = vector.broadcast %cst_127 : f32 to vector<16x128xf32>
    %367 = arith.addf %365, %366 : vector<16x128xf32>
    %368 = arith.mulf %367, %357 : vector<16x128xf32>
    %cst_128 = arith.constant 0.254829586 : f32
    %369 = vector.broadcast %cst_128 : f32 to vector<16x128xf32>
    %370 = arith.addf %368, %369 : vector<16x128xf32>
    %371 = arith.mulf %370, %357 : vector<16x128xf32>
    %cst_129 = arith.constant 0.000000e+00 : f32
    %372 = vector.broadcast %cst_129 : f32 to vector<16x128xf32>
    %373 = arith.subf %372, %351 : vector<16x128xf32>
    %374 = arith.mulf %373, %351 : vector<16x128xf32>
    %375 = math.exp %374 : vector<16x128xf32>
    %376 = arith.mulf %371, %375 : vector<16x128xf32>
    %cst_130 = arith.constant 1.000000e+00 : f32
    %377 = vector.broadcast %cst_130 : f32 to vector<16x128xf32>
    %378 = arith.subf %377, %376 : vector<16x128xf32>
    %379 = arith.mulf %350, %378 : vector<16x128xf32>
    %cst_131 = arith.constant 1.000000e+00 : f32
    %380 = vector.broadcast %cst_131 : f32 to vector<16x128xf32>
    %381 = arith.addf %380, %379 : vector<16x128xf32>
    %382 = arith.mulf %343, %381 : vector<16x128xf32>
    %383 = arith.addf %68, %382 : vector<16x128xf32>
    %c0_132 = arith.constant 0 : index
    %c0_133 = arith.constant 0 : index
    %384 = vector.load %arg6[%c0_132, %c0_133] : memref<128x128xf32, #tpu.memory_space<vmem>>, vector<128x128xf32>
    %cst_134 = arith.constant dense<0.000000e+00> : vector<16x128xf32>
    %385 = tpu.matmul %383, %384, %cst_134 {dimension_numbers = #tpu.dot_dimension_numbers<[1], [0], [0], [1], [0, 0, 1, 1], [], []>} : vector<16x128xf32>, vector<128x128xf32>, vector<16x128xf32> -> vector<16x128xf32>
    %386 = arith.subf %383, %385 : vector<16x128xf32>
    %387 = arith.mulf %386, %386 : vector<16x128xf32>
    %cst_135 = arith.constant dense<0.000000e+00> : vector<16x128xf32>
    %388 = tpu.matmul %387, %384, %cst_135 {dimension_numbers = #tpu.dot_dimension_numbers<[1], [0], [0], [1], [0, 0, 1, 1], [], []>} : vector<16x128xf32>, vector<128x128xf32>, vector<16x128xf32> -> vector<16x128xf32>
    %cst_136 = arith.constant 9.99999974E-6 : f32
    %389 = vector.broadcast %cst_136 : f32 to vector<16x128xf32>
    %390 = arith.addf %388, %389 : vector<16x128xf32>
    %391 = math.rsqrt %390 : vector<16x128xf32>
    %392 = arith.mulf %386, %391 : vector<16x128xf32>
    %393 = vector.broadcast %2 : vector<1x128xf32> to vector<16x128xf32>
    %394 = arith.mulf %392, %393 : vector<16x128xf32>
    %395 = vector.broadcast %3 : vector<1x128xf32> to vector<16x128xf32>
    %396 = arith.addf %394, %395 : vector<16x128xf32>
    %397 = arith.truncf %396 : vector<16x128xf32> to vector<16x128xbf16>
    %cst_137 = arith.constant dense<0.000000e+00> : vector<16x128xf32>
    %398 = tpu.matmul %397, %6, %cst_137 {dimension_numbers = #tpu.dot_dimension_numbers<[1], [0], [0], [1], [0, 0, 1, 1], [], []>} : vector<16x128xbf16>, vector<128x128xbf16>, vector<16x128xf32> -> vector<16x128xf32>
    %399 = vector.broadcast %5 : vector<1x128xf32> to vector<16x128xf32>
    %400 = arith.addf %398, %399 : vector<16x128xf32>
    %cst_138 = arith.constant 5.000000e-01 : f32
    %401 = vector.broadcast %cst_138 : f32 to vector<16x128xf32>
    %402 = arith.mulf %401, %400 : vector<16x128xf32>
    %cst_139 = arith.constant 0.707106769 : f32
    %403 = vector.broadcast %cst_139 : f32 to vector<16x128xf32>
    %404 = arith.mulf %400, %403 : vector<16x128xf32>
    %cst_140 = arith.constant 0.000000e+00 : f32
    %405 = vector.broadcast %cst_140 : f32 to vector<16x128xf32>
    %406 = arith.cmpf oge, %404, %405 : vector<16x128xf32>
    %cst_141 = arith.constant 1.000000e+00 : f32
    %cst_142 = arith.constant -1.000000e+00 : f32
    %407 = vector.broadcast %cst_141 : f32 to vector<16x128xf32>
    %408 = vector.broadcast %cst_142 : f32 to vector<16x128xf32>
    %409 = arith.select %406, %407, %408 : vector<16x128xi1>, vector<16x128xf32>
    %410 = math.absf %404 : vector<16x128xf32>
    %cst_143 = arith.constant 0.327591091 : f32
    %411 = vector.broadcast %cst_143 : f32 to vector<16x128xf32>
    %412 = arith.mulf %411, %410 : vector<16x128xf32>
    %cst_144 = arith.constant 1.000000e+00 : f32
    %413 = vector.broadcast %cst_144 : f32 to vector<16x128xf32>
    %414 = arith.addf %413, %412 : vector<16x128xf32>
    %cst_145 = arith.constant 1.000000e+00 : f32
    %415 = vector.broadcast %cst_145 : f32 to vector<16x128xf32>
    %416 = arith.divf %415, %414 : vector<16x128xf32>
    %cst_146 = arith.constant 1.06140542 : f32
    %417 = vector.broadcast %cst_146 : f32 to vector<16x128xf32>
    %418 = arith.mulf %417, %416 : vector<16x128xf32>
    %cst_147 = arith.constant -1.45315206 : f32
    %419 = vector.broadcast %cst_147 : f32 to vector<16x128xf32>
    %420 = arith.addf %418, %419 : vector<16x128xf32>
    %421 = arith.mulf %420, %416 : vector<16x128xf32>
    %cst_148 = arith.constant 1.42141378 : f32
    %422 = vector.broadcast %cst_148 : f32 to vector<16x128xf32>
    %423 = arith.addf %421, %422 : vector<16x128xf32>
    %424 = arith.mulf %423, %416 : vector<16x128xf32>
    %cst_149 = arith.constant -0.284496725 : f32
    %425 = vector.broadcast %cst_149 : f32 to vector<16x128xf32>
    %426 = arith.addf %424, %425 : vector<16x128xf32>
    %427 = arith.mulf %426, %416 : vector<16x128xf32>
    %cst_150 = arith.constant 0.254829586 : f32
    %428 = vector.broadcast %cst_150 : f32 to vector<16x128xf32>
    %429 = arith.addf %427, %428 : vector<16x128xf32>
    %430 = arith.mulf %429, %416 : vector<16x128xf32>
    %cst_151 = arith.constant 0.000000e+00 : f32
    %431 = vector.broadcast %cst_151 : f32 to vector<16x128xf32>
    %432 = arith.subf %431, %410 : vector<16x128xf32>
    %433 = arith.mulf %432, %410 : vector<16x128xf32>
    %434 = math.exp %433 : vector<16x128xf32>
    %435 = arith.mulf %430, %434 : vector<16x128xf32>
    %cst_152 = arith.constant 1.000000e+00 : f32
    %436 = vector.broadcast %cst_152 : f32 to vector<16x128xf32>
    %437 = arith.subf %436, %435 : vector<16x128xf32>
    %438 = arith.mulf %409, %437 : vector<16x128xf32>
    %cst_153 = arith.constant 1.000000e+00 : f32
    %439 = vector.broadcast %cst_153 : f32 to vector<16x128xf32>
    %440 = arith.addf %439, %438 : vector<16x128xf32>
    %441 = arith.mulf %402, %440 : vector<16x128xf32>
    %442 = arith.addf %383, %441 : vector<16x128xf32>
    %c0_154 = arith.constant 0 : index
    %c0_155 = arith.constant 0 : index
    %443 = vector.load %arg6[%c0_154, %c0_155] : memref<128x128xf32, #tpu.memory_space<vmem>>, vector<128x128xf32>
    %cst_156 = arith.constant dense<0.000000e+00> : vector<16x128xf32>
    %444 = tpu.matmul %442, %443, %cst_156 {dimension_numbers = #tpu.dot_dimension_numbers<[1], [0], [0], [1], [0, 0, 1, 1], [], []>} : vector<16x128xf32>, vector<128x128xf32>, vector<16x128xf32> -> vector<16x128xf32>
    %445 = arith.subf %442, %444 : vector<16x128xf32>
    %446 = arith.mulf %445, %445 : vector<16x128xf32>
    %cst_157 = arith.constant dense<0.000000e+00> : vector<16x128xf32>
    %447 = tpu.matmul %446, %443, %cst_157 {dimension_numbers = #tpu.dot_dimension_numbers<[1], [0], [0], [1], [0, 0, 1, 1], [], []>} : vector<16x128xf32>, vector<128x128xf32>, vector<16x128xf32> -> vector<16x128xf32>
    %cst_158 = arith.constant 9.99999974E-6 : f32
    %448 = vector.broadcast %cst_158 : f32 to vector<16x128xf32>
    %449 = arith.addf %447, %448 : vector<16x128xf32>
    %450 = math.rsqrt %449 : vector<16x128xf32>
    %451 = arith.mulf %445, %450 : vector<16x128xf32>
    %452 = vector.broadcast %2 : vector<1x128xf32> to vector<16x128xf32>
    %453 = arith.mulf %451, %452 : vector<16x128xf32>
    %454 = vector.broadcast %3 : vector<1x128xf32> to vector<16x128xf32>
    %455 = arith.addf %453, %454 : vector<16x128xf32>
    %cst_159 = arith.constant 0.000000e+00 : f32
    %456 = vector.broadcast %cst_159 : f32 to vector<16x128xf32>
    %457 = vector.broadcast %4 : vector<16x1xf32> to vector<16x128xf32>
    %458 = arith.addf %456, %457 : vector<16x128xf32>
    %c15_i32_160 = arith.constant 15 : i32
    %459 = tpu.dynamic_rotate %455 by %c15_i32_160 dim 1 : vector<16x128xf32>, i32 -> vector<16x128xf32>
    %460 = vector.extract_strided_slice %7 {offsets = [0, 0], sizes = [1, 128], strides = [1, 1]} : vector<31x128xf32> to vector<1x128xf32>
    %461 = vector.broadcast %460 : vector<1x128xf32> to vector<16x128xf32>
    %462 = arith.mulf %459, %461 : vector<16x128xf32>
    %c0_161 = arith.constant 0 : index
    %c0_162 = arith.constant 0 : index
    %463 = vector.load %arg7[%c0_161, %c0_162] : memref<496x16xbf16, #tpu.memory_space<vmem>>, vector<16x16xbf16>
    %464 = arith.truncf %462 : vector<16x128xf32> to vector<16x128xbf16>
    %cst_163 = arith.constant dense<0.000000e+00> : vector<16x128xf32>
    %465 = tpu.matmul %463, %464, %cst_163 {dimension_numbers = #tpu.dot_dimension_numbers<[1], [0], [0], [1], [0, 0, 1, 1], [], []>} : vector<16x16xbf16>, vector<16x128xbf16>, vector<16x128xf32> -> vector<16x128xf32>
    %466 = arith.addf %458, %465 : vector<16x128xf32>
    %c14_i32_164 = arith.constant 14 : i32
    %467 = tpu.dynamic_rotate %455 by %c14_i32_164 dim 1 : vector<16x128xf32>, i32 -> vector<16x128xf32>
    %468 = vector.extract_strided_slice %7 {offsets = [1, 0], sizes = [1, 128], strides = [1, 1]} : vector<31x128xf32> to vector<1x128xf32>
    %469 = vector.broadcast %468 : vector<1x128xf32> to vector<16x128xf32>
    %470 = arith.mulf %467, %469 : vector<16x128xf32>
    %c16_165 = arith.constant 16 : index
    %c0_166 = arith.constant 0 : index
    %471 = vector.load %arg7[%c16_165, %c0_166] : memref<496x16xbf16, #tpu.memory_space<vmem>>, vector<16x16xbf16>
    %472 = arith.truncf %470 : vector<16x128xf32> to vector<16x128xbf16>
    %cst_167 = arith.constant dense<0.000000e+00> : vector<16x128xf32>
    %473 = tpu.matmul %471, %472, %cst_167 {dimension_numbers = #tpu.dot_dimension_numbers<[1], [0], [0], [1], [0, 0, 1, 1], [], []>} : vector<16x16xbf16>, vector<16x128xbf16>, vector<16x128xf32> -> vector<16x128xf32>
    %474 = arith.addf %466, %473 : vector<16x128xf32>
    %c13_i32_168 = arith.constant 13 : i32
    %475 = tpu.dynamic_rotate %455 by %c13_i32_168 dim 1 : vector<16x128xf32>, i32 -> vector<16x128xf32>
    %476 = vector.extract_strided_slice %7 {offsets = [2, 0], sizes = [1, 128], strides = [1, 1]} : vector<31x128xf32> to vector<1x128xf32>
    %477 = vector.broadcast %476 : vector<1x128xf32> to vector<16x128xf32>
    %478 = arith.mulf %475, %477 : vector<16x128xf32>
    %c32_169 = arith.constant 32 : index
    %c0_170 = arith.constant 0 : index
    %479 = vector.load %arg7[%c32_169, %c0_170] : memref<496x16xbf16, #tpu.memory_space<vmem>>, vector<16x16xbf16>
    %480 = arith.truncf %478 : vector<16x128xf32> to vector<16x128xbf16>
    %cst_171 = arith.constant dense<0.000000e+00> : vector<16x128xf32>
    %481 = tpu.matmul %479, %480, %cst_171 {dimension_numbers = #tpu.dot_dimension_numbers<[1], [0], [0], [1], [0, 0, 1, 1], [], []>} : vector<16x16xbf16>, vector<16x128xbf16>, vector<16x128xf32> -> vector<16x128xf32>
    %482 = arith.addf %474, %481 : vector<16x128xf32>
    %c12_i32_172 = arith.constant 12 : i32
    %483 = tpu.dynamic_rotate %455 by %c12_i32_172 dim 1 : vector<16x128xf32>, i32 -> vector<16x128xf32>
    %484 = vector.extract_strided_slice %7 {offsets = [3, 0], sizes = [1, 128], strides = [1, 1]} : vector<31x128xf32> to vector<1x128xf32>
    %485 = vector.broadcast %484 : vector<1x128xf32> to vector<16x128xf32>
    %486 = arith.mulf %483, %485 : vector<16x128xf32>
    %c48_173 = arith.constant 48 : index
    %c0_174 = arith.constant 0 : index
    %487 = vector.load %arg7[%c48_173, %c0_174] : memref<496x16xbf16, #tpu.memory_space<vmem>>, vector<16x16xbf16>
    %488 = arith.truncf %486 : vector<16x128xf32> to vector<16x128xbf16>
    %cst_175 = arith.constant dense<0.000000e+00> : vector<16x128xf32>
    %489 = tpu.matmul %487, %488, %cst_175 {dimension_numbers = #tpu.dot_dimension_numbers<[1], [0], [0], [1], [0, 0, 1, 1], [], []>} : vector<16x16xbf16>, vector<16x128xbf16>, vector<16x128xf32> -> vector<16x128xf32>
    %490 = arith.addf %482, %489 : vector<16x128xf32>
    %c11_i32_176 = arith.constant 11 : i32
    %491 = tpu.dynamic_rotate %455 by %c11_i32_176 dim 1 : vector<16x128xf32>, i32 -> vector<16x128xf32>
    %492 = vector.extract_strided_slice %7 {offsets = [4, 0], sizes = [1, 128], strides = [1, 1]} : vector<31x128xf32> to vector<1x128xf32>
    %493 = vector.broadcast %492 : vector<1x128xf32> to vector<16x128xf32>
    %494 = arith.mulf %491, %493 : vector<16x128xf32>
    %c64_177 = arith.constant 64 : index
    %c0_178 = arith.constant 0 : index
    %495 = vector.load %arg7[%c64_177, %c0_178] : memref<496x16xbf16, #tpu.memory_space<vmem>>, vector<16x16xbf16>
    %496 = arith.truncf %494 : vector<16x128xf32> to vector<16x128xbf16>
    %cst_179 = arith.constant dense<0.000000e+00> : vector<16x128xf32>
    %497 = tpu.matmul %495, %496, %cst_179 {dimension_numbers = #tpu.dot_dimension_numbers<[1], [0], [0], [1], [0, 0, 1, 1], [], []>} : vector<16x16xbf16>, vector<16x128xbf16>, vector<16x128xf32> -> vector<16x128xf32>
    %498 = arith.addf %490, %497 : vector<16x128xf32>
    %c10_i32_180 = arith.constant 10 : i32
    %499 = tpu.dynamic_rotate %455 by %c10_i32_180 dim 1 : vector<16x128xf32>, i32 -> vector<16x128xf32>
    %500 = vector.extract_strided_slice %7 {offsets = [5, 0], sizes = [1, 128], strides = [1, 1]} : vector<31x128xf32> to vector<1x128xf32>
    %501 = vector.broadcast %500 : vector<1x128xf32> to vector<16x128xf32>
    %502 = arith.mulf %499, %501 : vector<16x128xf32>
    %c80_181 = arith.constant 80 : index
    %c0_182 = arith.constant 0 : index
    %503 = vector.load %arg7[%c80_181, %c0_182] : memref<496x16xbf16, #tpu.memory_space<vmem>>, vector<16x16xbf16>
    %504 = arith.truncf %502 : vector<16x128xf32> to vector<16x128xbf16>
    %cst_183 = arith.constant dense<0.000000e+00> : vector<16x128xf32>
    %505 = tpu.matmul %503, %504, %cst_183 {dimension_numbers = #tpu.dot_dimension_numbers<[1], [0], [0], [1], [0, 0, 1, 1], [], []>} : vector<16x16xbf16>, vector<16x128xbf16>, vector<16x128xf32> -> vector<16x128xf32>
    %506 = arith.addf %498, %505 : vector<16x128xf32>
    %c9_i32_184 = arith.constant 9 : i32
    %507 = tpu.dynamic_rotate %455 by %c9_i32_184 dim 1 : vector<16x128xf32>, i32 -> vector<16x128xf32>
    %508 = vector.extract_strided_slice %7 {offsets = [6, 0], sizes = [1, 128], strides = [1, 1]} : vector<31x128xf32> to vector<1x128xf32>
    %509 = vector.broadcast %508 : vector<1x128xf32> to vector<16x128xf32>
    %510 = arith.mulf %507, %509 : vector<16x128xf32>
    %c96_185 = arith.constant 96 : index
    %c0_186 = arith.constant 0 : index
    %511 = vector.load %arg7[%c96_185, %c0_186] : memref<496x16xbf16, #tpu.memory_space<vmem>>, vector<16x16xbf16>
    %512 = arith.truncf %510 : vector<16x128xf32> to vector<16x128xbf16>
    %cst_187 = arith.constant dense<0.000000e+00> : vector<16x128xf32>
    %513 = tpu.matmul %511, %512, %cst_187 {dimension_numbers = #tpu.dot_dimension_numbers<[1], [0], [0], [1], [0, 0, 1, 1], [], []>} : vector<16x16xbf16>, vector<16x128xbf16>, vector<16x128xf32> -> vector<16x128xf32>
    %514 = arith.addf %506, %513 : vector<16x128xf32>
    %c8_i32_188 = arith.constant 8 : i32
    %515 = tpu.dynamic_rotate %455 by %c8_i32_188 dim 1 : vector<16x128xf32>, i32 -> vector<16x128xf32>
    %516 = vector.extract_strided_slice %7 {offsets = [7, 0], sizes = [1, 128], strides = [1, 1]} : vector<31x128xf32> to vector<1x128xf32>
    %517 = vector.broadcast %516 : vector<1x128xf32> to vector<16x128xf32>
    %518 = arith.mulf %515, %517 : vector<16x128xf32>
    %c112_189 = arith.constant 112 : index
    %c0_190 = arith.constant 0 : index
    %519 = vector.load %arg7[%c112_189, %c0_190] : memref<496x16xbf16, #tpu.memory_space<vmem>>, vector<16x16xbf16>
    %520 = arith.truncf %518 : vector<16x128xf32> to vector<16x128xbf16>
    %cst_191 = arith.constant dense<0.000000e+00> : vector<16x128xf32>
    %521 = tpu.matmul %519, %520, %cst_191 {dimension_numbers = #tpu.dot_dimension_numbers<[1], [0], [0], [1], [0, 0, 1, 1], [], []>} : vector<16x16xbf16>, vector<16x128xbf16>, vector<16x128xf32> -> vector<16x128xf32>
    %522 = arith.addf %514, %521 : vector<16x128xf32>
    %c7_i32_192 = arith.constant 7 : i32
    %523 = tpu.dynamic_rotate %455 by %c7_i32_192 dim 1 : vector<16x128xf32>, i32 -> vector<16x128xf32>
    %524 = vector.extract_strided_slice %7 {offsets = [8, 0], sizes = [1, 128], strides = [1, 1]} : vector<31x128xf32> to vector<1x128xf32>
    %525 = vector.broadcast %524 : vector<1x128xf32> to vector<16x128xf32>
    %526 = arith.mulf %523, %525 : vector<16x128xf32>
    %c128_193 = arith.constant 128 : index
    %c0_194 = arith.constant 0 : index
    %527 = vector.load %arg7[%c128_193, %c0_194] : memref<496x16xbf16, #tpu.memory_space<vmem>>, vector<16x16xbf16>
    %528 = arith.truncf %526 : vector<16x128xf32> to vector<16x128xbf16>
    %cst_195 = arith.constant dense<0.000000e+00> : vector<16x128xf32>
    %529 = tpu.matmul %527, %528, %cst_195 {dimension_numbers = #tpu.dot_dimension_numbers<[1], [0], [0], [1], [0, 0, 1, 1], [], []>} : vector<16x16xbf16>, vector<16x128xbf16>, vector<16x128xf32> -> vector<16x128xf32>
    %530 = arith.addf %522, %529 : vector<16x128xf32>
    %c6_i32_196 = arith.constant 6 : i32
    %531 = tpu.dynamic_rotate %455 by %c6_i32_196 dim 1 : vector<16x128xf32>, i32 -> vector<16x128xf32>
    %532 = vector.extract_strided_slice %7 {offsets = [9, 0], sizes = [1, 128], strides = [1, 1]} : vector<31x128xf32> to vector<1x128xf32>
    %533 = vector.broadcast %532 : vector<1x128xf32> to vector<16x128xf32>
    %534 = arith.mulf %531, %533 : vector<16x128xf32>
    %c144_197 = arith.constant 144 : index
    %c0_198 = arith.constant 0 : index
    %535 = vector.load %arg7[%c144_197, %c0_198] : memref<496x16xbf16, #tpu.memory_space<vmem>>, vector<16x16xbf16>
    %536 = arith.truncf %534 : vector<16x128xf32> to vector<16x128xbf16>
    %cst_199 = arith.constant dense<0.000000e+00> : vector<16x128xf32>
    %537 = tpu.matmul %535, %536, %cst_199 {dimension_numbers = #tpu.dot_dimension_numbers<[1], [0], [0], [1], [0, 0, 1, 1], [], []>} : vector<16x16xbf16>, vector<16x128xbf16>, vector<16x128xf32> -> vector<16x128xf32>
    %538 = arith.addf %530, %537 : vector<16x128xf32>
    %c5_i32_200 = arith.constant 5 : i32
    %539 = tpu.dynamic_rotate %455 by %c5_i32_200 dim 1 : vector<16x128xf32>, i32 -> vector<16x128xf32>
    %540 = vector.extract_strided_slice %7 {offsets = [10, 0], sizes = [1, 128], strides = [1, 1]} : vector<31x128xf32> to vector<1x128xf32>
    %541 = vector.broadcast %540 : vector<1x128xf32> to vector<16x128xf32>
    %542 = arith.mulf %539, %541 : vector<16x128xf32>
    %c160_201 = arith.constant 160 : index
    %c0_202 = arith.constant 0 : index
    %543 = vector.load %arg7[%c160_201, %c0_202] : memref<496x16xbf16, #tpu.memory_space<vmem>>, vector<16x16xbf16>
    %544 = arith.truncf %542 : vector<16x128xf32> to vector<16x128xbf16>
    %cst_203 = arith.constant dense<0.000000e+00> : vector<16x128xf32>
    %545 = tpu.matmul %543, %544, %cst_203 {dimension_numbers = #tpu.dot_dimension_numbers<[1], [0], [0], [1], [0, 0, 1, 1], [], []>} : vector<16x16xbf16>, vector<16x128xbf16>, vector<16x128xf32> -> vector<16x128xf32>
    %546 = arith.addf %538, %545 : vector<16x128xf32>
    %c4_i32_204 = arith.constant 4 : i32
    %547 = tpu.dynamic_rotate %455 by %c4_i32_204 dim 1 : vector<16x128xf32>, i32 -> vector<16x128xf32>
    %548 = vector.extract_strided_slice %7 {offsets = [11, 0], sizes = [1, 128], strides = [1, 1]} : vector<31x128xf32> to vector<1x128xf32>
    %549 = vector.broadcast %548 : vector<1x128xf32> to vector<16x128xf32>
    %550 = arith.mulf %547, %549 : vector<16x128xf32>
    %c176_205 = arith.constant 176 : index
    %c0_206 = arith.constant 0 : index
    %551 = vector.load %arg7[%c176_205, %c0_206] : memref<496x16xbf16, #tpu.memory_space<vmem>>, vector<16x16xbf16>
    %552 = arith.truncf %550 : vector<16x128xf32> to vector<16x128xbf16>
    %cst_207 = arith.constant dense<0.000000e+00> : vector<16x128xf32>
    %553 = tpu.matmul %551, %552, %cst_207 {dimension_numbers = #tpu.dot_dimension_numbers<[1], [0], [0], [1], [0, 0, 1, 1], [], []>} : vector<16x16xbf16>, vector<16x128xbf16>, vector<16x128xf32> -> vector<16x128xf32>
    %554 = arith.addf %546, %553 : vector<16x128xf32>
    %c3_i32_208 = arith.constant 3 : i32
    %555 = tpu.dynamic_rotate %455 by %c3_i32_208 dim 1 : vector<16x128xf32>, i32 -> vector<16x128xf32>
    %556 = vector.extract_strided_slice %7 {offsets = [12, 0], sizes = [1, 128], strides = [1, 1]} : vector<31x128xf32> to vector<1x128xf32>
    %557 = vector.broadcast %556 : vector<1x128xf32> to vector<16x128xf32>
    %558 = arith.mulf %555, %557 : vector<16x128xf32>
    %c192_209 = arith.constant 192 : index
    %c0_210 = arith.constant 0 : index
    %559 = vector.load %arg7[%c192_209, %c0_210] : memref<496x16xbf16, #tpu.memory_space<vmem>>, vector<16x16xbf16>
    %560 = arith.truncf %558 : vector<16x128xf32> to vector<16x128xbf16>
    %cst_211 = arith.constant dense<0.000000e+00> : vector<16x128xf32>
    %561 = tpu.matmul %559, %560, %cst_211 {dimension_numbers = #tpu.dot_dimension_numbers<[1], [0], [0], [1], [0, 0, 1, 1], [], []>} : vector<16x16xbf16>, vector<16x128xbf16>, vector<16x128xf32> -> vector<16x128xf32>
    %562 = arith.addf %554, %561 : vector<16x128xf32>
    %c2_i32_212 = arith.constant 2 : i32
    %563 = tpu.dynamic_rotate %455 by %c2_i32_212 dim 1 : vector<16x128xf32>, i32 -> vector<16x128xf32>
    %564 = vector.extract_strided_slice %7 {offsets = [13, 0], sizes = [1, 128], strides = [1, 1]} : vector<31x128xf32> to vector<1x128xf32>
    %565 = vector.broadcast %564 : vector<1x128xf32> to vector<16x128xf32>
    %566 = arith.mulf %563, %565 : vector<16x128xf32>
    %c208_213 = arith.constant 208 : index
    %c0_214 = arith.constant 0 : index
    %567 = vector.load %arg7[%c208_213, %c0_214] : memref<496x16xbf16, #tpu.memory_space<vmem>>, vector<16x16xbf16>
    %568 = arith.truncf %566 : vector<16x128xf32> to vector<16x128xbf16>
    %cst_215 = arith.constant dense<0.000000e+00> : vector<16x128xf32>
    %569 = tpu.matmul %567, %568, %cst_215 {dimension_numbers = #tpu.dot_dimension_numbers<[1], [0], [0], [1], [0, 0, 1, 1], [], []>} : vector<16x16xbf16>, vector<16x128xbf16>, vector<16x128xf32> -> vector<16x128xf32>
    %570 = arith.addf %562, %569 : vector<16x128xf32>
    %c1_i32_216 = arith.constant 1 : i32
    %571 = tpu.dynamic_rotate %455 by %c1_i32_216 dim 1 : vector<16x128xf32>, i32 -> vector<16x128xf32>
    %572 = vector.extract_strided_slice %7 {offsets = [14, 0], sizes = [1, 128], strides = [1, 1]} : vector<31x128xf32> to vector<1x128xf32>
    %573 = vector.broadcast %572 : vector<1x128xf32> to vector<16x128xf32>
    %574 = arith.mulf %571, %573 : vector<16x128xf32>
    %c224_217 = arith.constant 224 : index
    %c0_218 = arith.constant 0 : index
    %575 = vector.load %arg7[%c224_217, %c0_218] : memref<496x16xbf16, #tpu.memory_space<vmem>>, vector<16x16xbf16>
    %576 = arith.truncf %574 : vector<16x128xf32> to vector<16x128xbf16>
    %cst_219 = arith.constant dense<0.000000e+00> : vector<16x128xf32>
    %577 = tpu.matmul %575, %576, %cst_219 {dimension_numbers = #tpu.dot_dimension_numbers<[1], [0], [0], [1], [0, 0, 1, 1], [], []>} : vector<16x16xbf16>, vector<16x128xbf16>, vector<16x128xf32> -> vector<16x128xf32>
    %578 = arith.addf %570, %577 : vector<16x128xf32>
    %c240_220 = arith.constant 240 : index
    %c0_221 = arith.constant 0 : index
    %579 = vector.load %arg7[%c240_220, %c0_221] : memref<496x16xbf16, #tpu.memory_space<vmem>>, vector<16x16xbf16>
    %580 = arith.truncf %455 : vector<16x128xf32> to vector<16x128xbf16>
    %cst_222 = arith.constant dense<0.000000e+00> : vector<16x128xf32>
    %581 = tpu.matmul %579, %580, %cst_222 {dimension_numbers = #tpu.dot_dimension_numbers<[1], [0], [0], [1], [0, 0, 1, 1], [], []>} : vector<16x16xbf16>, vector<16x128xbf16>, vector<16x128xf32> -> vector<16x128xf32>
    %582 = arith.addf %578, %581 : vector<16x128xf32>
    %c127_i32_223 = arith.constant 127 : i32
    %583 = tpu.dynamic_rotate %455 by %c127_i32_223 dim 1 : vector<16x128xf32>, i32 -> vector<16x128xf32>
    %584 = vector.extract_strided_slice %7 {offsets = [16, 0], sizes = [1, 128], strides = [1, 1]} : vector<31x128xf32> to vector<1x128xf32>
    %585 = vector.broadcast %584 : vector<1x128xf32> to vector<16x128xf32>
    %586 = arith.mulf %583, %585 : vector<16x128xf32>
    %c256_224 = arith.constant 256 : index
    %c0_225 = arith.constant 0 : index
    %587 = vector.load %arg7[%c256_224, %c0_225] : memref<496x16xbf16, #tpu.memory_space<vmem>>, vector<16x16xbf16>
    %588 = arith.truncf %586 : vector<16x128xf32> to vector<16x128xbf16>
    %cst_226 = arith.constant dense<0.000000e+00> : vector<16x128xf32>
    %589 = tpu.matmul %587, %588, %cst_226 {dimension_numbers = #tpu.dot_dimension_numbers<[1], [0], [0], [1], [0, 0, 1, 1], [], []>} : vector<16x16xbf16>, vector<16x128xbf16>, vector<16x128xf32> -> vector<16x128xf32>
    %590 = arith.addf %582, %589 : vector<16x128xf32>
    %c126_i32_227 = arith.constant 126 : i32
    %591 = tpu.dynamic_rotate %455 by %c126_i32_227 dim 1 : vector<16x128xf32>, i32 -> vector<16x128xf32>
    %592 = vector.extract_strided_slice %7 {offsets = [17, 0], sizes = [1, 128], strides = [1, 1]} : vector<31x128xf32> to vector<1x128xf32>
    %593 = vector.broadcast %592 : vector<1x128xf32> to vector<16x128xf32>
    %594 = arith.mulf %591, %593 : vector<16x128xf32>
    %c272_228 = arith.constant 272 : index
    %c0_229 = arith.constant 0 : index
    %595 = vector.load %arg7[%c272_228, %c0_229] : memref<496x16xbf16, #tpu.memory_space<vmem>>, vector<16x16xbf16>
    %596 = arith.truncf %594 : vector<16x128xf32> to vector<16x128xbf16>
    %cst_230 = arith.constant dense<0.000000e+00> : vector<16x128xf32>
    %597 = tpu.matmul %595, %596, %cst_230 {dimension_numbers = #tpu.dot_dimension_numbers<[1], [0], [0], [1], [0, 0, 1, 1], [], []>} : vector<16x16xbf16>, vector<16x128xbf16>, vector<16x128xf32> -> vector<16x128xf32>
    %598 = arith.addf %590, %597 : vector<16x128xf32>
    %c125_i32_231 = arith.constant 125 : i32
    %599 = tpu.dynamic_rotate %455 by %c125_i32_231 dim 1 : vector<16x128xf32>, i32 -> vector<16x128xf32>
    %600 = vector.extract_strided_slice %7 {offsets = [18, 0], sizes = [1, 128], strides = [1, 1]} : vector<31x128xf32> to vector<1x128xf32>
    %601 = vector.broadcast %600 : vector<1x128xf32> to vector<16x128xf32>
    %602 = arith.mulf %599, %601 : vector<16x128xf32>
    %c288_232 = arith.constant 288 : index
    %c0_233 = arith.constant 0 : index
    %603 = vector.load %arg7[%c288_232, %c0_233] : memref<496x16xbf16, #tpu.memory_space<vmem>>, vector<16x16xbf16>
    %604 = arith.truncf %602 : vector<16x128xf32> to vector<16x128xbf16>
    %cst_234 = arith.constant dense<0.000000e+00> : vector<16x128xf32>
    %605 = tpu.matmul %603, %604, %cst_234 {dimension_numbers = #tpu.dot_dimension_numbers<[1], [0], [0], [1], [0, 0, 1, 1], [], []>} : vector<16x16xbf16>, vector<16x128xbf16>, vector<16x128xf32> -> vector<16x128xf32>
    %606 = arith.addf %598, %605 : vector<16x128xf32>
    %c124_i32_235 = arith.constant 124 : i32
    %607 = tpu.dynamic_rotate %455 by %c124_i32_235 dim 1 : vector<16x128xf32>, i32 -> vector<16x128xf32>
    %608 = vector.extract_strided_slice %7 {offsets = [19, 0], sizes = [1, 128], strides = [1, 1]} : vector<31x128xf32> to vector<1x128xf32>
    %609 = vector.broadcast %608 : vector<1x128xf32> to vector<16x128xf32>
    %610 = arith.mulf %607, %609 : vector<16x128xf32>
    %c304_236 = arith.constant 304 : index
    %c0_237 = arith.constant 0 : index
    %611 = vector.load %arg7[%c304_236, %c0_237] : memref<496x16xbf16, #tpu.memory_space<vmem>>, vector<16x16xbf16>
    %612 = arith.truncf %610 : vector<16x128xf32> to vector<16x128xbf16>
    %cst_238 = arith.constant dense<0.000000e+00> : vector<16x128xf32>
    %613 = tpu.matmul %611, %612, %cst_238 {dimension_numbers = #tpu.dot_dimension_numbers<[1], [0], [0], [1], [0, 0, 1, 1], [], []>} : vector<16x16xbf16>, vector<16x128xbf16>, vector<16x128xf32> -> vector<16x128xf32>
    %614 = arith.addf %606, %613 : vector<16x128xf32>
    %c123_i32_239 = arith.constant 123 : i32
    %615 = tpu.dynamic_rotate %455 by %c123_i32_239 dim 1 : vector<16x128xf32>, i32 -> vector<16x128xf32>
    %616 = vector.extract_strided_slice %7 {offsets = [20, 0], sizes = [1, 128], strides = [1, 1]} : vector<31x128xf32> to vector<1x128xf32>
    %617 = vector.broadcast %616 : vector<1x128xf32> to vector<16x128xf32>
    %618 = arith.mulf %615, %617 : vector<16x128xf32>
    %c320_240 = arith.constant 320 : index
    %c0_241 = arith.constant 0 : index
    %619 = vector.load %arg7[%c320_240, %c0_241] : memref<496x16xbf16, #tpu.memory_space<vmem>>, vector<16x16xbf16>
    %620 = arith.truncf %618 : vector<16x128xf32> to vector<16x128xbf16>
    %cst_242 = arith.constant dense<0.000000e+00> : vector<16x128xf32>
    %621 = tpu.matmul %619, %620, %cst_242 {dimension_numbers = #tpu.dot_dimension_numbers<[1], [0], [0], [1], [0, 0, 1, 1], [], []>} : vector<16x16xbf16>, vector<16x128xbf16>, vector<16x128xf32> -> vector<16x128xf32>
    %622 = arith.addf %614, %621 : vector<16x128xf32>
    %c122_i32_243 = arith.constant 122 : i32
    %623 = tpu.dynamic_rotate %455 by %c122_i32_243 dim 1 : vector<16x128xf32>, i32 -> vector<16x128xf32>
    %624 = vector.extract_strided_slice %7 {offsets = [21, 0], sizes = [1, 128], strides = [1, 1]} : vector<31x128xf32> to vector<1x128xf32>
    %625 = vector.broadcast %624 : vector<1x128xf32> to vector<16x128xf32>
    %626 = arith.mulf %623, %625 : vector<16x128xf32>
    %c336_244 = arith.constant 336 : index
    %c0_245 = arith.constant 0 : index
    %627 = vector.load %arg7[%c336_244, %c0_245] : memref<496x16xbf16, #tpu.memory_space<vmem>>, vector<16x16xbf16>
    %628 = arith.truncf %626 : vector<16x128xf32> to vector<16x128xbf16>
    %cst_246 = arith.constant dense<0.000000e+00> : vector<16x128xf32>
    %629 = tpu.matmul %627, %628, %cst_246 {dimension_numbers = #tpu.dot_dimension_numbers<[1], [0], [0], [1], [0, 0, 1, 1], [], []>} : vector<16x16xbf16>, vector<16x128xbf16>, vector<16x128xf32> -> vector<16x128xf32>
    %630 = arith.addf %622, %629 : vector<16x128xf32>
    %c121_i32_247 = arith.constant 121 : i32
    %631 = tpu.dynamic_rotate %455 by %c121_i32_247 dim 1 : vector<16x128xf32>, i32 -> vector<16x128xf32>
    %632 = vector.extract_strided_slice %7 {offsets = [22, 0], sizes = [1, 128], strides = [1, 1]} : vector<31x128xf32> to vector<1x128xf32>
    %633 = vector.broadcast %632 : vector<1x128xf32> to vector<16x128xf32>
    %634 = arith.mulf %631, %633 : vector<16x128xf32>
    %c352_248 = arith.constant 352 : index
    %c0_249 = arith.constant 0 : index
    %635 = vector.load %arg7[%c352_248, %c0_249] : memref<496x16xbf16, #tpu.memory_space<vmem>>, vector<16x16xbf16>
    %636 = arith.truncf %634 : vector<16x128xf32> to vector<16x128xbf16>
    %cst_250 = arith.constant dense<0.000000e+00> : vector<16x128xf32>
    %637 = tpu.matmul %635, %636, %cst_250 {dimension_numbers = #tpu.dot_dimension_numbers<[1], [0], [0], [1], [0, 0, 1, 1], [], []>} : vector<16x16xbf16>, vector<16x128xbf16>, vector<16x128xf32> -> vector<16x128xf32>
    %638 = arith.addf %630, %637 : vector<16x128xf32>
    %c120_i32_251 = arith.constant 120 : i32
    %639 = tpu.dynamic_rotate %455 by %c120_i32_251 dim 1 : vector<16x128xf32>, i32 -> vector<16x128xf32>
    %640 = vector.extract_strided_slice %7 {offsets = [23, 0], sizes = [1, 128], strides = [1, 1]} : vector<31x128xf32> to vector<1x128xf32>
    %641 = vector.broadcast %640 : vector<1x128xf32> to vector<16x128xf32>
    %642 = arith.mulf %639, %641 : vector<16x128xf32>
    %c368_252 = arith.constant 368 : index
    %c0_253 = arith.constant 0 : index
    %643 = vector.load %arg7[%c368_252, %c0_253] : memref<496x16xbf16, #tpu.memory_space<vmem>>, vector<16x16xbf16>
    %644 = arith.truncf %642 : vector<16x128xf32> to vector<16x128xbf16>
    %cst_254 = arith.constant dense<0.000000e+00> : vector<16x128xf32>
    %645 = tpu.matmul %643, %644, %cst_254 {dimension_numbers = #tpu.dot_dimension_numbers<[1], [0], [0], [1], [0, 0, 1, 1], [], []>} : vector<16x16xbf16>, vector<16x128xbf16>, vector<16x128xf32> -> vector<16x128xf32>
    %646 = arith.addf %638, %645 : vector<16x128xf32>
    %c119_i32_255 = arith.constant 119 : i32
    %647 = tpu.dynamic_rotate %455 by %c119_i32_255 dim 1 : vector<16x128xf32>, i32 -> vector<16x128xf32>
    %648 = vector.extract_strided_slice %7 {offsets = [24, 0], sizes = [1, 128], strides = [1, 1]} : vector<31x128xf32> to vector<1x128xf32>
    %649 = vector.broadcast %648 : vector<1x128xf32> to vector<16x128xf32>
    %650 = arith.mulf %647, %649 : vector<16x128xf32>
    %c384_256 = arith.constant 384 : index
    %c0_257 = arith.constant 0 : index
    %651 = vector.load %arg7[%c384_256, %c0_257] : memref<496x16xbf16, #tpu.memory_space<vmem>>, vector<16x16xbf16>
    %652 = arith.truncf %650 : vector<16x128xf32> to vector<16x128xbf16>
    %cst_258 = arith.constant dense<0.000000e+00> : vector<16x128xf32>
    %653 = tpu.matmul %651, %652, %cst_258 {dimension_numbers = #tpu.dot_dimension_numbers<[1], [0], [0], [1], [0, 0, 1, 1], [], []>} : vector<16x16xbf16>, vector<16x128xbf16>, vector<16x128xf32> -> vector<16x128xf32>
    %654 = arith.addf %646, %653 : vector<16x128xf32>
    %c118_i32_259 = arith.constant 118 : i32
    %655 = tpu.dynamic_rotate %455 by %c118_i32_259 dim 1 : vector<16x128xf32>, i32 -> vector<16x128xf32>
    %656 = vector.extract_strided_slice %7 {offsets = [25, 0], sizes = [1, 128], strides = [1, 1]} : vector<31x128xf32> to vector<1x128xf32>
    %657 = vector.broadcast %656 : vector<1x128xf32> to vector<16x128xf32>
    %658 = arith.mulf %655, %657 : vector<16x128xf32>
    %c400_260 = arith.constant 400 : index
    %c0_261 = arith.constant 0 : index
    %659 = vector.load %arg7[%c400_260, %c0_261] : memref<496x16xbf16, #tpu.memory_space<vmem>>, vector<16x16xbf16>
    %660 = arith.truncf %658 : vector<16x128xf32> to vector<16x128xbf16>
    %cst_262 = arith.constant dense<0.000000e+00> : vector<16x128xf32>
    %661 = tpu.matmul %659, %660, %cst_262 {dimension_numbers = #tpu.dot_dimension_numbers<[1], [0], [0], [1], [0, 0, 1, 1], [], []>} : vector<16x16xbf16>, vector<16x128xbf16>, vector<16x128xf32> -> vector<16x128xf32>
    %662 = arith.addf %654, %661 : vector<16x128xf32>
    %c117_i32_263 = arith.constant 117 : i32
    %663 = tpu.dynamic_rotate %455 by %c117_i32_263 dim 1 : vector<16x128xf32>, i32 -> vector<16x128xf32>
    %664 = vector.extract_strided_slice %7 {offsets = [26, 0], sizes = [1, 128], strides = [1, 1]} : vector<31x128xf32> to vector<1x128xf32>
    %665 = vector.broadcast %664 : vector<1x128xf32> to vector<16x128xf32>
    %666 = arith.mulf %663, %665 : vector<16x128xf32>
    %c416_264 = arith.constant 416 : index
    %c0_265 = arith.constant 0 : index
    %667 = vector.load %arg7[%c416_264, %c0_265] : memref<496x16xbf16, #tpu.memory_space<vmem>>, vector<16x16xbf16>
    %668 = arith.truncf %666 : vector<16x128xf32> to vector<16x128xbf16>
    %cst_266 = arith.constant dense<0.000000e+00> : vector<16x128xf32>
    %669 = tpu.matmul %667, %668, %cst_266 {dimension_numbers = #tpu.dot_dimension_numbers<[1], [0], [0], [1], [0, 0, 1, 1], [], []>} : vector<16x16xbf16>, vector<16x128xbf16>, vector<16x128xf32> -> vector<16x128xf32>
    %670 = arith.addf %662, %669 : vector<16x128xf32>
    %c116_i32_267 = arith.constant 116 : i32
    %671 = tpu.dynamic_rotate %455 by %c116_i32_267 dim 1 : vector<16x128xf32>, i32 -> vector<16x128xf32>
    %672 = vector.extract_strided_slice %7 {offsets = [27, 0], sizes = [1, 128], strides = [1, 1]} : vector<31x128xf32> to vector<1x128xf32>
    %673 = vector.broadcast %672 : vector<1x128xf32> to vector<16x128xf32>
    %674 = arith.mulf %671, %673 : vector<16x128xf32>
    %c432_268 = arith.constant 432 : index
    %c0_269 = arith.constant 0 : index
    %675 = vector.load %arg7[%c432_268, %c0_269] : memref<496x16xbf16, #tpu.memory_space<vmem>>, vector<16x16xbf16>
    %676 = arith.truncf %674 : vector<16x128xf32> to vector<16x128xbf16>
    %cst_270 = arith.constant dense<0.000000e+00> : vector<16x128xf32>
    %677 = tpu.matmul %675, %676, %cst_270 {dimension_numbers = #tpu.dot_dimension_numbers<[1], [0], [0], [1], [0, 0, 1, 1], [], []>} : vector<16x16xbf16>, vector<16x128xbf16>, vector<16x128xf32> -> vector<16x128xf32>
    %678 = arith.addf %670, %677 : vector<16x128xf32>
    %c115_i32_271 = arith.constant 115 : i32
    %679 = tpu.dynamic_rotate %455 by %c115_i32_271 dim 1 : vector<16x128xf32>, i32 -> vector<16x128xf32>
    %680 = vector.extract_strided_slice %7 {offsets = [28, 0], sizes = [1, 128], strides = [1, 1]} : vector<31x128xf32> to vector<1x128xf32>
    %681 = vector.broadcast %680 : vector<1x128xf32> to vector<16x128xf32>
    %682 = arith.mulf %679, %681 : vector<16x128xf32>
    %c448_272 = arith.constant 448 : index
    %c0_273 = arith.constant 0 : index
    %683 = vector.load %arg7[%c448_272, %c0_273] : memref<496x16xbf16, #tpu.memory_space<vmem>>, vector<16x16xbf16>
    %684 = arith.truncf %682 : vector<16x128xf32> to vector<16x128xbf16>
    %cst_274 = arith.constant dense<0.000000e+00> : vector<16x128xf32>
    %685 = tpu.matmul %683, %684, %cst_274 {dimension_numbers = #tpu.dot_dimension_numbers<[1], [0], [0], [1], [0, 0, 1, 1], [], []>} : vector<16x16xbf16>, vector<16x128xbf16>, vector<16x128xf32> -> vector<16x128xf32>
    %686 = arith.addf %678, %685 : vector<16x128xf32>
    %c114_i32_275 = arith.constant 114 : i32
    %687 = tpu.dynamic_rotate %455 by %c114_i32_275 dim 1 : vector<16x128xf32>, i32 -> vector<16x128xf32>
    %688 = vector.extract_strided_slice %7 {offsets = [29, 0], sizes = [1, 128], strides = [1, 1]} : vector<31x128xf32> to vector<1x128xf32>
    %689 = vector.broadcast %688 : vector<1x128xf32> to vector<16x128xf32>
    %690 = arith.mulf %687, %689 : vector<16x128xf32>
    %c464_276 = arith.constant 464 : index
    %c0_277 = arith.constant 0 : index
    %691 = vector.load %arg7[%c464_276, %c0_277] : memref<496x16xbf16, #tpu.memory_space<vmem>>, vector<16x16xbf16>
    %692 = arith.truncf %690 : vector<16x128xf32> to vector<16x128xbf16>
    %cst_278 = arith.constant dense<0.000000e+00> : vector<16x128xf32>
    %693 = tpu.matmul %691, %692, %cst_278 {dimension_numbers = #tpu.dot_dimension_numbers<[1], [0], [0], [1], [0, 0, 1, 1], [], []>} : vector<16x16xbf16>, vector<16x128xbf16>, vector<16x128xf32> -> vector<16x128xf32>
    %694 = arith.addf %686, %693 : vector<16x128xf32>
    %c113_i32_279 = arith.constant 113 : i32
    %695 = tpu.dynamic_rotate %455 by %c113_i32_279 dim 1 : vector<16x128xf32>, i32 -> vector<16x128xf32>
    %696 = vector.extract_strided_slice %7 {offsets = [30, 0], sizes = [1, 128], strides = [1, 1]} : vector<31x128xf32> to vector<1x128xf32>
    %697 = vector.broadcast %696 : vector<1x128xf32> to vector<16x128xf32>
    %698 = arith.mulf %695, %697 : vector<16x128xf32>
    %c480_280 = arith.constant 480 : index
    %c0_281 = arith.constant 0 : index
    %699 = vector.load %arg7[%c480_280, %c0_281] : memref<496x16xbf16, #tpu.memory_space<vmem>>, vector<16x16xbf16>
    %700 = arith.truncf %698 : vector<16x128xf32> to vector<16x128xbf16>
    %cst_282 = arith.constant dense<0.000000e+00> : vector<16x128xf32>
    %701 = tpu.matmul %699, %700, %cst_282 {dimension_numbers = #tpu.dot_dimension_numbers<[1], [0], [0], [1], [0, 0, 1, 1], [], []>} : vector<16x16xbf16>, vector<16x128xbf16>, vector<16x128xf32> -> vector<16x128xf32>
    %702 = arith.addf %694, %701 : vector<16x128xf32>
    %c0_283 = arith.constant 0 : index
    %c0_284 = arith.constant 0 : index
    %703 = vector.load %arg6[%c0_283, %c0_284] : memref<128x128xf32, #tpu.memory_space<vmem>>, vector<128x128xf32>
    %cst_285 = arith.constant dense<0.000000e+00> : vector<16x128xf32>
    %704 = tpu.matmul %702, %703, %cst_285 {dimension_numbers = #tpu.dot_dimension_numbers<[1], [0], [0], [1], [0, 0, 1, 1], [], []>} : vector<16x128xf32>, vector<128x128xf32>, vector<16x128xf32> -> vector<16x128xf32>
    %705 = arith.subf %702, %704 : vector<16x128xf32>
    %706 = arith.mulf %705, %705 : vector<16x128xf32>
    %cst_286 = arith.constant dense<0.000000e+00> : vector<16x128xf32>
    %707 = tpu.matmul %706, %703, %cst_286 {dimension_numbers = #tpu.dot_dimension_numbers<[1], [0], [0], [1], [0, 0, 1, 1], [], []>} : vector<16x128xf32>, vector<128x128xf32>, vector<16x128xf32> -> vector<16x128xf32>
    %cst_287 = arith.constant 9.99999974E-6 : f32
    %708 = vector.broadcast %cst_287 : f32 to vector<16x128xf32>
    %709 = arith.addf %707, %708 : vector<16x128xf32>
    %710 = math.rsqrt %709 : vector<16x128xf32>
    %711 = arith.mulf %705, %710 : vector<16x128xf32>
    %712 = vector.broadcast %2 : vector<1x128xf32> to vector<16x128xf32>
    %713 = arith.mulf %711, %712 : vector<16x128xf32>
    %714 = vector.broadcast %3 : vector<1x128xf32> to vector<16x128xf32>
    %715 = arith.addf %713, %714 : vector<16x128xf32>
    %cst_288 = arith.constant 5.000000e-01 : f32
    %716 = vector.broadcast %cst_288 : f32 to vector<16x128xf32>
    %717 = arith.mulf %716, %715 : vector<16x128xf32>
    %cst_289 = arith.constant 0.707106769 : f32
    %718 = vector.broadcast %cst_289 : f32 to vector<16x128xf32>
    %719 = arith.mulf %715, %718 : vector<16x128xf32>
    %cst_290 = arith.constant 0.000000e+00 : f32
    %720 = vector.broadcast %cst_290 : f32 to vector<16x128xf32>
    %721 = arith.cmpf oge, %719, %720 : vector<16x128xf32>
    %cst_291 = arith.constant 1.000000e+00 : f32
    %cst_292 = arith.constant -1.000000e+00 : f32
    %722 = vector.broadcast %cst_291 : f32 to vector<16x128xf32>
    %723 = vector.broadcast %cst_292 : f32 to vector<16x128xf32>
    %724 = arith.select %721, %722, %723 : vector<16x128xi1>, vector<16x128xf32>
    %725 = math.absf %719 : vector<16x128xf32>
    %cst_293 = arith.constant 0.327591091 : f32
    %726 = vector.broadcast %cst_293 : f32 to vector<16x128xf32>
    %727 = arith.mulf %726, %725 : vector<16x128xf32>
    %cst_294 = arith.constant 1.000000e+00 : f32
    %728 = vector.broadcast %cst_294 : f32 to vector<16x128xf32>
    %729 = arith.addf %728, %727 : vector<16x128xf32>
    %cst_295 = arith.constant 1.000000e+00 : f32
    %730 = vector.broadcast %cst_295 : f32 to vector<16x128xf32>
    %731 = arith.divf %730, %729 : vector<16x128xf32>
    %cst_296 = arith.constant 1.06140542 : f32
    %732 = vector.broadcast %cst_296 : f32 to vector<16x128xf32>
    %733 = arith.mulf %732, %731 : vector<16x128xf32>
    %cst_297 = arith.constant -1.45315206 : f32
    %734 = vector.broadcast %cst_297 : f32 to vector<16x128xf32>
    %735 = arith.addf %733, %734 : vector<16x128xf32>
    %736 = arith.mulf %735, %731 : vector<16x128xf32>
    %cst_298 = arith.constant 1.42141378 : f32
    %737 = vector.broadcast %cst_298 : f32 to vector<16x128xf32>
    %738 = arith.addf %736, %737 : vector<16x128xf32>
    %739 = arith.mulf %738, %731 : vector<16x128xf32>
    %cst_299 = arith.constant -0.284496725 : f32
    %740 = vector.broadcast %cst_299 : f32 to vector<16x128xf32>
    %741 = arith.addf %739, %740 : vector<16x128xf32>
    %742 = arith.mulf %741, %731 : vector<16x128xf32>
    %cst_300 = arith.constant 0.254829586 : f32
    %743 = vector.broadcast %cst_300 : f32 to vector<16x128xf32>
    %744 = arith.addf %742, %743 : vector<16x128xf32>
    %745 = arith.mulf %744, %731 : vector<16x128xf32>
    %cst_301 = arith.constant 0.000000e+00 : f32
    %746 = vector.broadcast %cst_301 : f32 to vector<16x128xf32>
    %747 = arith.subf %746, %725 : vector<16x128xf32>
    %748 = arith.mulf %747, %725 : vector<16x128xf32>
    %749 = math.exp %748 : vector<16x128xf32>
    %750 = arith.mulf %745, %749 : vector<16x128xf32>
    %cst_302 = arith.constant 1.000000e+00 : f32
    %751 = vector.broadcast %cst_302 : f32 to vector<16x128xf32>
    %752 = arith.subf %751, %750 : vector<16x128xf32>
    %753 = arith.mulf %724, %752 : vector<16x128xf32>
    %cst_303 = arith.constant 1.000000e+00 : f32
    %754 = vector.broadcast %cst_303 : f32 to vector<16x128xf32>
    %755 = arith.addf %754, %753 : vector<16x128xf32>
    %756 = arith.mulf %717, %755 : vector<16x128xf32>
    %757 = arith.addf %442, %756 : vector<16x128xf32>
    %c0_304 = arith.constant 0 : index
    %c0_305 = arith.constant 0 : index
    %758 = vector.load %arg6[%c0_304, %c0_305] : memref<128x128xf32, #tpu.memory_space<vmem>>, vector<128x128xf32>
    %cst_306 = arith.constant dense<0.000000e+00> : vector<16x128xf32>
    %759 = tpu.matmul %757, %758, %cst_306 {dimension_numbers = #tpu.dot_dimension_numbers<[1], [0], [0], [1], [0, 0, 1, 1], [], []>} : vector<16x128xf32>, vector<128x128xf32>, vector<16x128xf32> -> vector<16x128xf32>
    %760 = arith.subf %757, %759 : vector<16x128xf32>
    %761 = arith.mulf %760, %760 : vector<16x128xf32>
    %cst_307 = arith.constant dense<0.000000e+00> : vector<16x128xf32>
    %762 = tpu.matmul %761, %758, %cst_307 {dimension_numbers = #tpu.dot_dimension_numbers<[1], [0], [0], [1], [0, 0, 1, 1], [], []>} : vector<16x128xf32>, vector<128x128xf32>, vector<16x128xf32> -> vector<16x128xf32>
    %cst_308 = arith.constant 9.99999974E-6 : f32
    %763 = vector.broadcast %cst_308 : f32 to vector<16x128xf32>
    %764 = arith.addf %762, %763 : vector<16x128xf32>
    %765 = math.rsqrt %764 : vector<16x128xf32>
    %766 = arith.mulf %760, %765 : vector<16x128xf32>
    %767 = vector.broadcast %2 : vector<1x128xf32> to vector<16x128xf32>
    %768 = arith.mulf %766, %767 : vector<16x128xf32>
    %769 = vector.broadcast %3 : vector<1x128xf32> to vector<16x128xf32>
    %770 = arith.addf %768, %769 : vector<16x128xf32>
    %771 = arith.truncf %770 : vector<16x128xf32> to vector<16x128xbf16>
    %cst_309 = arith.constant dense<0.000000e+00> : vector<16x128xf32>
    %772 = tpu.matmul %771, %6, %cst_309 {dimension_numbers = #tpu.dot_dimension_numbers<[1], [0], [0], [1], [0, 0, 1, 1], [], []>} : vector<16x128xbf16>, vector<128x128xbf16>, vector<16x128xf32> -> vector<16x128xf32>
    %773 = vector.broadcast %5 : vector<1x128xf32> to vector<16x128xf32>
    %774 = arith.addf %772, %773 : vector<16x128xf32>
    %cst_310 = arith.constant 5.000000e-01 : f32
    %775 = vector.broadcast %cst_310 : f32 to vector<16x128xf32>
    %776 = arith.mulf %775, %774 : vector<16x128xf32>
    %cst_311 = arith.constant 0.707106769 : f32
    %777 = vector.broadcast %cst_311 : f32 to vector<16x128xf32>
    %778 = arith.mulf %774, %777 : vector<16x128xf32>
    %cst_312 = arith.constant 0.000000e+00 : f32
    %779 = vector.broadcast %cst_312 : f32 to vector<16x128xf32>
    %780 = arith.cmpf oge, %778, %779 : vector<16x128xf32>
    %cst_313 = arith.constant 1.000000e+00 : f32
    %cst_314 = arith.constant -1.000000e+00 : f32
    %781 = vector.broadcast %cst_313 : f32 to vector<16x128xf32>
    %782 = vector.broadcast %cst_314 : f32 to vector<16x128xf32>
    %783 = arith.select %780, %781, %782 : vector<16x128xi1>, vector<16x128xf32>
    %784 = math.absf %778 : vector<16x128xf32>
    %cst_315 = arith.constant 0.327591091 : f32
    %785 = vector.broadcast %cst_315 : f32 to vector<16x128xf32>
    %786 = arith.mulf %785, %784 : vector<16x128xf32>
    %cst_316 = arith.constant 1.000000e+00 : f32
    %787 = vector.broadcast %cst_316 : f32 to vector<16x128xf32>
    %788 = arith.addf %787, %786 : vector<16x128xf32>
    %cst_317 = arith.constant 1.000000e+00 : f32
    %789 = vector.broadcast %cst_317 : f32 to vector<16x128xf32>
    %790 = arith.divf %789, %788 : vector<16x128xf32>
    %cst_318 = arith.constant 1.06140542 : f32
    %791 = vector.broadcast %cst_318 : f32 to vector<16x128xf32>
    %792 = arith.mulf %791, %790 : vector<16x128xf32>
    %cst_319 = arith.constant -1.45315206 : f32
    %793 = vector.broadcast %cst_319 : f32 to vector<16x128xf32>
    %794 = arith.addf %792, %793 : vector<16x128xf32>
    %795 = arith.mulf %794, %790 : vector<16x128xf32>
    %cst_320 = arith.constant 1.42141378 : f32
    %796 = vector.broadcast %cst_320 : f32 to vector<16x128xf32>
    %797 = arith.addf %795, %796 : vector<16x128xf32>
    %798 = arith.mulf %797, %790 : vector<16x128xf32>
    %cst_321 = arith.constant -0.284496725 : f32
    %799 = vector.broadcast %cst_321 : f32 to vector<16x128xf32>
    %800 = arith.addf %798, %799 : vector<16x128xf32>
    %801 = arith.mulf %800, %790 : vector<16x128xf32>
    %cst_322 = arith.constant 0.254829586 : f32
    %802 = vector.broadcast %cst_322 : f32 to vector<16x128xf32>
    %803 = arith.addf %801, %802 : vector<16x128xf32>
    %804 = arith.mulf %803, %790 : vector<16x128xf32>
    %cst_323 = arith.constant 0.000000e+00 : f32
    %805 = vector.broadcast %cst_323 : f32 to vector<16x128xf32>
    %806 = arith.subf %805, %784 : vector<16x128xf32>
    %807 = arith.mulf %806, %784 : vector<16x128xf32>
    %808 = math.exp %807 : vector<16x128xf32>
    %809 = arith.mulf %804, %808 : vector<16x128xf32>
    %cst_324 = arith.constant 1.000000e+00 : f32
    %810 = vector.broadcast %cst_324 : f32 to vector<16x128xf32>
    %811 = arith.subf %810, %809 : vector<16x128xf32>
    %812 = arith.mulf %783, %811 : vector<16x128xf32>
    %cst_325 = arith.constant 1.000000e+00 : f32
    %813 = vector.broadcast %cst_325 : f32 to vector<16x128xf32>
    %814 = arith.addf %813, %812 : vector<16x128xf32>
    %815 = arith.mulf %776, %814 : vector<16x128xf32>
    %816 = arith.addf %757, %815 : vector<16x128xf32>
    %c0_326 = arith.constant 0 : index
    %c0_327 = arith.constant 0 : index
    %817 = vector.load %arg15[%c0_326, %c0_327] : memref<1x96xf32, #tpu.memory_space<vmem>>, vector<1x96xf32>
    %818 = vector.extract_strided_slice %816 {offsets = [0, 0], sizes = [1, 128], strides = [1, 1]} : vector<16x128xf32> to vector<1x128xf32>
    %819 = arith.truncf %818 : vector<1x128xf32> to vector<1x128xbf16>
    %c0_328 = arith.constant 0 : index
    %c0_329 = arith.constant 0 : index
    %c0_330 = arith.constant 0 : index
    %820 = vector.load %arg14[%c0_328, %c0_329, %c0_330] : memref<16x128x96xbf16, #tpu.memory_space<vmem>>, vector<1x128x96xbf16>
    %821 = vector.shape_cast %820 : vector<1x128x96xbf16> to vector<128x96xbf16>
    %cst_331 = arith.constant dense<0.000000e+00> : vector<1x96xf32>
    %822 = tpu.matmul %819, %821, %cst_331 {dimension_numbers = #tpu.dot_dimension_numbers<[1], [0], [0], [1], [0, 0, 1, 1], [], []>} : vector<1x128xbf16>, vector<128x96xbf16>, vector<1x96xf32> -> vector<1x96xf32>
    %823 = arith.addf %817, %822 : vector<1x96xf32>
    %824 = vector.extract_strided_slice %816 {offsets = [1, 0], sizes = [1, 128], strides = [1, 1]} : vector<16x128xf32> to vector<1x128xf32>
    %825 = arith.truncf %824 : vector<1x128xf32> to vector<1x128xbf16>
    %c1 = arith.constant 1 : index
    %c0_332 = arith.constant 0 : index
    %c0_333 = arith.constant 0 : index
    %826 = vector.load %arg14[%c1, %c0_332, %c0_333] : memref<16x128x96xbf16, #tpu.memory_space<vmem>>, vector<1x128x96xbf16>
    %827 = vector.shape_cast %826 : vector<1x128x96xbf16> to vector<128x96xbf16>
    %cst_334 = arith.constant dense<0.000000e+00> : vector<1x96xf32>
    %828 = tpu.matmul %825, %827, %cst_334 {dimension_numbers = #tpu.dot_dimension_numbers<[1], [0], [0], [1], [0, 0, 1, 1], [], []>} : vector<1x128xbf16>, vector<128x96xbf16>, vector<1x96xf32> -> vector<1x96xf32>
    %829 = arith.addf %823, %828 : vector<1x96xf32>
    %830 = vector.extract_strided_slice %816 {offsets = [2, 0], sizes = [1, 128], strides = [1, 1]} : vector<16x128xf32> to vector<1x128xf32>
    %831 = arith.truncf %830 : vector<1x128xf32> to vector<1x128xbf16>
    %c2 = arith.constant 2 : index
    %c0_335 = arith.constant 0 : index
    %c0_336 = arith.constant 0 : index
    %832 = vector.load %arg14[%c2, %c0_335, %c0_336] : memref<16x128x96xbf16, #tpu.memory_space<vmem>>, vector<1x128x96xbf16>
    %833 = vector.shape_cast %832 : vector<1x128x96xbf16> to vector<128x96xbf16>
    %cst_337 = arith.constant dense<0.000000e+00> : vector<1x96xf32>
    %834 = tpu.matmul %831, %833, %cst_337 {dimension_numbers = #tpu.dot_dimension_numbers<[1], [0], [0], [1], [0, 0, 1, 1], [], []>} : vector<1x128xbf16>, vector<128x96xbf16>, vector<1x96xf32> -> vector<1x96xf32>
    %835 = arith.addf %829, %834 : vector<1x96xf32>
    %836 = vector.extract_strided_slice %816 {offsets = [3, 0], sizes = [1, 128], strides = [1, 1]} : vector<16x128xf32> to vector<1x128xf32>
    %837 = arith.truncf %836 : vector<1x128xf32> to vector<1x128xbf16>
    %c3 = arith.constant 3 : index
    %c0_338 = arith.constant 0 : index
    %c0_339 = arith.constant 0 : index
    %838 = vector.load %arg14[%c3, %c0_338, %c0_339] : memref<16x128x96xbf16, #tpu.memory_space<vmem>>, vector<1x128x96xbf16>
    %839 = vector.shape_cast %838 : vector<1x128x96xbf16> to vector<128x96xbf16>
    %cst_340 = arith.constant dense<0.000000e+00> : vector<1x96xf32>
    %840 = tpu.matmul %837, %839, %cst_340 {dimension_numbers = #tpu.dot_dimension_numbers<[1], [0], [0], [1], [0, 0, 1, 1], [], []>} : vector<1x128xbf16>, vector<128x96xbf16>, vector<1x96xf32> -> vector<1x96xf32>
    %841 = arith.addf %835, %840 : vector<1x96xf32>
    %842 = vector.extract_strided_slice %816 {offsets = [4, 0], sizes = [1, 128], strides = [1, 1]} : vector<16x128xf32> to vector<1x128xf32>
    %843 = arith.truncf %842 : vector<1x128xf32> to vector<1x128xbf16>
    %c4 = arith.constant 4 : index
    %c0_341 = arith.constant 0 : index
    %c0_342 = arith.constant 0 : index
    %844 = vector.load %arg14[%c4, %c0_341, %c0_342] : memref<16x128x96xbf16, #tpu.memory_space<vmem>>, vector<1x128x96xbf16>
    %845 = vector.shape_cast %844 : vector<1x128x96xbf16> to vector<128x96xbf16>
    %cst_343 = arith.constant dense<0.000000e+00> : vector<1x96xf32>
    %846 = tpu.matmul %843, %845, %cst_343 {dimension_numbers = #tpu.dot_dimension_numbers<[1], [0], [0], [1], [0, 0, 1, 1], [], []>} : vector<1x128xbf16>, vector<128x96xbf16>, vector<1x96xf32> -> vector<1x96xf32>
    %847 = arith.addf %841, %846 : vector<1x96xf32>
    %848 = vector.extract_strided_slice %816 {offsets = [5, 0], sizes = [1, 128], strides = [1, 1]} : vector<16x128xf32> to vector<1x128xf32>
    %849 = arith.truncf %848 : vector<1x128xf32> to vector<1x128xbf16>
    %c5 = arith.constant 5 : index
    %c0_344 = arith.constant 0 : index
    %c0_345 = arith.constant 0 : index
    %850 = vector.load %arg14[%c5, %c0_344, %c0_345] : memref<16x128x96xbf16, #tpu.memory_space<vmem>>, vector<1x128x96xbf16>
    %851 = vector.shape_cast %850 : vector<1x128x96xbf16> to vector<128x96xbf16>
    %cst_346 = arith.constant dense<0.000000e+00> : vector<1x96xf32>
    %852 = tpu.matmul %849, %851, %cst_346 {dimension_numbers = #tpu.dot_dimension_numbers<[1], [0], [0], [1], [0, 0, 1, 1], [], []>} : vector<1x128xbf16>, vector<128x96xbf16>, vector<1x96xf32> -> vector<1x96xf32>
    %853 = arith.addf %847, %852 : vector<1x96xf32>
    %854 = vector.extract_strided_slice %816 {offsets = [6, 0], sizes = [1, 128], strides = [1, 1]} : vector<16x128xf32> to vector<1x128xf32>
    %855 = arith.truncf %854 : vector<1x128xf32> to vector<1x128xbf16>
    %c6 = arith.constant 6 : index
    %c0_347 = arith.constant 0 : index
    %c0_348 = arith.constant 0 : index
    %856 = vector.load %arg14[%c6, %c0_347, %c0_348] : memref<16x128x96xbf16, #tpu.memory_space<vmem>>, vector<1x128x96xbf16>
    %857 = vector.shape_cast %856 : vector<1x128x96xbf16> to vector<128x96xbf16>
    %cst_349 = arith.constant dense<0.000000e+00> : vector<1x96xf32>
    %858 = tpu.matmul %855, %857, %cst_349 {dimension_numbers = #tpu.dot_dimension_numbers<[1], [0], [0], [1], [0, 0, 1, 1], [], []>} : vector<1x128xbf16>, vector<128x96xbf16>, vector<1x96xf32> -> vector<1x96xf32>
    %859 = arith.addf %853, %858 : vector<1x96xf32>
    %860 = vector.extract_strided_slice %816 {offsets = [7, 0], sizes = [1, 128], strides = [1, 1]} : vector<16x128xf32> to vector<1x128xf32>
    %861 = arith.truncf %860 : vector<1x128xf32> to vector<1x128xbf16>
    %c7 = arith.constant 7 : index
    %c0_350 = arith.constant 0 : index
    %c0_351 = arith.constant 0 : index
    %862 = vector.load %arg14[%c7, %c0_350, %c0_351] : memref<16x128x96xbf16, #tpu.memory_space<vmem>>, vector<1x128x96xbf16>
    %863 = vector.shape_cast %862 : vector<1x128x96xbf16> to vector<128x96xbf16>
    %cst_352 = arith.constant dense<0.000000e+00> : vector<1x96xf32>
    %864 = tpu.matmul %861, %863, %cst_352 {dimension_numbers = #tpu.dot_dimension_numbers<[1], [0], [0], [1], [0, 0, 1, 1], [], []>} : vector<1x128xbf16>, vector<128x96xbf16>, vector<1x96xf32> -> vector<1x96xf32>
    %865 = arith.addf %859, %864 : vector<1x96xf32>
    %866 = vector.extract_strided_slice %816 {offsets = [8, 0], sizes = [1, 128], strides = [1, 1]} : vector<16x128xf32> to vector<1x128xf32>
    %867 = arith.truncf %866 : vector<1x128xf32> to vector<1x128xbf16>
    %c8 = arith.constant 8 : index
    %c0_353 = arith.constant 0 : index
    %c0_354 = arith.constant 0 : index
    %868 = vector.load %arg14[%c8, %c0_353, %c0_354] : memref<16x128x96xbf16, #tpu.memory_space<vmem>>, vector<1x128x96xbf16>
    %869 = vector.shape_cast %868 : vector<1x128x96xbf16> to vector<128x96xbf16>
    %cst_355 = arith.constant dense<0.000000e+00> : vector<1x96xf32>
    %870 = tpu.matmul %867, %869, %cst_355 {dimension_numbers = #tpu.dot_dimension_numbers<[1], [0], [0], [1], [0, 0, 1, 1], [], []>} : vector<1x128xbf16>, vector<128x96xbf16>, vector<1x96xf32> -> vector<1x96xf32>
    %871 = arith.addf %865, %870 : vector<1x96xf32>
    %872 = vector.extract_strided_slice %816 {offsets = [9, 0], sizes = [1, 128], strides = [1, 1]} : vector<16x128xf32> to vector<1x128xf32>
    %873 = arith.truncf %872 : vector<1x128xf32> to vector<1x128xbf16>
    %c9 = arith.constant 9 : index
    %c0_356 = arith.constant 0 : index
    %c0_357 = arith.constant 0 : index
    %874 = vector.load %arg14[%c9, %c0_356, %c0_357] : memref<16x128x96xbf16, #tpu.memory_space<vmem>>, vector<1x128x96xbf16>
    %875 = vector.shape_cast %874 : vector<1x128x96xbf16> to vector<128x96xbf16>
    %cst_358 = arith.constant dense<0.000000e+00> : vector<1x96xf32>
    %876 = tpu.matmul %873, %875, %cst_358 {dimension_numbers = #tpu.dot_dimension_numbers<[1], [0], [0], [1], [0, 0, 1, 1], [], []>} : vector<1x128xbf16>, vector<128x96xbf16>, vector<1x96xf32> -> vector<1x96xf32>
    %877 = arith.addf %871, %876 : vector<1x96xf32>
    %878 = vector.extract_strided_slice %816 {offsets = [10, 0], sizes = [1, 128], strides = [1, 1]} : vector<16x128xf32> to vector<1x128xf32>
    %879 = arith.truncf %878 : vector<1x128xf32> to vector<1x128xbf16>
    %c10 = arith.constant 10 : index
    %c0_359 = arith.constant 0 : index
    %c0_360 = arith.constant 0 : index
    %880 = vector.load %arg14[%c10, %c0_359, %c0_360] : memref<16x128x96xbf16, #tpu.memory_space<vmem>>, vector<1x128x96xbf16>
    %881 = vector.shape_cast %880 : vector<1x128x96xbf16> to vector<128x96xbf16>
    %cst_361 = arith.constant dense<0.000000e+00> : vector<1x96xf32>
    %882 = tpu.matmul %879, %881, %cst_361 {dimension_numbers = #tpu.dot_dimension_numbers<[1], [0], [0], [1], [0, 0, 1, 1], [], []>} : vector<1x128xbf16>, vector<128x96xbf16>, vector<1x96xf32> -> vector<1x96xf32>
    %883 = arith.addf %877, %882 : vector<1x96xf32>
    %884 = vector.extract_strided_slice %816 {offsets = [11, 0], sizes = [1, 128], strides = [1, 1]} : vector<16x128xf32> to vector<1x128xf32>
    %885 = arith.truncf %884 : vector<1x128xf32> to vector<1x128xbf16>
    %c11 = arith.constant 11 : index
    %c0_362 = arith.constant 0 : index
    %c0_363 = arith.constant 0 : index
    %886 = vector.load %arg14[%c11, %c0_362, %c0_363] : memref<16x128x96xbf16, #tpu.memory_space<vmem>>, vector<1x128x96xbf16>
    %887 = vector.shape_cast %886 : vector<1x128x96xbf16> to vector<128x96xbf16>
    %cst_364 = arith.constant dense<0.000000e+00> : vector<1x96xf32>
    %888 = tpu.matmul %885, %887, %cst_364 {dimension_numbers = #tpu.dot_dimension_numbers<[1], [0], [0], [1], [0, 0, 1, 1], [], []>} : vector<1x128xbf16>, vector<128x96xbf16>, vector<1x96xf32> -> vector<1x96xf32>
    %889 = arith.addf %883, %888 : vector<1x96xf32>
    %890 = vector.extract_strided_slice %816 {offsets = [12, 0], sizes = [1, 128], strides = [1, 1]} : vector<16x128xf32> to vector<1x128xf32>
    %891 = arith.truncf %890 : vector<1x128xf32> to vector<1x128xbf16>
    %c12 = arith.constant 12 : index
    %c0_365 = arith.constant 0 : index
    %c0_366 = arith.constant 0 : index
    %892 = vector.load %arg14[%c12, %c0_365, %c0_366] : memref<16x128x96xbf16, #tpu.memory_space<vmem>>, vector<1x128x96xbf16>
    %893 = vector.shape_cast %892 : vector<1x128x96xbf16> to vector<128x96xbf16>
    %cst_367 = arith.constant dense<0.000000e+00> : vector<1x96xf32>
    %894 = tpu.matmul %891, %893, %cst_367 {dimension_numbers = #tpu.dot_dimension_numbers<[1], [0], [0], [1], [0, 0, 1, 1], [], []>} : vector<1x128xbf16>, vector<128x96xbf16>, vector<1x96xf32> -> vector<1x96xf32>
    %895 = arith.addf %889, %894 : vector<1x96xf32>
    %896 = vector.extract_strided_slice %816 {offsets = [13, 0], sizes = [1, 128], strides = [1, 1]} : vector<16x128xf32> to vector<1x128xf32>
    %897 = arith.truncf %896 : vector<1x128xf32> to vector<1x128xbf16>
    %c13 = arith.constant 13 : index
    %c0_368 = arith.constant 0 : index
    %c0_369 = arith.constant 0 : index
    %898 = vector.load %arg14[%c13, %c0_368, %c0_369] : memref<16x128x96xbf16, #tpu.memory_space<vmem>>, vector<1x128x96xbf16>
    %899 = vector.shape_cast %898 : vector<1x128x96xbf16> to vector<128x96xbf16>
    %cst_370 = arith.constant dense<0.000000e+00> : vector<1x96xf32>
    %900 = tpu.matmul %897, %899, %cst_370 {dimension_numbers = #tpu.dot_dimension_numbers<[1], [0], [0], [1], [0, 0, 1, 1], [], []>} : vector<1x128xbf16>, vector<128x96xbf16>, vector<1x96xf32> -> vector<1x96xf32>
    %901 = arith.addf %895, %900 : vector<1x96xf32>
    %902 = vector.extract_strided_slice %816 {offsets = [14, 0], sizes = [1, 128], strides = [1, 1]} : vector<16x128xf32> to vector<1x128xf32>
    %903 = arith.truncf %902 : vector<1x128xf32> to vector<1x128xbf16>
    %c14 = arith.constant 14 : index
    %c0_371 = arith.constant 0 : index
    %c0_372 = arith.constant 0 : index
    %904 = vector.load %arg14[%c14, %c0_371, %c0_372] : memref<16x128x96xbf16, #tpu.memory_space<vmem>>, vector<1x128x96xbf16>
    %905 = vector.shape_cast %904 : vector<1x128x96xbf16> to vector<128x96xbf16>
    %cst_373 = arith.constant dense<0.000000e+00> : vector<1x96xf32>
    %906 = tpu.matmul %903, %905, %cst_373 {dimension_numbers = #tpu.dot_dimension_numbers<[1], [0], [0], [1], [0, 0, 1, 1], [], []>} : vector<1x128xbf16>, vector<128x96xbf16>, vector<1x96xf32> -> vector<1x96xf32>
    %907 = arith.addf %901, %906 : vector<1x96xf32>
    %908 = vector.extract_strided_slice %816 {offsets = [15, 0], sizes = [1, 128], strides = [1, 1]} : vector<16x128xf32> to vector<1x128xf32>
    %909 = arith.truncf %908 : vector<1x128xf32> to vector<1x128xbf16>
    %c15 = arith.constant 15 : index
    %c0_374 = arith.constant 0 : index
    %c0_375 = arith.constant 0 : index
    %910 = vector.load %arg14[%c15, %c0_374, %c0_375] : memref<16x128x96xbf16, #tpu.memory_space<vmem>>, vector<1x128x96xbf16>
    %911 = vector.shape_cast %910 : vector<1x128x96xbf16> to vector<128x96xbf16>
    %cst_376 = arith.constant dense<0.000000e+00> : vector<1x96xf32>
    %912 = tpu.matmul %909, %911, %cst_376 {dimension_numbers = #tpu.dot_dimension_numbers<[1], [0], [0], [1], [0, 0, 1, 1], [], []>} : vector<1x128xbf16>, vector<128x96xbf16>, vector<1x96xf32> -> vector<1x96xf32>
    %913 = arith.addf %907, %912 : vector<1x96xf32>
    %c0_377 = arith.constant 0 : index
    %c0_378 = arith.constant 0 : index
    %914 = vector.load %arg17[%c0_377, %c0_378] : memref<1x96xf32, #tpu.memory_space<vmem>>, vector<1x96xf32>
    %c0_379 = arith.constant 0 : index
    %c0_380 = arith.constant 0 : index
    %915 = vector.load %arg18[%c0_379, %c0_380] : memref<1x96xf32, #tpu.memory_space<vmem>>, vector<1x96xf32>
    %c0_381 = arith.constant 0 : index
    %c0_382 = arith.constant 0 : index
    %916 = vector.load %arg16[%c0_381, %c0_382] : memref<96x96xf32, #tpu.memory_space<vmem>>, vector<96x96xf32>
    %cst_383 = arith.constant dense<0.000000e+00> : vector<1x96xf32>
    %917 = tpu.matmul %913, %916, %cst_383 {dimension_numbers = #tpu.dot_dimension_numbers<[1], [0], [0], [1], [0, 0, 1, 1], [], []>} : vector<1x96xf32>, vector<96x96xf32>, vector<1x96xf32> -> vector<1x96xf32>
    %918 = arith.subf %913, %917 : vector<1x96xf32>
    %919 = arith.mulf %918, %918 : vector<1x96xf32>
    %cst_384 = arith.constant dense<0.000000e+00> : vector<1x96xf32>
    %920 = tpu.matmul %919, %916, %cst_384 {dimension_numbers = #tpu.dot_dimension_numbers<[1], [0], [0], [1], [0, 0, 1, 1], [], []>} : vector<1x96xf32>, vector<96x96xf32>, vector<1x96xf32> -> vector<1x96xf32>
    %cst_385 = arith.constant 9.99999974E-6 : f32
    %921 = vector.broadcast %cst_385 : f32 to vector<1x96xf32>
    %922 = arith.addf %920, %921 : vector<1x96xf32>
    %923 = math.rsqrt %922 : vector<1x96xf32>
    %924 = arith.mulf %918, %923 : vector<1x96xf32>
    %925 = arith.mulf %924, %914 : vector<1x96xf32>
    %926 = arith.addf %925, %915 : vector<1x96xf32>
    %cst_386 = arith.constant 5.000000e-01 : f32
    %927 = vector.broadcast %cst_386 : f32 to vector<1x96xf32>
    %928 = arith.mulf %927, %926 : vector<1x96xf32>
    %cst_387 = arith.constant 0.707106769 : f32
    %929 = vector.broadcast %cst_387 : f32 to vector<1x96xf32>
    %930 = arith.mulf %926, %929 : vector<1x96xf32>
    %cst_388 = arith.constant 0.000000e+00 : f32
    %931 = vector.broadcast %cst_388 : f32 to vector<1x96xf32>
    %932 = arith.cmpf oge, %930, %931 : vector<1x96xf32>
    %cst_389 = arith.constant 1.000000e+00 : f32
    %cst_390 = arith.constant -1.000000e+00 : f32
    %933 = vector.broadcast %cst_389 : f32 to vector<1x96xf32>
    %934 = vector.broadcast %cst_390 : f32 to vector<1x96xf32>
    %935 = arith.select %932, %933, %934 : vector<1x96xi1>, vector<1x96xf32>
    %936 = math.absf %930 : vector<1x96xf32>
    %cst_391 = arith.constant 0.327591091 : f32
    %937 = vector.broadcast %cst_391 : f32 to vector<1x96xf32>
    %938 = arith.mulf %937, %936 : vector<1x96xf32>
    %cst_392 = arith.constant 1.000000e+00 : f32
    %939 = vector.broadcast %cst_392 : f32 to vector<1x96xf32>
    %940 = arith.addf %939, %938 : vector<1x96xf32>
    %cst_393 = arith.constant 1.000000e+00 : f32
    %941 = vector.broadcast %cst_393 : f32 to vector<1x96xf32>
    %942 = arith.divf %941, %940 : vector<1x96xf32>
    %cst_394 = arith.constant 1.06140542 : f32
    %943 = vector.broadcast %cst_394 : f32 to vector<1x96xf32>
    %944 = arith.mulf %943, %942 : vector<1x96xf32>
    %cst_395 = arith.constant -1.45315206 : f32
    %945 = vector.broadcast %cst_395 : f32 to vector<1x96xf32>
    %946 = arith.addf %944, %945 : vector<1x96xf32>
    %947 = arith.mulf %946, %942 : vector<1x96xf32>
    %cst_396 = arith.constant 1.42141378 : f32
    %948 = vector.broadcast %cst_396 : f32 to vector<1x96xf32>
    %949 = arith.addf %947, %948 : vector<1x96xf32>
    %950 = arith.mulf %949, %942 : vector<1x96xf32>
    %cst_397 = arith.constant -0.284496725 : f32
    %951 = vector.broadcast %cst_397 : f32 to vector<1x96xf32>
    %952 = arith.addf %950, %951 : vector<1x96xf32>
    %953 = arith.mulf %952, %942 : vector<1x96xf32>
    %cst_398 = arith.constant 0.254829586 : f32
    %954 = vector.broadcast %cst_398 : f32 to vector<1x96xf32>
    %955 = arith.addf %953, %954 : vector<1x96xf32>
    %956 = arith.mulf %955, %942 : vector<1x96xf32>
    %cst_399 = arith.constant 0.000000e+00 : f32
    %957 = vector.broadcast %cst_399 : f32 to vector<1x96xf32>
    %958 = arith.subf %957, %936 : vector<1x96xf32>
    %959 = arith.mulf %958, %936 : vector<1x96xf32>
    %960 = math.exp %959 : vector<1x96xf32>
    %961 = arith.mulf %956, %960 : vector<1x96xf32>
    %cst_400 = arith.constant 1.000000e+00 : f32
    %962 = vector.broadcast %cst_400 : f32 to vector<1x96xf32>
    %963 = arith.subf %962, %961 : vector<1x96xf32>
    %964 = arith.mulf %935, %963 : vector<1x96xf32>
    %cst_401 = arith.constant 1.000000e+00 : f32
    %965 = vector.broadcast %cst_401 : f32 to vector<1x96xf32>
    %966 = arith.addf %965, %964 : vector<1x96xf32>
    %967 = arith.mulf %928, %966 : vector<1x96xf32>
    %968 = arith.truncf %967 : vector<1x96xf32> to vector<1x96xbf16>
    %c0_402 = arith.constant 0 : index
    %c0_403 = arith.constant 0 : index
    %969 = vector.load %arg19[%c0_402, %c0_403] : memref<96x128xbf16, #tpu.memory_space<vmem>>, vector<96x128xbf16>
    %cst_404 = arith.constant dense<0.000000e+00> : vector<1x128xf32>
    %970 = tpu.matmul %968, %969, %cst_404 {dimension_numbers = #tpu.dot_dimension_numbers<[1], [0], [0], [1], [0, 0, 1, 1], [], []>} : vector<1x96xbf16>, vector<96x128xbf16>, vector<1x128xf32> -> vector<1x128xf32>
    %c0_405 = arith.constant 0 : index
    %c0_406 = arith.constant 0 : index
    %971 = vector.load %arg20[%c0_405, %c0_406] : memref<1x128xf32, #tpu.memory_space<vmem>>, vector<1x128xf32>
    %972 = arith.addf %970, %971 : vector<1x128xf32>
    %973 = vector.shape_cast %972 : vector<1x128xf32> to vector<1x128xf32>
    %974 = vector.broadcast %973 : vector<1x128xf32> to vector<8x128xf32>
    %c0_407 = arith.constant 0 : index
    %c0_408 = arith.constant 0 : index
    %975 = vector.load %arg21[%c0_407, %c0_408] : memref<8x128xf32, #tpu.memory_space<vmem>>, vector<8x128xf32>
    tpu.vector_store %arg21[%c0_407, %c0_408], %974 {strides = array<i32>} : memref<8x128xf32, #tpu.memory_space<vmem>>, vector<8x128xf32>,
    return
  }
  func.func @transform_0(%arg0: i32) -> (i32, i32) {
    %c0_i32 = arith.constant 0 : i32
    %c0_i32_0 = arith.constant 0 : i32
    return %arg0, %c0_i32 : i32, i32
  }
  func.func @transform_1(%arg0: i32) -> (i32, i32) {
    %c0_i32 = arith.constant 0 : i32
    %c0_i32_0 = arith.constant 0 : i32
    %c0_i32_1 = arith.constant 0 : i32
    return %c0_i32, %c0_i32_0 : i32, i32
  }
  func.func @transform_2(%arg0: i32) -> (i32, i32) {
    %c0_i32 = arith.constant 0 : i32
    %c0_i32_0 = arith.constant 0 : i32
    %c0_i32_1 = arith.constant 0 : i32
    return %c0_i32, %c0_i32_0 : i32, i32
  }
  func.func @transform_3(%arg0: i32) -> (i32, i32) {
    %c0_i32 = arith.constant 0 : i32
    %c0_i32_0 = arith.constant 0 : i32
    %c0_i32_1 = arith.constant 0 : i32
    return %c0_i32, %c0_i32_0 : i32, i32
  }
  func.func @transform_4(%arg0: i32) -> (i32, i32) {
    %c0_i32 = arith.constant 0 : i32
    %c0_i32_0 = arith.constant 0 : i32
    %c0_i32_1 = arith.constant 0 : i32
    return %c0_i32, %c0_i32_0 : i32, i32
  }
  func.func @transform_5(%arg0: i32) -> (i32, i32) {
    %c0_i32 = arith.constant 0 : i32
    %c0_i32_0 = arith.constant 0 : i32
    %c0_i32_1 = arith.constant 0 : i32
    return %c0_i32, %c0_i32_0 : i32, i32
  }
  func.func @transform_6(%arg0: i32) -> (i32, i32) {
    %c0_i32 = arith.constant 0 : i32
    %c0_i32_0 = arith.constant 0 : i32
    %c0_i32_1 = arith.constant 0 : i32
    return %c0_i32, %c0_i32_0 : i32, i32
  }
  func.func @transform_7(%arg0: i32) -> (i32, i32) {
    %c0_i32 = arith.constant 0 : i32
    %c0_i32_0 = arith.constant 0 : i32
    %c0_i32_1 = arith.constant 0 : i32
    return %c0_i32, %c0_i32_0 : i32, i32
  }
  func.func @transform_8(%arg0: i32) -> (i32, i32) {
    %c0_i32 = arith.constant 0 : i32
    %c0_i32_0 = arith.constant 0 : i32
    %c0_i32_1 = arith.constant 0 : i32
    return %c0_i32, %c0_i32_0 : i32, i32
  }
  func.func @transform_9(%arg0: i32) -> (i32, i32) {
    %c0_i32 = arith.constant 0 : i32
    %c0_i32_0 = arith.constant 0 : i32
    %c0_i32_1 = arith.constant 0 : i32
    return %c0_i32, %c0_i32_0 : i32, i32
  }
  func.func @transform_10(%arg0: i32) -> (i32, i32) {
    %c0_i32 = arith.constant 0 : i32
    %c0_i32_0 = arith.constant 0 : i32
    %c0_i32_1 = arith.constant 0 : i32
    return %c0_i32, %c0_i32_0 : i32, i32
  }
  func.func @transform_11(%arg0: i32) -> (i32, i32) {
    %c0_i32 = arith.constant 0 : i32
    %c0_i32_0 = arith.constant 0 : i32
    %c0_i32_1 = arith.constant 0 : i32
    return %c0_i32, %c0_i32_0 : i32, i32
  }
  func.func @transform_12(%arg0: i32) -> (i32, i32) {
    %c0_i32 = arith.constant 0 : i32
    %c0_i32_0 = arith.constant 0 : i32
    %c0_i32_1 = arith.constant 0 : i32
    return %c0_i32, %c0_i32_0 : i32, i32
  }
  func.func @transform_13(%arg0: i32) -> (i32, i32, i32) {
    %c0_i32 = arith.constant 0 : i32
    %c0_i32_0 = arith.constant 0 : i32
    %c0_i32_1 = arith.constant 0 : i32
    %c0_i32_2 = arith.constant 0 : i32
    return %c0_i32, %c0_i32_0, %c0_i32_1 : i32, i32, i32
  }
  func.func @transform_14(%arg0: i32) -> (i32, i32) {
    %c0_i32 = arith.constant 0 : i32
    %c0_i32_0 = arith.constant 0 : i32
    %c0_i32_1 = arith.constant 0 : i32
    return %c0_i32, %c0_i32_0 : i32, i32
  }
  func.func @transform_15(%arg0: i32) -> (i32, i32) {
    %c0_i32 = arith.constant 0 : i32
    %c0_i32_0 = arith.constant 0 : i32
    %c0_i32_1 = arith.constant 0 : i32
    return %c0_i32, %c0_i32_0 : i32, i32
  }
  func.func @transform_16(%arg0: i32) -> (i32, i32) {
    %c0_i32 = arith.constant 0 : i32
    %c0_i32_0 = arith.constant 0 : i32
    %c0_i32_1 = arith.constant 0 : i32
    return %c0_i32, %c0_i32_0 : i32, i32
  }
  func.func @transform_17(%arg0: i32) -> (i32, i32) {
    %c0_i32 = arith.constant 0 : i32
    %c0_i32_0 = arith.constant 0 : i32
    %c0_i32_1 = arith.constant 0 : i32
    return %c0_i32, %c0_i32_0 : i32, i32
  }
  func.func @transform_18(%arg0: i32) -> (i32, i32) {
    %c0_i32 = arith.constant 0 : i32
    %c0_i32_0 = arith.constant 0 : i32
    %c0_i32_1 = arith.constant 0 : i32
    return %c0_i32, %c0_i32_0 : i32, i32
  }
  func.func @transform_19(%arg0: i32) -> (i32, i32) {
    %c0_i32 = arith.constant 0 : i32
    %c0_i32_0 = arith.constant 0 : i32
    %c0_i32_1 = arith.constant 0 : i32
    return %c0_i32, %c0_i32_0 : i32, i32
  }
  func.func @transform_20(%arg0: i32) -> (i32, i32) {
    %c0_i32 = arith.constant 0 : i32
    %c0_i32_0 = arith.constant 0 : i32
    return %arg0, %c0_i32 : i32, i32
  }
}

</mosaic_0001>

<bundles_post_ra>
// kernel: tpu_custom_call.1
= control target key start
LH: loop header
LB: loop body
LE: loop exit
PB: predicated region body
PF: predicated region fallthrough
CT: control target
= control target key end

     0   :  { %s13895_s0 = inlined_call_operand.vmem [shape: f32[16,128], index: 0, kind: input, shape index: {}]   ;;  %s13896_s1 = inlined_call_operand.vmem [shape: bf16[16,8], index: 1, kind: input, shape index: {}]   ;;  %s13897_s2 = inlined_call_operand.vmem [shape: f32[16,1], index: 2, kind: input, shape index: {}]   ;;  %s13898_s3 = inlined_call_operand.vmem [shape: f32[1,128], index: 3, kind: input, shape index: {}]   ;;  %s13899_s4 = inlined_call_operand.vmem [shape: f32[1,128], index: 4, kind: input, shape index: {}]   ;;  %s13900_s5 = inlined_call_operand.vmem [shape: f32[128,128], index: 5, kind: input, shape index: {}]   ;;  %s13901_s6 = inlined_call_operand.vmem [shape: bf16[496,16], index: 6, kind: input, shape index: {}]   ;;  %s13902_s7 = inlined_call_operand.vmem [shape: f32[31,128], index: 7, kind: input, shape index: {}]   ;;  %s13903_s8 = inlined_call_operand.vmem [shape: f32[16,1], index: 8, kind: input, shape index: {}]   ;;  %s13904_s9 = inlined_call_operand.vmem [shape: f32[1,128], index: 9, kind: input, shape index: {}]   ;;  %s13905_s10 = inlined_call_operand.vmem [shape: f32[1,128], index: 10, kind: input, shape index: {}]   ;;  %s13906_s11 = inlined_call_operand.vmem [shape: bf16[128,128], index: 11, kind: input, shape index: {}]   ;;  %s13907_s12 = inlined_call_operand.vmem [shape: f32[1,128], index: 12, kind: input, shape index: {}]   ;;  %s13908_s13 = inlined_call_operand.vmem [shape: bf16[16,128,96], index: 13, kind: input, shape index: {}]   ;;  %s13909_s14 = inlined_call_operand.vmem [shape: f32[1,96], index: 14, kind: input, shape index: {}]   ;;  %s13910_s15 = inlined_call_operand.vmem [shape: f32[96,96], index: 15, kind: input, shape index: {}]   ;;  %s13911_s16 = inlined_call_operand.vmem [shape: f32[1,96], index: 16, kind: input, shape index: {}]   ;;  %s13912_s17 = inlined_call_operand.vmem [shape: f32[1,96], index: 17, kind: input, shape index: {}]   ;;  %s13913_s18 = inlined_call_operand.vmem [shape: bf16[96,128], index: 18, kind: input, shape index: {}]   ;;  %s13914_s19 = inlined_call_operand.vmem [shape: f32[1,128], index: 19, kind: input, shape index: {}]   ;;  %s13915_s20 = inlined_call_operand.hbm [shape: f32[16,128], index: 20, kind: output, shape index: {}]  }
   0x1   :  { %13995 = sst [smem:[#allocation23_spill]] %s13895_s0 }
   0x2   :  { %13996 = sst [smem:[#allocation24_spill]] %s13896_s1 }
   0x3   :  { %13997 = sst [smem:[#allocation25_spill]] %s13897_s2 }
   0x4   :  { %13998 = sst [smem:[#allocation26_spill]] %s13898_s3 }
   0x5   :  { %13999 = sst [smem:[#allocation27_spill]] %s13899_s4 }
   0x6   :  { %14000 = sst [smem:[#allocation28_spill]] %s13900_s5 }
   0x7   :  { %14001 = sst [smem:[#allocation29_spill]] %s13915_s20 }
   0x8   :  { %25 = vsyncpa [#allocation3], 0 }
   0x9   :  { %27 = vsyncpa [#allocation3 + $0x1], 0  ;;  %s11661_s1 = smov 0   ;;  %s11663_s22 = smov 0  }
   0xa   :  { %s11665_s23 = smov 0   ;;  %s11667_s24 = smov 0  }
   0xb LB: > { %14002 = sst [smem:[#allocation5_spill]] %s11506_s1  ;;  %s11682_s2 = sadd.s32 4294967295, %s11518_s24   ;;  %s11518_s24 = sphi %s11667_s24, %s14070_s24   ;;  %s11514_s23 = sphi %s11665_s23, %s14072_s23   ;;  %s11510_s22 = sphi %s11663_s22, %s14074_s22   ;;  %s11506_s1 = sphi %s11661_s1, %s14073_s1  }
   0xc   : > { %14003 = sst [smem:[#allocation6_spill]] %s11514_s23  ;;  %s7941_s25 = sadd.s32 4294967294, %s11518_s24  }
   0xd   : > { %14004 = sst [smem:[#allocation7_spill]] %s11518_s24  ;;  %s11686_s3 = sadd.s32 1, %s11518_s24  }
   0xe   : > { %14005 = sst [smem:[#allocation8_spill]] %s11686_s3  ;;  %s465_s26 = sadd.s32 1, %s11514_s23 }
   0xf   : > { %s462_s27 = ssub.s32 %s11518_s24, %s11686_s3  ;;  %p475_p0 = scmp.ne.s32.totalorder %s11514_s23, %s11510_s22 }
  0x10   : > { %p463_p1 = scmp.eq.s32.totalorder %s462_s27, 0  ;;  %p476_p2 = scmp.eq.s32.totalorder %s11682_s2, 1 }
  0x11   : > { %p481_p3 = scmp.ne.s32.totalorder %s11510_s22, %s11506_s1  ;;  %p482_p4 = scmp.eq.s32.totalorder %s7941_s25, 1 }
  0x12   : > { %s11697_s28 = scalar_select %p463_p1, %s11514_s23, %s465_s26  }
  0x13   : > { %p11699_p5 = por %p476_p2, %p475_p0  ;;  %p11703_p6 = por %p482_p4, %p481_p3 }
  0x14   : > { %14006 = sst [smem:[#allocation9_spill]] %s11697_s28  ;;  %p7944_p7 = scmp.ge.s32.totalorder %s11518_s24, 1 }
  0x15   : > { %s14007_s4 = scalar_select %p11699_p5, 1, 0 }
  0x16   : > { %s14009_s29 = scalar_select %p11703_p6, 1, 0 }
  0x17   : > { %14008 = sst [smem:[#allocation10_spill]] %s14007_s4  ;;  %p564_p8 = scmp.lt.s32.totalorder %s11518_s24, 3 }
  0x18   : > { %14010 = sst [smem:[#allocation11_spill]] %s14009_s29 }
  0x19   : > { %p565_p9 = pnand %p7944_p7, %p564_p8 }
  0x1b   : > { %568 = sbr.rel (%p565_p9) target bundleno = 6918 (0x1b06), region = 100 }
  0x22   : > { %p621_p10 = scmp.lt.s32.totalorder %s11682_s2, 1  ;;  %v13968_v0 = vmov 0.0   ;;  %vm11521_vm0 = vmmov 0   ;;  %s14011_s21 = sld [smem:[#allocation25_spill]]  ;;  %v11522_v2 = vmov 0   ;;  %vm678_vm1 = vcmask 1043456  }
  0x23   : > { %9009 = vmatprep.subr.bf16.mxu1 %v13968_v0  ;;  %9011 = vmatprep.mubr.msk.bf16.mxu1 %vm11521_vm0, %v13968_v0  ;;  %s14012_s5 = sld [smem:[#allocation28_spill]]  ;;  %s14013_s4 = sld [smem:[#allocation23_spill]]  ;;  %vm674_vm2 = vcmask 64512   ;;  %vm1171_vm5 = vcmask 130048   ;;  %vm7590_vm14 = vcmask 785408  }
  0x24   : > { %s622_s25 = scalar_select %p621_p10, %s11682_s2, 1  ;;  %11170 = vset.pattern.permute.xlu0 %v11522_v2  ;;  %11171 = vset.pattern.permute.xlu1 %v11522_v2 }
  0x25   : > { %s14014_s23 = sld [smem:[#allocation24_spill]]  ;;  %s14016_s0 = sld [smem:[#allocation27_spill]] }
  0x26   : > { %s7946_s1 = sshll.u32 %s622_s25, 3  ;;  %s11525_s28 = smov 15  }
  0x27   : > { %s11526_s27 = smov 13   ;;  %s11527_s3 = smov 12  }
  0x28   : > { %v657_v1 = vld [vmem:[%s14011_s21] sm:$0xff]  ;;  %v658_v8 = vld [vmem:[%s14011_s21 + $0x8] sm:$0xff]  ;;  %s11528_s24 = smov 11   ;;  %s11529_s25 = smov 10  }
  0x29   : > { %v723_v3 = vld [vmem:[%s14012_s5] sm:$0xff]  ;;  %v724_v4 = vld [vmem:[%s14012_s5 + $0x8] sm:$0xff]  ;;  %661 = vperm.xlu0 %11170, %v657_v1   ;;  %v725_v6 = vld [vmem:[%s14012_s5 + $0x10] sm:$0xff]  ;;  %s624_s30 = scalar_lea.vmem %s14013_s4, %s7946_s1  ;;  %s11524_s4 = smov 14  }
  0x2a   : > { %v11723_v5 = vpack.c.bf16 %v724_v4, %v723_v3  ;;  %v726_v7 = vld [vmem:[%s14012_s5 + $0x18] sm:$0xff]  ;;  %v727_v10 = vld [vmem:[%s14012_s5 + $0x20] sm:$0xff]  ;;  %v728_v11 = vld [vmem:[%s14012_s5 + $0x28] sm:$0xff]  ;;  %s13926_s26 = smov 8   ;;  %s13930_s20 = smov 6  }
  0x2b   : > { %v11734_v9 = vpack.c.bf16 %v726_v7, %v725_v6  ;;  %v653_v12 = vld [vmem:[%s624_s30] sm:$0xff]  ;;  %v729_v13 = vld [vmem:[%s14012_s5 + $0x30] sm:$0xff]  ;;  %v11754_v16 = vpack.c.bf16 %v728_v11, %v727_v10  ;;  %v730_v17 = vld [vmem:[%s14012_s5 + $0x38] sm:$0xff]  ;;  %s14015_s30 = sld [smem:[#allocation26_spill]]  ;;  %s13932_s1 = smov 5  }
  0x2c   : > { %10308 = vmatprep.subr.bf16.mxu0 %v11723_v5  ;;  %v656_v14 = vpack.c.bf16 %v653_v12, %v653_v12  ;;  %v11172_v15 = vld [vmem:[%s14014_s23] sm:$0xff]   ;;  %v732_v20 = vld [vmem:[%s14012_s5 + $0x48] sm:$0xff]  ;;  %v11767_v21 = vpack.c.bf16 %v730_v17, %v729_v13  ;;  %v733_v22 = vld [vmem:[%s14012_s5 + $0x50] sm:$0xff]  ;;  %s13928_s23 = smov 7   ;;  %s13934_s29 = smov 4  }
  0x2d   : > { %10310 = vmatpush3.bf16.msra.mxu0 %v11723_v5  ;;  %666 = vperm.xlu0 %11170, %v658_v8   ;;  %v731_v19 = vld [vmem:[%s14012_s5 + $0x40] sm:$0xff]  ;;  %v734_v23 = vld [vmem:[%s14012_s5 + $0x58] sm:$0xff]  ;;  %v736_v26 = vld [vmem:[%s14012_s5 + $0x68] sm:$0xff] }
  0x2e   : > { %10312 = vmatprep.subr.bf16.mxu0 %v11734_v9  ;;  %v680_v18 = vsel %vm678_vm1, %v656_v14, 0  ;;  %v11780_v24 = vpack.c.bf16 %v732_v20, %v731_v19  ;;  %v735_v25 = vld [vmem:[%s14012_s5 + $0x60] sm:$0xff]  ;;  %v11790_v27 = vpack.c.bf16 %v734_v23, %v733_v22  ;;  %v737_v29 = vld [vmem:[%s14012_s5 + $0x70] sm:$0xff]  ;;  %v738_v30 = vld [vmem:[%s14012_s5 + $0x78] sm:$0xff] }
  0x2f   : > { %9010 = vmatpush3.bf16.msra.mxu1 %v680_v18  ;;  %v11794_v28 = vpack.c.bf16 %v736_v26, %v735_v25  ;;  %v11805_v31 = vpack.c.bf16 %v738_v30, %v737_v29  ;;  %v7950_v54 = vld [vmem:[%s14016_s0] ss:$0 sm:$0xff]  ;;  %s13940_s0 = smov 9  }
  0x30   : > { %9155 = vmatprep.subr.bf16.mxu1 %v13968_v0 }
  0x31   : > { %10314 = vmatpush3.bf16.msra.mxu0 %v11734_v9  ;;  %v7949_v51 = vld [vmem:[%s14015_s30] ss:$0 sm:$0xff]  ;;  %s13936_s30 = smov 3  }
  0x32   : > { %10316 = vmatprep.subr.bf16.mxu0 %v11754_v16  ;;  %9012 = vmatmul.mubr.msk.bf16.vlgmr.msra.gmra.mrb[0].mxu1 %vm674_vm2, %v11172_v15 }
  0x33   : > { %9157 = vmatprep.mubr.msk.bf16.mxu1 %vm11521_vm0, %v13968_v0 }
  0x35   : > { %10318 = vmatpush3.bf16.msra.mxu0 %v11754_v16 }
  0x36   : > { %10320 = vmatprep.subr.bf16.mxu0 %v11767_v21 }
  0x39   : > { %10322 = vmatpush3.bf16.msra.mxu0 %v11767_v21 }
  0x3a   : > { %10324 = vmatprep.subr.bf16.mxu0 %v11780_v24 }
  0x3d   : > { %10326 = vmatpush3.bf16.msra.mxu0 %v11780_v24 }
  0x3e   : > { %10328 = vmatprep.subr.bf16.mxu0 %v11790_v27 }
  0x41   : > { %10330 = vmatpush3.bf16.msra.mxu0 %v11790_v27 }
  0x42   : > { %10332 = vmatprep.subr.bf16.mxu0 %v11794_v28 }
  0x45   : > { %10334 = vmatpush3.bf16.msra.mxu0 %v11794_v28 }
  0x46   : > { %10336 = vmatprep.subr.bf16.mxu0 %v11805_v31 }
  0x49   : > { %10338 = vmatpush3.bf16.msra.mxu0 %v11805_v31 }
  0x4a   : > { %10340 = vmatprep.subr.bf16.mxu0 %v11723_v5 }
  0xa8   : > { %v662_v32 = vpop.permute.xlu0 %661 }
  0xac   : > { %v667_v36 = vpop.permute.xlu0 %666 }
 0x105   : > { %v716_v33 = vpop.f32.mrb[0].mxu1 }
 0x106   : > { %v717_v34 = vadd.f32 %v716_v33, %v662_v32  ;;  %v9013_v35 = vpop.f32.mrb[1].mxu1 }
 0x107   : > { %v719_v37 = vpop.f32.mrb[2].mxu1 }
 0x108   : > { %v720_v38 = vadd.f32 %v719_v37, %v667_v36  ;;  %v9014_v39 = vpop.f32.mrb[3].mxu1  ;;  %9047 = vmatprep.mubr.f32.mxu0 %v717_v34 }
 0x10a   : > { %9048 = vmatmul.mubr.f32.vlgmr.msra.gmra.mrb[0].mxu0 %v720_v38 }
 0x10b   : > { %10342 = vmatpush3.bf16.msra.mxu0 %v11723_v5 }
 0x10c   : > { %10344 = vmatprep.subr.bf16.mxu0 %v11734_v9 }
 0x10f   : > { %10346 = vmatpush3.bf16.msra.mxu0 %v11734_v9 }
 0x110   : > { %10348 = vmatprep.subr.bf16.mxu0 %v11754_v16 }
 0x113   : > { %10350 = vmatpush3.bf16.msra.mxu0 %v11754_v16 }
 0x114   : > { %10352 = vmatprep.subr.bf16.mxu0 %v11767_v21 }
 0x117   : > { %10354 = vmatpush3.bf16.msra.mxu0 %v11767_v21 }
 0x118   : > { %10356 = vmatprep.subr.bf16.mxu0 %v11780_v24 }
 0x11b   : > { %10358 = vmatpush3.bf16.msra.mxu0 %v11780_v24 }
 0x11c   : > { %10360 = vmatprep.subr.bf16.mxu0 %v11790_v27 }
 0x11f   : > { %10362 = vmatpush3.bf16.msra.mxu0 %v11790_v27 }
 0x120   : > { %10364 = vmatprep.subr.bf16.mxu0 %v11794_v28 }
 0x123   : > { %10366 = vmatpush3.bf16.msra.mxu0 %v11794_v28 }
 0x124   : > { %10368 = vmatprep.subr.bf16.mxu0 %v11805_v31 }
 0x127   : > { %10370 = vmatpush3.bf16.msra.mxu0 %v11805_v31 }
 0x128   : > { %10372 = vmatprep.subr.bf16.mxu0 %v11723_v5 }
 0x1dd   : > { %v9049_v40 = vpop.f32.mrb[0].mxu0 }
 0x1de   : > { %v815_v41 = vsub.f32 %v720_v38, %v9049_v40  ;;  %v805_v42 = vpop.f32.mrb[1].mxu0 }
 0x1df   : > { %v814_v43 = vsub.f32 %v717_v34, %v805_v42 }
 0x1e0   : > { %v817_v45 = vmul.f32 %v815_v41, %v815_v41 }
 0x1e1   : > { %v816_v44 = vmul.f32 %v814_v43, %v814_v43 }
 0x1e3   : > { %9082 = vmatprep.mubr.f32.mxu0 %v816_v44 }
 0x1e4   : > { %9083 = vmatmul.mubr.f32.vlgmr.msra.gmra.mrb[2].mxu0 %v817_v45  ;;  %v13970_v45 = vmov -1.0  }
 0x1e5   : > { %10374 = vmatpush3.bf16.msra.mxu0 %v11723_v5 }
 0x1e6   : > { %10376 = vmatprep.subr.bf16.mxu0 %v11734_v9 }
 0x1e9   : > { %10378 = vmatpush3.bf16.msra.mxu0 %v11734_v9 }
 0x1ea   : > { %10380 = vmatprep.subr.bf16.mxu0 %v11754_v16 }
 0x1ed   : > { %10382 = vmatpush3.bf16.msra.mxu0 %v11754_v16 }
 0x1ee   : > { %10384 = vmatprep.subr.bf16.mxu0 %v11767_v21 }
 0x1f1   : > { %10386 = vmatpush3.bf16.msra.mxu0 %v11767_v21 }
 0x1f2   : > { %10388 = vmatprep.subr.bf16.mxu0 %v11780_v24 }
 0x1f5   : > { %10390 = vmatpush3.bf16.msra.mxu0 %v11780_v24 }
 0x1f6   : > { %10392 = vmatprep.subr.bf16.mxu0 %v11790_v27 }
 0x1f9   : > { %10394 = vmatpush3.bf16.msra.mxu0 %v11790_v27 }
 0x1fa   : > { %10396 = vmatprep.subr.bf16.mxu0 %v11794_v28 }
 0x1fd   : > { %10398 = vmatpush3.bf16.msra.mxu0 %v11794_v28 }
 0x1fe   : > { %10400 = vmatprep.subr.bf16.mxu0 %v11805_v31 }
 0x201   : > { %10402 = vmatpush3.bf16.msra.mxu0 %v11805_v31 }
 0x202   : > { %10404 = vmatprep.subr.bf16.mxu0 %v11723_v5 }
 0x2b7   : > { %v9084_v46 = vpop.f32.mrb[2].mxu0 }
 0x2b8   : > { %v890_v47 = vadd.f32 1e-05, %v9084_v46  ;;  %v884_v48 = vpop.f32.mrb[3].mxu0 }
 0x2b9   : > { %v885_v49 = vadd.f32 1e-05, %v884_v48 }
 0x2ba   : > { %11346 = vrsqrt.f32 %v890_v47 }
 0x2bb   : > { %11348 = vrsqrt.f32 %v885_v49 }
 0x2c4   : > { %v11347_v50 = vpop.eup %11346 }
 0x2c5   : > { %v11349_v52 = vpop.eup %11348  ;;  %v896_v53 = vmul.f32 %v11347_v50, %v815_v41 }
 0x2c6   : > { %v895_v55 = vmul.f32 %v11349_v52, %v814_v43 }
 0x2c7   : > { %v904_v56 = vmul.f32 %v7949_v51, %v896_v53 }
 0x2c8   : > { %v903_v57 = vmul.f32 %v7949_v51, %v895_v55 }
 0x2c9   : > { %v912_v58 = vadd.f32 %v7950_v54, %v904_v56 }
 0x2ca   : > { %v911_v59 = vadd.f32 %v7950_v54, %v903_v57 }
 0x2cb   : > { %v916_v60 = vmul.f32 0.70710677, %v912_v58  ;;  %v914_v53 = vmul.f32 0.5, %v912_v58 }
 0x2cc   : > { %v915_v61 = vmul.f32 0.70710677, %v911_v59  ;;  %v913_v51 = vmul.f32 0.5, %v911_v59 }
 0x2cd   : > { %v922_v62 = vand.u32 2147483647, %v916_v60  ;;  %vm918_vm3 = vcmp.ge.f32.partialorder %v916_v60, 0.0 }
 0x2ce   : > { %v921_v63 = vand.u32 2147483647, %v915_v61  ;;  %vm917_vm4 = vcmp.ge.f32.partialorder %v915_v61, 0.0  ;;  %v920_v46 = vsel %vm918_vm3, 1.0, %v13970_v45 }
 0x2cf   : > { %v924_v1 = vmul.f32 0.3275911, %v922_v62  ;;  %v950_v6 = vsub.f32 0.0, %v922_v62  ;;  %v919_v47 = vsel %vm917_vm4, 1.0, %v13970_v45 }
 0x2d0   : > { %v923_v2 = vmul.f32 0.3275911, %v921_v63  ;;  %v949_v7 = vsub.f32 0.0, %v921_v63 }
 0x2d1   : > { %v926_v3 = vadd.f32 1.0, %v924_v1  ;;  %v952_v10 = vmul.f32 %v950_v6, %v922_v62  ;;  %v7951_v6 = vld [vmem:[%s13904_s9] ss:$0 sm:$0xff] }
 0x2d2   : > { %v925_v4 = vadd.f32 1.0, %v923_v2  ;;  %v951_v12 = vmul.f32 %v949_v7, %v921_v63 }
 0x2d3   : > { %11350 = vrcp.f32 %v926_v3  ;;  %v955_v18 = vmul.f32 1.442695, %v952_v10  ;;  %v7952_v10 = vld [vmem:[%s13905_s10] ss:$0 sm:$0xff] }
 0x2d4   : > { %11352 = vrcp.f32 %v925_v4  ;;  %v953_v19 = vmul.f32 1.442695, %v951_v12 }
 0x2d5   : > { %11354 = vpow2.f32 %v955_v18 }
 0x2d6   : > { %11356 = vpow2.f32 %v953_v19  ;;  %v11918_v19 = vld [vmem:[%s13902_s7] sm:$0xff] }
 0x2dd   : > { %v11351_v8 = vpop.eup %11350 }
 0x2de   : > { %v11353_v11 = vpop.eup %11352  ;;  %v932_v13 = vmul.f32 1.0614054, %v11351_v8 }
 0x2df   : > { %v931_v14 = vmul.f32 1.0614054, %v11353_v11  ;;  %v11355_v38 = vpop.eup %11354 }
 0x2e0   : > { %v934_v15 = vadd.f32 -1.4531521, %v932_v13  ;;  %v11357_v40 = vpop.eup %11356 }
 0x2e1   : > { %v933_v17 = vadd.f32 -1.4531521, %v931_v14  ;;  %v1157_v14 = vlaneseq }
 0x2e2   : > { %v936_v20 = vmul.f32 %v11351_v8, %v934_v15 }
 0x2e3   : > { %v935_v22 = vmul.f32 %v11353_v11, %v933_v17  ;;  %v11908_v17 = vshrl.u32 %v1157_v14, 7 }
 0x2e4   : > { %v938_v23 = vadd.f32 1.4214138, %v936_v20 }
 0x2e5   : > { %v937_v25 = vadd.f32 1.4214138, %v935_v22  ;;  %v1608_v18 = vsub.s32 7, %v11908_v17  ;;  %v11986_v22 = vld [vmem:[%s13902_s7 + $0x10] sm:$0xff] }
 0x2e6   : > { %v940_v26 = vmul.f32 %v11351_v8, %v938_v23 }
 0x2e7   : > { %v939_v29 = vmul.f32 %v11353_v11, %v937_v25  ;;  %v11921_v20 = vrot.slane %v11918_v19, %v1608_v18  ;;  %v11989_v23 = vrot.slane %v11986_v22, %v1608_v18  ;;  %v12032_v25 = vsub.s32 0, %v11908_v17 }
 0x2e8   : > { %v942_v30 = vadd.f32 -0.28449672, %v940_v26  ;;  %v630_v26 = vld [vmem:[%s13903_s8] sm:$0xff] }
 0x2e9   : > { %v941_v32 = vadd.f32 -0.28449672, %v939_v29  ;;  %14017 = vst [vmem:[#allocation12_spill] sm:$0xff] %v11989_v23  ;;  %14018 = vst [vmem:[#allocation13_spill] sm:$0xff] %v12032_v25 }
 0x2ea   : > { %v944_v33 = vmul.f32 %v11351_v8, %v942_v30  ;;  %v12042_v30 = vsub.s32 1, %v11908_v17 }
 0x2eb   : > { %v943_v34 = vmul.f32 %v11353_v11, %v941_v32  ;;  %v12046_v32 = vrot.slane %v11918_v19, %v12032_v25 }
 0x2ec   : > { %v946_v35 = vadd.f32 0.2548296, %v944_v33 }
 0x2ed   : > { %v945_v36 = vadd.f32 0.2548296, %v943_v34  ;;  %v12052_v34 = vrot.slane %v11918_v19, %v12042_v30 }
 0x2ee   : > { %v948_v37 = vmul.f32 %v11351_v8, %v946_v35 }
 0x2ef   : > { %v947_v39 = vmul.f32 %v11353_v11, %v945_v36 }
 0x2f0   : > { %v958_v41 = vmul.f32 %v11355_v38, %v948_v37 }
 0x2f1   : > { %v957_v42 = vmul.f32 %v11357_v40, %v947_v39  ;;  %v11173_v40 = vld [vmem:[%s13901_s6] sm:$0xff]  }
 0x2f2   : > { %v960_v43 = vsub.f32 1.0, %v958_v41 }
 0x2f3   : > { %v959_v44 = vsub.f32 1.0, %v957_v42 }
 0x2f4   : > { %v962_v48 = vmul.f32 %v960_v43, %v920_v46 }
 0x2f5   : > { %v961_v49 = vmul.f32 %v959_v44, %v919_v47  ;;  %v12066_v44 = vsub.s32 2, %v11908_v17 }
 0x2f6   : > { %v964_v50 = vadd.f32 1.0, %v962_v48 }
 0x2f7   : > { %v963_v52 = vadd.f32 1.0, %v961_v49  ;;  %v12073_v47 = vrot.slane %v11918_v19, %v12066_v44 }
 0x2f8   : > { %v11852_v55 = vmul.f32 %v964_v50, %v914_v53  ;;  %v11174_v50 = vld [vmem:[%s13901_s6 + $0x8] sm:$0xff]   ;;  %v12082_v53 = vsub.s32 3, %v11908_v17 }
 0x2f9   : > { %v11850_v54 = vmul.f32 %v963_v52, %v913_v51 }
 0x2fb   : > { %9117 = vmatprep.mubr.f32.mxu0 %v11850_v54 }
 0x2fc   : > { %9118 = vmatmul.mubr.f32.vlgmr.msra.gmra.mrb[4].mxu0 %v11852_v55 }
 0x2fd   : > { %10406 = vmatpush3.bf16.msra.mxu0 %v11723_v5 }
 0x2fe   : > { %10408 = vmatprep.subr.bf16.mxu0 %v11734_v9 }
 0x301   : > { %10410 = vmatpush3.bf16.msra.mxu0 %v11734_v9 }
 0x302   : > { %10412 = vmatprep.subr.bf16.mxu0 %v11754_v16 }
 0x305   : > { %10414 = vmatpush3.bf16.msra.mxu0 %v11754_v16 }
 0x306   : > { %10416 = vmatprep.subr.bf16.mxu0 %v11767_v21 }
 0x309   : > { %10418 = vmatpush3.bf16.msra.mxu0 %v11767_v21 }
 0x30a   : > { %10420 = vmatprep.subr.bf16.mxu0 %v11780_v24 }
 0x30d   : > { %10422 = vmatpush3.bf16.msra.mxu0 %v11780_v24 }
 0x30e   : > { %10424 = vmatprep.subr.bf16.mxu0 %v11790_v27 }
 0x311   : > { %10426 = vmatpush3.bf16.msra.mxu0 %v11790_v27 }
 0x312   : > { %10428 = vmatprep.subr.bf16.mxu0 %v11794_v28 }
 0x315   : > { %10430 = vmatpush3.bf16.msra.mxu0 %v11794_v28 }
 0x316   : > { %10432 = vmatprep.subr.bf16.mxu0 %v11805_v31 }
 0x319   : > { %10434 = vmatpush3.bf16.msra.mxu0 %v11805_v31 }
 0x31a   : > { %10436 = vmatprep.subr.bf16.mxu0 %v11723_v5 }
 0x3cf   : > { %v9119_v56 = vpop.f32.mrb[4].mxu0 }
 0x3d0   : > { %v1043_v57 = vsub.f32 %v11852_v55, %v9119_v56  ;;  %v1033_v58 = vpop.f32.mrb[5].mxu0 }
 0x3d1   : > { %v1042_v59 = vsub.f32 %v11850_v54, %v1033_v58 }
 0x3d2   : > { %v1045_v61 = vmul.f32 %v1043_v57, %v1043_v57 }
 0x3d3   : > { %v1044_v60 = vmul.f32 %v1042_v59, %v1042_v59 }
 0x3d5   : > { %9152 = vmatprep.mubr.f32.mxu0 %v1044_v60  ;;  %v11175_v60 = vld [vmem:[%s13901_s6 + $0x10] sm:$0xff]  }
 0x3d6   : > { %9153 = vmatmul.mubr.f32.vlgmr.msra.gmra.mrb[6].mxu0 %v1045_v61 }
 0x3d7   : > { %10438 = vmatpush3.bf16.msra.mxu0 %v11723_v5 }
 0x3d8   : > { %10440 = vmatprep.subr.bf16.mxu0 %v11734_v9 }
 0x3db   : > { %10442 = vmatpush3.bf16.msra.mxu0 %v11734_v9 }
 0x3dc   : > { %10444 = vmatprep.subr.bf16.mxu0 %v11754_v16 }
 0x3df   : > { %10446 = vmatpush3.bf16.msra.mxu0 %v11754_v16 }
 0x3e0   : > { %10448 = vmatprep.subr.bf16.mxu0 %v11767_v21 }
 0x3e3   : > { %10450 = vmatpush3.bf16.msra.mxu0 %v11767_v21 }
 0x3e4   : > { %10452 = vmatprep.subr.bf16.mxu0 %v11780_v24 }
 0x3e7   : > { %10454 = vmatpush3.bf16.msra.mxu0 %v11780_v24 }
 0x3e8   : > { %10456 = vmatprep.subr.bf16.mxu0 %v11790_v27 }
 0x3eb   : > { %10458 = vmatpush3.bf16.msra.mxu0 %v11790_v27 }
 0x3ec   : > { %10460 = vmatprep.subr.bf16.mxu0 %v11794_v28 }
 0x3ef   : > { %10462 = vmatpush3.bf16.msra.mxu0 %v11794_v28 }
 0x3f0   : > { %10464 = vmatprep.subr.bf16.mxu0 %v11805_v31 }
 0x3f3   : > { %10466 = vmatpush3.bf16.msra.mxu0 %v11805_v31 }
 0x3f4   : > { %10468 = vmatprep.subr.bf16.mxu0 %v11723_v5 }
 0x4a9   : > { %v9154_v62 = vpop.f32.mrb[6].mxu0 }
 0x4aa   : > { %v1118_v63 = vadd.f32 1e-05, %v9154_v62  ;;  %v1112_v1 = vpop.f32.mrb[7].mxu0 }
 0x4ab   : > { %v1113_v2 = vadd.f32 1e-05, %v1112_v1 }
 0x4ac   : > { %11358 = vrsqrt.f32 %v1118_v63  ;;  %v12098_v63 = vsub.s32 4, %v11908_v17 }
 0x4ad   : > { %11360 = vrsqrt.f32 %v1113_v2 }
 0x4ae   : > { %v12105_v2 = vrot.slane %v11918_v19, %v12098_v63 }
 0x4b6   : > { %v11359_v3 = vpop.eup %11358 }
 0x4b7   : > { %v11361_v4 = vpop.eup %11360  ;;  %v1124_v7 = vmul.f32 %v11359_v3, %v1043_v57  ;;  %v12089_v57 = vrot.slane %v11918_v19, %v12082_v53 }
 0x4b8   : > { %v1123_v8 = vmul.f32 %v11361_v4, %v1042_v59 }
 0x4b9   : > { %v1132_v12 = vmul.f32 %v7951_v6, %v1124_v7 }
 0x4ba   : > { %v1131_v11 = vmul.f32 %v7951_v6, %v1123_v8  ;;  %v11176_v6 = vld [vmem:[%s13901_s6 + $0x18] sm:$0xff]  }
 0x4bb   : > { %v11902_v15 = vadd.f32 %v7952_v10, %v1132_v12 }
 0x4bc   : > { %v11896_v13 = vadd.f32 %v7952_v10, %v1131_v11  ;;  %v12114_v10 = vsub.s32 5, %v11908_v17 }
 0x4be   : > { %1218 = vrot.lane.b32.xlu0 %v11896_v13, %s11524_s4  ;;  %1153 = vrot.lane.b32.xlu1 %v11896_v13, %s11525_s28  ;;  %v12121_v12 = vrot.slane %v11918_v19, %v12114_v10 }
 0x4c2   : > { %1282 = vrot.lane.b32.xlu0 %v11896_v13, %s11526_s27  ;;  %1155 = vrot.lane.b32.xlu1 %v11902_v15, %s11525_s28 }
 0x4c6   : > { %1346 = vrot.lane.b32.xlu0 %v11896_v13, %s11527_s3  ;;  %1220 = vrot.lane.b32.xlu1 %v11902_v15, %s11524_s4 }
 0x4ca   : > { %1410 = vrot.lane.b32.xlu0 %v11896_v13, %s11528_s24  ;;  %1284 = vrot.lane.b32.xlu1 %v11902_v15, %s11526_s27 }
 0x4ce   : > { %1474 = vrot.lane.b32.xlu0 %v11896_v13, %s11529_s25  ;;  %1348 = vrot.lane.b32.xlu1 %v11902_v15, %s11527_s3 }
 0x4d2   : > { %1538 = vrot.lane.b32.xlu0 %v11896_v13, %s13940_s0  ;;  %1412 = vrot.lane.b32.xlu1 %v11902_v15, %s11528_s24 }
 0x4d6   : > { %1602 = vrot.lane.b32.xlu0 %v11896_v13, %s13926_s26  ;;  %1476 = vrot.lane.b32.xlu1 %v11902_v15, %s11529_s25 }
 0x4da   : > { %1666 = vrot.lane.b32.xlu0 %v11896_v13, %s13928_s23  ;;  %1540 = vrot.lane.b32.xlu1 %v11902_v15, %s13940_s0  ;;  %s13954_s0 = smov 121  }
 0x4de   : > { %1730 = vrot.lane.b32.xlu0 %v11896_v13, %s13930_s20  ;;  %1604 = vrot.lane.b32.xlu1 %v11902_v15, %s13926_s26  ;;  %s13938_s26 = smov 2  }
 0x4e2   : > { %1794 = vrot.lane.b32.xlu0 %v11896_v13, %s13932_s1  ;;  %1668 = vrot.lane.b32.xlu1 %v11902_v15, %s13928_s23  ;;  %s13942_s23 = smov 1  }
 0x4e6   : > { %1858 = vrot.lane.b32.xlu0 %v11896_v13, %s13934_s29  ;;  %1732 = vrot.lane.b32.xlu1 %v11902_v15, %s13930_s20  ;;  %s13944_s20 = smov 127  }
 0x4ea   : > { %1922 = vrot.lane.b32.xlu0 %v11896_v13, %s13936_s30  ;;  %1796 = vrot.lane.b32.xlu1 %v11902_v15, %s13932_s1  ;;  %s13962_s1 = smov 126  }
 0x4ee   : > { %1986 = vrot.lane.b32.xlu0 %v11896_v13, %s13938_s26  ;;  %1860 = vrot.lane.b32.xlu1 %v11902_v15, %s13934_s29  ;;  %s13946_s29 = smov 125  }
 0x4f2   : > { %2050 = vrot.lane.b32.xlu0 %v11896_v13, %s13942_s23  ;;  %1924 = vrot.lane.b32.xlu1 %v11902_v15, %s13936_s30  ;;  %s13948_s30 = smov 124  }
 0x4f6   : > { %2168 = vrot.lane.b32.xlu0 %v11896_v13, %s13944_s20  ;;  %1988 = vrot.lane.b32.xlu1 %v11902_v15, %s13938_s26  ;;  %s13956_s26 = smov 120  }
 0x4fa   : > { %2232 = vrot.lane.b32.xlu0 %v11896_v13, %s13962_s1  ;;  %2052 = vrot.lane.b32.xlu1 %v11902_v15, %s13942_s23  ;;  %s13950_s23 = smov 123  }
 0x4fe   : > { %2296 = vrot.lane.b32.xlu0 %v11896_v13, %s13946_s29  ;;  %2170 = vrot.lane.b32.xlu1 %v11902_v15, %s13944_s20  ;;  %s13952_s20 = smov 122  }
 0x502   : > { %2360 = vrot.lane.b32.xlu0 %v11896_v13, %s13948_s30  ;;  %2234 = vrot.lane.b32.xlu1 %v11902_v15, %s13962_s1  ;;  %s14036_s1 = smov 3  }
 0x506   : > { %2424 = vrot.lane.b32.xlu0 %v11896_v13, %s13950_s23  ;;  %2298 = vrot.lane.b32.xlu1 %v11902_v15, %s13946_s29  ;;  %s13958_s29 = smov 119  }
 0x50a   : > { %2488 = vrot.lane.b32.xlu0 %v11896_v13, %s13952_s20  ;;  %2362 = vrot.lane.b32.xlu1 %v11902_v15, %s13948_s30  ;;  %s13960_s30 = smov 118  }
 0x50e   : > { %2552 = vrot.lane.b32.xlu0 %v11896_v13, %s13954_s0  ;;  %2426 = vrot.lane.b32.xlu1 %v11902_v15, %s13950_s23  ;;  %s11549_s23 = smov 117  }
 0x512   : > { %2616 = vrot.lane.b32.xlu0 %v11896_v13, %s13956_s26  ;;  %2490 = vrot.lane.b32.xlu1 %v11902_v15, %s13952_s20  ;;  %s13989_s20 = smov 116  }
 0x516   : > { %2680 = vrot.lane.b32.xlu0 %v11896_v13, %s13958_s29  ;;  %2554 = vrot.lane.b32.xlu1 %v11902_v15, %s13954_s0  ;;  %s13987_s0 = smov 115  }
 0x51a   : > { %2744 = vrot.lane.b32.xlu0 %v11896_v13, %s13960_s30  ;;  %2618 = vrot.lane.b32.xlu1 %v11902_v15, %s13956_s26  ;;  %s13966_s26 = smov 114  }
 0x51e   : > { %2808 = vrot.lane.b32.xlu0 %v11896_v13, %s11549_s23  ;;  %2682 = vrot.lane.b32.xlu1 %v11902_v15, %s13958_s29  ;;  %s13964_s29 = smov 113  }
 0x522   : > { %2872 = vrot.lane.b32.xlu0 %v11896_v13, %s13989_s20  ;;  %2746 = vrot.lane.b32.xlu1 %v11902_v15, %s13960_s30  ;;  %s14037_s30 = smov 2  }
 0x526   : > { %2936 = vrot.lane.b32.xlu0 %v11896_v13, %s13987_s0  ;;  %2810 = vrot.lane.b32.xlu1 %v11902_v15, %s11549_s23 }
 0x52a   : > { %3000 = vrot.lane.b32.xlu0 %v11896_v13, %s13966_s26  ;;  %2874 = vrot.lane.b32.xlu1 %v11902_v15, %s13989_s20  ;;  %s14038_s20 = smov 1  }
 0x52e   : > { %3064 = vrot.lane.b32.xlu0 %v11896_v13, %s13964_s29  ;;  %2938 = vrot.lane.b32.xlu1 %v11902_v15, %s13987_s0  ;;  %s14039_s0 = smov 127  }
 0x530   : > { %v1154_v29 = vpop.permute.xlu1 %1153  ;;  %v1219_v37 = vpop.permute.xlu0 %1218 }
 0x531   : > { %v1161_v35 = vmul.f32 %v12046_v32, %v1154_v29  ;;  %v1226_v41 = vmul.f32 %v12052_v34, %v1219_v37 }
 0x532   : > { %1143 = vperm.xlu0 %11170, %v630_v26   ;;  %3002 = vrot.lane.b32.xlu1 %v11902_v15, %s13966_s26  ;;  %v11177_v26 = vld [vmem:[%s13901_s6 + $0x20] sm:$0xff]   ;;  %s14041_s26 = smov 125  }
 0x534   : > { %v1156_v33 = vpop.permute.xlu1 %1155  ;;  %v1283_v48 = vpop.permute.xlu0 %1282 }
 0x535   : > { %v1162_v36 = vmul.f32 %v12046_v32, %v1156_v33  ;;  %v1290_v51 = vmul.f32 %v12073_v47, %v1283_v48 }
 0x536   : > { %3066 = vrot.lane.b32.xlu1 %v11902_v15, %s13964_s29  ;;  %s14040_s29 = smov 126  }
 0x537   : > { %v1165_v38 = vpack.c.bf16 %v1162_v36, %v1161_v35  ;;  %v12130_v35 = vsub.s32 6, %v11908_v17 }
 0x538   : > { %v1221_v39 = vpop.permute.xlu1 %1220  ;;  %v1347_v58 = vpop.permute.xlu0 %1346 }
 0x539   : > { %v1227_v42 = vmul.f32 %v12052_v34, %v1221_v39  ;;  %9156 = vmatpush3.bf16.msra.mxu1 %v1165_v38  ;;  %v1354_v61 = vmul.f32 %v12089_v57, %v1347_v58  ;;  %v12137_v37 = vrot.slane %v11918_v19, %v12130_v35 }
 0x53a   : > { %9161 = vmatprep.subr.bf16.mxu1 %v13968_v0 }
 0x53b   : > { %v1230_v43 = vpack.c.bf16 %v1227_v42, %v1226_v41 }
 0x53c   : > { %9158 = vmatmul.mubr.msk.bf16.vlgmr.msra.gmra.mrb[4].mxu1 %vm1171_vm5, %v11173_v40  ;;  %v1285_v46 = vpop.permute.xlu1 %1284  ;;  %v1411_v3 = vpop.permute.xlu0 %1410  ;;  %v11178_v40 = vld [vmem:[%s13901_s6 + $0x28] sm:$0xff]  }
 0x53d   : > { %9162 = vmatpush3.bf16.msra.mxu1 %v1230_v43  ;;  %9163 = vmatprep.mubr.msk.bf16.mxu1 %vm11521_vm0, %v13968_v0  ;;  %v1291_v49 = vmul.f32 %v12073_v47, %v1285_v46  ;;  %v1418_v7 = vmul.f32 %v12105_v2, %v1411_v3  ;;  %v11179_v46 = vld [vmem:[%s13901_s6 + $0x30] sm:$0xff]  }
 0x53e   : > { %9167 = vmatprep.subr.bf16.mxu1 %v13968_v0 }
 0x53f   : > { %v1294_v52 = vpack.c.bf16 %v1291_v49, %v1290_v51 }
 0x540   : > { %v1349_v56 = vpop.permute.xlu1 %1348  ;;  %v1475_v14 = vpop.permute.xlu0 %1474 }
 0x541   : > { %v1355_v59 = vmul.f32 %v12089_v57, %v1349_v56  ;;  %v1482_v29 = vmul.f32 %v12121_v12, %v1475_v14 }
 0x543   : > { %v1358_v62 = vpack.c.bf16 %v1355_v59, %v1354_v61  ;;  %v11180_v59 = vld [vmem:[%s13901_s6 + $0x38] sm:$0xff]  }
 0x544   : > { %v1413_v1 = vpop.permute.xlu1 %1412  ;;  %v1539_v38 = vpop.permute.xlu0 %1538 }
 0x545   : > { %v1419_v4 = vmul.f32 %v12105_v2, %v1413_v1  ;;  %v1546_v17 = vmul.f32 %v12137_v37, %v1539_v38 }
 0x547   : > { %v1422_v8 = vpack.c.bf16 %v1419_v4, %v1418_v7 }
 0x548   : > { %9164 = vmatmul.mubr.msk.bf16.vlgmr.msra.gmra.mrb[4].mxu1 %vm1171_vm5, %v11174_v50  ;;  %v1477_v11 = vpop.permute.xlu1 %1476  ;;  %v1603_v42 = vpop.permute.xlu0 %1602  ;;  %v12159_v50 = vld [vmem:[%s13902_s7 + $0x8] sm:$0xff] }
 0x549   : > { %9168 = vmatpush3.bf16.msra.mxu1 %v1294_v52  ;;  %9169 = vmatprep.mubr.msk.bf16.mxu1 %vm11521_vm0, %v13968_v0  ;;  %v1483_v18 = vmul.f32 %v12121_v12, %v1477_v11  ;;  %v1610_v48 = vmul.f32 %v11921_v20, %v1603_v42  ;;  %v12164_v52 = vrot.slane %v12159_v50, %v12032_v25 }
 0x54a   : > { %9173 = vmatprep.subr.bf16.mxu1 %v13968_v0  ;;  %v12177_v1 = vrot.slane %v12159_v50, %v12042_v30  ;;  %v12190_v14 = vrot.slane %v12159_v50, %v12066_v44 }
 0x54b   : > { %v1486_v33 = vpack.c.bf16 %v1483_v18, %v1482_v29  ;;  %v11182_v29 = vld [vmem:[%s13901_s6 + $0x48] sm:$0xff]  }
 0x54c   : > { %v1541_v36 = vpop.permute.xlu1 %1540  ;;  %v1667_v56 = vpop.permute.xlu0 %1666 }
 0x54d   : > { %v1547_v39 = vmul.f32 %v12137_v37, %v1541_v36 }
 0x54f   : > { %v1550_v41 = vpack.c.bf16 %v1547_v39, %v1546_v17  ;;  %v12203_v39 = vrot.slane %v12159_v50, %v12082_v53 }
 0x550   : > { %v1605_v19 = vpop.permute.xlu1 %1604  ;;  %v1731_v3 = vpop.permute.xlu0 %1730 }
 0x551   : > { %v1611_v43 = vmul.f32 %v11921_v20, %v1605_v19  ;;  %v1738_v7 = vmul.f32 %v12177_v1, %v1731_v3  ;;  %v11185_v3 = vld [vmem:[%s13901_s6 + $0x60] sm:$0xff]  }
 0x553   : > { %v1614_v49 = vpack.c.bf16 %v1611_v43, %v1610_v48 }
 0x554   : > { %9170 = vmatmul.mubr.msk.bf16.vlgmr.msra.gmra.mrb[4].mxu1 %vm1171_vm5, %v11175_v60  ;;  %v1669_v51 = vpop.permute.xlu1 %1668  ;;  %v1674_v60 = vmul.f32 %v12164_v52, %v1667_v56  ;;  %v1795_v18 = vpop.permute.xlu0 %1794 }
 0x555   : > { %9174 = vmatpush3.bf16.msra.mxu1 %v1358_v62  ;;  %9175 = vmatprep.mubr.msk.bf16.mxu1 %vm11521_vm0, %v13968_v0  ;;  %v1675_v58 = vmul.f32 %v12164_v52, %v1669_v51  ;;  %v11184_v51 = vld [vmem:[%s13901_s6 + $0x58] sm:$0xff]  }
 0x556   : > { %9179 = vmatprep.subr.bf16.mxu1 %v13968_v0 }
 0x557   : > { %v1678_v61 = vpack.c.bf16 %v1675_v58, %v1674_v60  ;;  %v12229_v60 = vrot.slane %v12159_v50, %v12114_v10 }
 0x558   : > { %v1733_v62 = vpop.permute.xlu1 %1732 }
 0x559   : > { %v1739_v4 = vmul.f32 %v12177_v1, %v1733_v62 }
 0x55c   : > { %v1797_v11 = vpop.permute.xlu1 %1796 }
 0x560   : > { %9176 = vmatmul.mubr.msk.bf16.vlgmr.msra.gmra.mrb[4].mxu1 %vm1171_vm5, %v11176_v6  ;;  %v11181_v6 = vld [vmem:[%s13901_s6 + $0x40] sm:$0xff]   ;;  %v1861_v38 = vpop.permute.xlu1 %1860 }
 0x561   : > { %9180 = vmatpush3.bf16.msra.mxu1 %v1422_v8  ;;  %9181 = vmatprep.mubr.msk.bf16.mxu1 %vm11521_vm0, %v13968_v0  ;;  %v1742_v8 = vpack.c.bf16 %v1739_v4, %v1738_v7  ;;  %v1867_v17 = vmul.f32 %v12203_v39, %v1861_v38 }
 0x562   : > { %9185 = vmatprep.subr.bf16.mxu1 %v13968_v0 }
 0x564   : > { %v1925_v43 = vpop.permute.xlu1 %1924 }
 0x56c   : > { %9182 = vmatmul.mubr.msk.bf16.vlgmr.msra.gmra.mrb[4].mxu1 %vm1171_vm5, %v11177_v26  ;;  %v1803_v26 = vmul.f32 %v12190_v14, %v1797_v11 }
 0x56d   : > { %9186 = vmatpush3.bf16.msra.mxu1 %v1486_v33  ;;  %9187 = vmatprep.mubr.msk.bf16.mxu1 %vm11521_vm0, %v13968_v0  ;;  %v1802_v33 = vmul.f32 %v12190_v14, %v1795_v18 }
 0x56e   : > { %9191 = vmatprep.subr.bf16.mxu1 %v13968_v0 }
 0x56f   : > { %v1806_v36 = vpack.c.bf16 %v1803_v26, %v1802_v33  ;;  %v11186_v26 = vld [vmem:[%s13901_s6 + $0x68] sm:$0xff]  }
 0x578   : > { %9188 = vmatmul.mubr.msk.bf16.vlgmr.msra.gmra.mrb[4].mxu1 %vm1171_vm5, %v11178_v40  ;;  %v1859_v40 = vpop.permute.xlu0 %1858 }
 0x579   : > { %9192 = vmatpush3.bf16.msra.mxu1 %v1550_v41  ;;  %9193 = vmatprep.mubr.msk.bf16.mxu1 %vm11521_vm0, %v13968_v0  ;;  %v11183_v41 = vld [vmem:[%s13901_s6 + $0x50] sm:$0xff]   ;;  %v1866_v19 = vmul.f32 %v12203_v39, %v1859_v40  ;;  %v12264_v40 = vrot.slane %v11986_v22, %v12032_v25 }
 0x57a   : > { %9197 = vmatprep.subr.bf16.mxu1 %v13968_v0 }
 0x57b   : > { %v1870_v42 = vpack.c.bf16 %v1867_v17, %v1866_v19 }
 0x57c   : > { %v1923_v48 = vpop.permute.xlu0 %1922 }
 0x584   : > { %9194 = vmatmul.mubr.msk.bf16.vlgmr.msra.gmra.mrb[4].mxu1 %vm1171_vm5, %v11179_v46  ;;  %v12216_v46 = vrot.slane %v12159_v50, %v12098_v63 }
 0x585   : > { %9198 = vmatpush3.bf16.msra.mxu1 %v1614_v49  ;;  %9199 = vmatprep.mubr.msk.bf16.mxu1 %vm11521_vm0, %v13968_v0 }
 0x586   : > { %9203 = vmatprep.subr.bf16.mxu1 %v13968_v0  ;;  %v1931_v49 = vmul.f32 %v12216_v46, %v1925_v43  ;;  %v1930_v56 = vmul.f32 %v12216_v46, %v1923_v48  ;;  %v12277_v43 = vrot.slane %v11986_v22, %v12042_v30 }
 0x588   : > { %v1934_v58 = vpack.c.bf16 %v1931_v49, %v1930_v56 }
 0x590   : > { %9200 = vmatmul.mubr.msk.bf16.vlgmr.msra.gmra.mrb[4].mxu1 %vm1171_vm5, %v11180_v59  ;;  %v1989_v59 = vpop.permute.xlu1 %1988 }
 0x591   : > { %9204 = vmatpush3.bf16.msra.mxu1 %v1678_v61  ;;  %9205 = vmatprep.mubr.msk.bf16.mxu1 %vm11521_vm0, %v13968_v0  ;;  %v1987_v61 = vpop.permute.xlu0 %1986  ;;  %v1995_v62 = vmul.f32 %v12229_v60, %v1989_v59 }
 0x592   : > { %9209 = vmatprep.subr.bf16.mxu1 %v13968_v0  ;;  %v1994_v4 = vmul.f32 %v12229_v60, %v1987_v61  ;;  %v12290_v61 = vrot.slane %v11986_v22, %v12066_v44 }
 0x594   : > { %v2053_v7 = vpop.permute.xlu1 %2052 }
 0x595   : > { %v2051_v11 = vpop.permute.xlu0 %2050 }
 0x598   : > { %v2171_v38 = vpop.permute.xlu1 %2170 }
 0x599   : > { %v2169_v17 = vpop.permute.xlu0 %2168 }
 0x59c   : > { %9206 = vmatmul.mubr.msk.bf16.vlgmr.msra.gmra.mrb[4].mxu1 %vm1171_vm5, %v11181_v6  ;;  %v1998_v6 = vpack.c.bf16 %v1995_v62, %v1994_v4  ;;  %v11190_v4 = vld [vmem:[%s13901_s6 + $0x88] sm:$0xff]  }
 0x59d   : > { %9210 = vmatpush3.bf16.msra.mxu1 %v1742_v8  ;;  %9211 = vmatprep.mubr.msk.bf16.mxu1 %vm11521_vm0, %v13968_v0  ;;  %v12242_v8 = vrot.slane %v12159_v50, %v12130_v35  ;;  %v11187_v50 = vld [vmem:[%s13901_s6 + $0x70] sm:$0xff]   ;;  %v2233_v48 = vpop.permute.xlu0 %2232 }
 0x59e   : > { %9215 = vmatprep.subr.bf16.mxu1 %v13968_v0  ;;  %v2240_v56 = vmul.f32 %v12277_v43, %v2233_v48 }
 0x59f   : > { %v2059_v18 = vmul.f32 %v12242_v8, %v2053_v7 }
 0x5a1   : > { %v2297_v62 = vpop.permute.xlu0 %2296 }
 0x5a8   : > { %9212 = vmatmul.mubr.msk.bf16.vlgmr.msra.gmra.mrb[4].mxu1 %vm1171_vm5, %v11182_v29  ;;  %v2058_v29 = vmul.f32 %v12242_v8, %v2051_v11 }
 0x5a9   : > { %9216 = vmatpush3.bf16.msra.mxu1 %v1806_v36  ;;  %9217 = vmatprep.mubr.msk.bf16.mxu1 %vm11521_vm0, %v13968_v0  ;;  %v2116_v36 = vpack.c.bf16 %v11902_v15, %v11896_v13  ;;  %v11188_v13 = vld [vmem:[%s13901_s6 + $0x78] sm:$0xff]   ;;  %v2176_v15 = vmul.f32 %v12264_v40, %v2169_v17  ;;  %v12316_v17 = vrot.slane %v11986_v22, %v12098_v63 }
 0x5aa   : > { %9221 = vmatprep.subr.bf16.mxu1 %v13968_v0  ;;  %v2062_v33 = vpack.c.bf16 %v2059_v18, %v2058_v29  ;;  %v12303_v18 = vrot.slane %v11986_v22, %v12082_v53 }
 0x5b4   : > { %9218 = vmatmul.mubr.msk.bf16.vlgmr.msra.gmra.mrb[4].mxu1 %vm1171_vm5, %v11183_v41  ;;  %v2177_v41 = vmul.f32 %v12264_v40, %v2171_v38 }
 0x5b5   : > { %9222 = vmatpush3.bf16.msra.mxu1 %v1870_v42  ;;  %9223 = vmatprep.mubr.msk.bf16.mxu1 %vm11521_vm0, %v13968_v0  ;;  %v2235_v42 = vpop.permute.xlu1 %2234 }
 0x5b6   : > { %9227 = vmatprep.subr.bf16.mxu1 %v13968_v0  ;;  %v2180_v19 = vpack.c.bf16 %v2177_v41, %v2176_v15  ;;  %v2241_v49 = vmul.f32 %v12277_v43, %v2235_v42  ;;  %v11192_v15 = vld [vmem:[%s13901_s6 + $0x98] sm:$0xff]  }
 0x5b9   : > { %v2299_v59 = vpop.permute.xlu1 %2298 }
 0x5bd   : > { %v2363_v11 = vpop.permute.xlu1 %2362 }
 0x5be   : > { %v2369_v29 = vmul.f32 %v12303_v18, %v2363_v11 }
 0x5c0   : > { %9224 = vmatmul.mubr.msk.bf16.vlgmr.msra.gmra.mrb[4].mxu1 %vm1171_vm5, %v11184_v51  ;;  %v11189_v51 = vld [vmem:[%s13901_s6 + $0x80] sm:$0xff]  }
 0x5c1   : > { %9228 = vmatpush3.bf16.msra.mxu1 %v1934_v58  ;;  %9229 = vmatprep.mubr.msk.bf16.mxu1 %vm11521_vm0, %v13968_v0  ;;  %v2244_v58 = vpack.c.bf16 %v2241_v49, %v2240_v56  ;;  %v2427_v38 = vpop.permute.xlu1 %2426  ;;  %v631_v49 = vld [vmem:[%s13903_s8 + $0x8] sm:$0xff] }
 0x5c2   : > { %9233 = vmatprep.subr.bf16.mxu1 %v13968_v0  ;;  %1148 = vperm.xlu1 %11171, %v631_v49  }
 0x5c5   : > { %v2491_v48 = vpop.permute.xlu1 %2490 }
 0x5cc   : > { %9230 = vmatmul.mubr.msk.bf16.vlgmr.msra.gmra.mrb[4].mxu1 %vm1171_vm5, %v11185_v3  ;;  %v2305_v3 = vmul.f32 %v12290_v61, %v2299_v59  ;;  %v11193_v59 = vld [vmem:[%s13901_s6 + $0xa0] sm:$0xff]  }
 0x5cd   : > { %9234 = vmatpush3.bf16.msra.mxu1 %v1998_v6  ;;  %9235 = vmatprep.mubr.msk.bf16.mxu1 %vm11521_vm0, %v13968_v0  ;;  %v2304_v6 = vmul.f32 %v12290_v61, %v2297_v62 }
 0x5ce   : > { %9239 = vmatprep.subr.bf16.mxu1 %v13968_v0 }
 0x5cf   : > { %v2308_v7 = vpack.c.bf16 %v2305_v3, %v2304_v6  ;;  %v12345_v6 = vrot.slane %v11986_v22, %v12130_v35 }
 0x5d8   : > { %9236 = vmatmul.mubr.msk.bf16.vlgmr.msra.gmra.mrb[4].mxu1 %vm1171_vm5, %v11186_v26  ;;  %v2361_v26 = vpop.permute.xlu0 %2360 }
 0x5d9   : > { %9240 = vmatpush3.bf16.msra.mxu1 %v2062_v33  ;;  %9241 = vmatprep.mubr.msk.bf16.mxu1 %vm11521_vm0, %v13968_v0  ;;  %v11191_v33 = vld [vmem:[%s13901_s6 + $0x90] sm:$0xff]  }
 0x5da   : > { %9245 = vmatprep.subr.bf16.mxu1 %v13968_v0 }
 0x5dc   : > { %v2425_v41 = vpop.permute.xlu0 %2424 }
 0x5e0   : > { %v2489_v56 = vpop.permute.xlu0 %2488 }
 0x5e4   : > { %9242 = vmatmul.mubr.msk.bf16.vlgmr.msra.gmra.mrb[4].mxu1 %vm1171_vm5, %v11187_v50  ;;  %v2368_v50 = vmul.f32 %v12303_v18, %v2361_v26  ;;  %v11194_v26 = vld [vmem:[%s13901_s6 + $0xa8] sm:$0xff]  }
 0x5e5   : > { %9246 = vmatpush3.bf16.msra.mxu1 %v2116_v36  ;;  %9247 = vmatprep.mubr.msk.bf16.mxu1 %vm11521_vm0, %v13968_v0 }
 0x5e6   : > { %9251 = vmatprep.subr.bf16.mxu1 %v13968_v0  ;;  %v2372_v36 = vpack.c.bf16 %v2369_v29, %v2368_v50 }
 0x5f0   : > { %9248 = vmatmul.mubr.msk.bf16.vlgmr.msra.gmra.mrb[4].mxu1 %vm1171_vm5, %v11188_v13  ;;  %v2433_v13 = vmul.f32 %v12316_v17, %v2427_v38  ;;  %v11195_v38 = vld [vmem:[%s13901_s6 + $0xb0] sm:$0xff]  }
 0x5f1   : > { %9252 = vmatpush3.bf16.msra.mxu1 %v2180_v19  ;;  %9253 = vmatprep.mubr.msk.bf16.mxu1 %vm11521_vm0, %v13968_v0  ;;  %v2432_v19 = vmul.f32 %v12316_v17, %v2425_v41 }
 0x5f2   : > { %9257 = vmatprep.subr.bf16.mxu1 %v13968_v0 }
 0x5f3   : > { %v2436_v42 = vpack.c.bf16 %v2433_v13, %v2432_v19 }
 0x5fc   : > { %9254 = vmatmul.mubr.msk.bf16.vlgmr.msra.gmra.mrb[4].mxu1 %vm1171_vm5, %v11189_v51  ;;  %v12332_v51 = vrot.slane %v11986_v22, %v12114_v10 }
 0x5fd   : > { %9258 = vmatpush3.bf16.msra.mxu1 %v2244_v58  ;;  %9259 = vmatprep.mubr.msk.bf16.mxu1 %vm11521_vm0, %v13968_v0 }
 0x5fe   : > { %9263 = vmatprep.subr.bf16.mxu1 %v13968_v0  ;;  %v2497_v58 = vmul.f32 %v12332_v51, %v2491_v48  ;;  %v2496_v62 = vmul.f32 %v12332_v51, %v2489_v56  ;;  %v11196_v56 = vld [vmem:[%s13901_s6 + $0xb8] sm:$0xff]  }
 0x600   : > { %v2500_v3 = vpack.c.bf16 %v2497_v58, %v2496_v62 }
 0x608   : > { %9260 = vmatmul.mubr.msk.bf16.vlgmr.msra.gmra.mrb[4].mxu1 %vm1171_vm5, %v11190_v4  ;;  %v2555_v4 = vpop.permute.xlu1 %2554 }
 0x609   : > { %9264 = vmatpush3.bf16.msra.mxu1 %v2308_v7  ;;  %9265 = vmatprep.mubr.msk.bf16.mxu1 %vm11521_vm0, %v13968_v0  ;;  %v2553_v7 = vpop.permute.xlu0 %2552  ;;  %v2561_v11 = vmul.f32 %v12345_v6, %v2555_v4 }
 0x60a   : > { %9269 = vmatprep.subr.bf16.mxu1 %v13968_v0  ;;  %v2560_v29 = vmul.f32 %v12345_v6, %v2553_v7 }
 0x60c   : > { %v2619_v22 = vpop.permute.xlu1 %2618 }
 0x60d   : > { %v2617_v50 = vpop.permute.xlu0 %2616 }
 0x60e   : > { %v2624_v41 = vmul.f32 %v11989_v23, %v2617_v50 }
 0x610   : > { %v2683_v19 = vpop.permute.xlu1 %2682 }
 0x611   : > { %v2681_v48 = vpop.permute.xlu0 %2680 }
 0x614   : > { %9266 = vmatmul.mubr.msk.bf16.vlgmr.msra.gmra.mrb[4].mxu1 %vm1171_vm5, %v11191_v33  ;;  %v2564_v33 = vpack.c.bf16 %v2561_v11, %v2560_v29  ;;  %v2747_v62 = vpop.permute.xlu1 %2746  ;;  %v11197_v11 = vld [vmem:[%s13901_s6 + $0xc0] sm:$0xff]  }
 0x615   : > { %9270 = vmatpush3.bf16.msra.mxu1 %v2372_v36  ;;  %9271 = vmatprep.mubr.msk.bf16.mxu1 %vm11521_vm0, %v13968_v0  ;;  %v2625_v36 = vmul.f32 %v11989_v23, %v2619_v22  ;;  %v2745_v4 = vpop.permute.xlu0 %2744 }
 0x616   : > { %9275 = vmatprep.subr.bf16.mxu1 %v13968_v0 }
 0x617   : > { %v2628_v13 = vpack.c.bf16 %v2625_v36, %v2624_v41  ;;  %v11198_v36 = vld [vmem:[%s13901_s6 + $0xc8] sm:$0xff]  }
 0x619   : > { %v2809_v22 = vpop.permute.xlu0 %2808 }
 0x620   : > { %9272 = vmatmul.mubr.msk.bf16.vlgmr.msra.gmra.mrb[4].mxu1 %vm1171_vm5, %v11192_v15  ;;  %v12367_v15 = vld [vmem:[%s13902_s7 + $0x18] sm:$0x7f] }
 0x621   : > { %9276 = vmatpush3.bf16.msra.mxu1 %v2436_v42  ;;  %9277 = vmatprep.mubr.msk.bf16.mxu1 %vm11521_vm0, %v13968_v0  ;;  %v12372_v42 = vrot.slane %v12367_v15, %v12032_v25 }
 0x622   : > { %9281 = vmatprep.subr.bf16.mxu1 %v13968_v0 }
 0x623   : > { %14019 = vst [vmem:[#allocation14_spill] sm:$0xff] %v12372_v42  ;;  %v2689_v49 = vmul.f32 %v12372_v42, %v2683_v19  ;;  %v2688_v58 = vmul.f32 %v12372_v42, %v2681_v48  ;;  %v2873_v19 = vpop.permute.xlu0 %2872 }
 0x62c   : > { %9278 = vmatmul.mubr.msk.bf16.vlgmr.msra.gmra.mrb[4].mxu1 %vm1171_vm5, %v11193_v59  ;;  %v2692_v59 = vpack.c.bf16 %v2689_v49, %v2688_v58  ;;  %v11199_v49 = vld [vmem:[%s13901_s6 + $0xd0] sm:$0xff]  }
 0x62d   : > { %9282 = vmatpush3.bf16.msra.mxu1 %v2500_v3  ;;  %9283 = vmatprep.mubr.msk.bf16.mxu1 %vm11521_vm0, %v13968_v0  ;;  %v12385_v3 = vrot.slane %v12367_v15, %v12042_v30  ;;  %v2811_v30 = vpop.permute.xlu1 %2810 }
 0x62e   : > { %9287 = vmatprep.subr.bf16.mxu1 %v13968_v0 }
 0x62f   : > { %14020 = vst [vmem:[#allocation15_spill] sm:$0xff] %v12385_v3  ;;  %v2753_v7 = vmul.f32 %v12385_v3, %v2747_v62  ;;  %v2937_v62 = vpop.permute.xlu0 %2936 }
 0x638   : > { %9284 = vmatmul.mubr.msk.bf16.vlgmr.msra.gmra.mrb[4].mxu1 %vm1171_vm5, %v11194_v26  ;;  %v2752_v26 = vmul.f32 %v12385_v3, %v2745_v4 }
 0x639   : > { %9288 = vmatpush3.bf16.msra.mxu1 %v2564_v33  ;;  %9289 = vmatprep.mubr.msk.bf16.mxu1 %vm11521_vm0, %v13968_v0  ;;  %v12398_v33 = vrot.slane %v12367_v15, %v12066_v44  ;;  %v2875_v44 = vpop.permute.xlu1 %2874 }
 0x63a   : > { %9293 = vmatprep.subr.bf16.mxu1 %v13968_v0  ;;  %v2756_v29 = vpack.c.bf16 %v2753_v7, %v2752_v26  ;;  %v11200_v7 = vld [vmem:[%s13901_s6 + $0xd8] sm:$0xff]  }
 0x63b   : > { %14021 = vst [vmem:[#allocation16_spill] sm:$0xff] %v12398_v33  ;;  %v2817_v50 = vmul.f32 %v12398_v33, %v2811_v30  ;;  %v3001_v30 = vpop.permute.xlu0 %3000 }
 0x644   : > { %9290 = vmatmul.mubr.msk.bf16.vlgmr.msra.gmra.mrb[4].mxu1 %vm1171_vm5, %v11195_v38  ;;  %v2816_v38 = vmul.f32 %v12398_v33, %v2809_v22 }
 0x645   : > { %9294 = vmatpush3.bf16.msra.mxu1 %v2628_v13  ;;  %9295 = vmatprep.mubr.msk.bf16.mxu1 %vm11521_vm0, %v13968_v0  ;;  %v12411_v13 = vrot.slane %v12367_v15, %v12082_v53  ;;  %v2939_v53 = vpop.permute.xlu1 %2938 }
 0x646   : > { %9299 = vmatprep.subr.bf16.mxu1 %v13968_v0  ;;  %v2820_v41 = vpack.c.bf16 %v2817_v50, %v2816_v38  ;;  %v11201_v50 = vld [vmem:[%s13901_s6 + $0xe0] sm:$0xff]  }
 0x647   : > { %14022 = vst [vmem:[#allocation17_spill] sm:$0xff] %v12411_v13  ;;  %v2881_v48 = vmul.f32 %v12411_v13, %v2875_v44  ;;  %v3065_v44 = vpop.permute.xlu0 %3064 }
 0x650   : > { %9296 = vmatmul.mubr.msk.bf16.vlgmr.msra.gmra.mrb[4].mxu1 %vm1171_vm5, %v11196_v56  ;;  %v2880_v56 = vmul.f32 %v12411_v13, %v2873_v19 }
 0x651   : > { %9300 = vmatpush3.bf16.msra.mxu1 %v2692_v59  ;;  %9301 = vmatprep.mubr.msk.bf16.mxu1 %vm11521_vm0, %v13968_v0  ;;  %v12424_v59 = vrot.slane %v12367_v15, %v12098_v63  ;;  %v3003_v63 = vpop.permute.xlu1 %3002 }
 0x652   : > { %9305 = vmatprep.subr.bf16.mxu1 %v13968_v0  ;;  %v2884_v58 = vpack.c.bf16 %v2881_v48, %v2880_v56  ;;  %v11202_v48 = vld [vmem:[%s13901_s6 + $0xe8] sm:$0xff]  }
 0x653   : > { %14023 = vst [vmem:[#allocation18_spill] sm:$0xff] %v12424_v59  ;;  %v2945_v4 = vmul.f32 %v12424_v59, %v2939_v53 }
 0x65c   : > { %9302 = vmatmul.mubr.msk.bf16.vlgmr.msra.gmra.mrb[4].mxu1 %vm1171_vm5, %v11197_v11  ;;  %v2944_v11 = vmul.f32 %v12424_v59, %v2937_v62 }
 0x65d   : > { %9306 = vmatpush3.bf16.msra.mxu1 %v2756_v29  ;;  %9307 = vmatprep.mubr.msk.bf16.mxu1 %vm11521_vm0, %v13968_v0  ;;  %v12437_v29 = vrot.slane %v12367_v15, %v12114_v10  ;;  %v3067_v10 = vpop.permute.xlu1 %3066 }
 0x65e   : > { %9311 = vmatprep.subr.bf16.mxu1 %v13968_v0  ;;  %v2948_v26 = vpack.c.bf16 %v2945_v4, %v2944_v11 }
 0x65f   : > { %14024 = vst [vmem:[#allocation19_spill] sm:$0xff] %v12437_v29  ;;  %v3009_v22 = vmul.f32 %v12437_v29, %v3003_v63 }
 0x661   : > { %v12469_v53 = vpop.permute.xlu1 %1148 }
 0x662   : > { %14027 = vst [vmem:[#allocation22_spill] sm:$0xff] %v12469_v53 }
 0x668   : > { %9308 = vmatmul.mubr.msk.bf16.vlgmr.msra.gmra.mrb[4].mxu1 %vm1171_vm5, %v11198_v36  ;;  %v3008_v36 = vmul.f32 %v12437_v29, %v3001_v30 }
 0x669   : > { %9312 = vmatpush3.bf16.msra.mxu1 %v2820_v41  ;;  %9313 = vmatprep.mubr.msk.bf16.mxu1 %vm11521_vm0, %v13968_v0  ;;  %v12450_v41 = vrot.slane %v12367_v15, %v12130_v35  ;;  %v11203_v35 = vld [vmem:[%s13901_s6 + $0xf0] sm:$0xff]   ;;  %v12467_v15 = vpop.permute.xlu0 %1143 }
 0x66a   : > { %9317 = vmatprep.subr.bf16.mxu1 %v13968_v0  ;;  %v3012_v38 = vpack.c.bf16 %v3009_v22, %v3008_v36  ;;  %14026 = vst [vmem:[#allocation21_spill] sm:$0xff] %v12467_v15 }
 0x66b   : > { %14025 = vst [vmem:[#allocation20_spill] sm:$0xff] %v12450_v41  ;;  %v3073_v19 = vmul.f32 %v12450_v41, %v3067_v10 }
 0x674   : > { %9314 = vmatmul.mubr.msk.bf16.vlgmr.msra.gmra.mrb[4].mxu1 %vm1171_vm5, %v11199_v49  ;;  %v3072_v49 = vmul.f32 %v12450_v41, %v3065_v44 }
 0x675   : > { %9318 = vmatpush3.bf16.msra.mxu1 %v2884_v58  ;;  %9319 = vmatprep.mubr.msk.bf16.mxu1 %vm11521_vm0, %v13968_v0 }
 0x676   : > { %9323 = vmatprep.subr.bf16.mxu1 %v13968_v0  ;;  %v3076_v56 = vpack.c.bf16 %v3073_v19, %v3072_v49 }
 0x680   : > { %9320 = vmatmul.mubr.msk.bf16.vlgmr.msra.gmra.mrb[4].mxu1 %vm1171_vm5, %v11200_v7 }
 0x681   : > { %9324 = vmatpush3.bf16.msra.mxu1 %v2948_v26  ;;  %9325 = vmatprep.mubr.msk.bf16.mxu1 %vm11521_vm0, %v13968_v0 }
 0x682   : > { %9329 = vmatprep.subr.bf16.mxu1 %v13968_v0 }
 0x68c   : > { %9326 = vmatmul.mubr.msk.bf16.vlgmr.msra.gmra.mrb[4].mxu1 %vm1171_vm5, %v11201_v50 }
 0x68d   : > { %9330 = vmatpush3.bf16.msra.mxu1 %v3012_v38  ;;  %9331 = vmatprep.mubr.msk.bf16.mxu1 %vm11521_vm0, %v13968_v0 }
 0x68e   : > { %9335 = vmatprep.subr.bf16.mxu1 %v13968_v0 }
 0x698   : > { %9332 = vmatmul.mubr.msk.bf16.vlgmr.msra.gmra.mrb[4].mxu1 %vm1171_vm5, %v11202_v48 }
 0x699   : > { %9336 = vmatpush3.bf16.msra.mxu1 %v3076_v56  ;;  %9337 = vmatprep.mubr.msk.bf16.mxu1 %vm11521_vm0, %v13968_v0 }
 0x69a   : > { %9897 = vmatprep.subr.bf16.mxu1 %v13968_v0 }
 0x6a4   : > { %9338 = vmatmul.mubr.msk.bf16.vlgmr.msra.gmra.mrb[4].mxu1 %vm1171_vm5, %v11203_v35 }
 0x6a5   : > { %9913 = vmatprep.mubr.msk.bf16.mxu1 %vm11521_vm0, %v13968_v0 }
 0x777   : > { %v3119_v58 = vpop.f32.mrb[4].mxu1 }
 0x778   : > { %v10791_v62 = vadd.f32 %v3119_v58, %v12467_v15  ;;  %v9339_v4 = vpop.f32.mrb[5].mxu1 }
 0x779   : > { %v3122_v7 = vpop.f32.mrb[6].mxu1 }
 0x77a   : > { %v10792_v11 = vadd.f32 %v3122_v7, %v12469_v53  ;;  %v9340_v26 = vpop.f32.mrb[7].mxu1  ;;  %9373 = vmatprep.mubr.f32.mxu0 %v10791_v62 }
 0x77c   : > { %9374 = vmatmul.mubr.f32.vlgmr.msra.gmra.mrb[8].mxu0 %v10792_v11 }
 0x77d   : > { %10470 = vmatpush3.bf16.msra.mxu0 %v11723_v5 }
 0x77e   : > { %10472 = vmatprep.subr.bf16.mxu0 %v11734_v9 }
 0x781   : > { %10474 = vmatpush3.bf16.msra.mxu0 %v11734_v9 }
 0x782   : > { %10476 = vmatprep.subr.bf16.mxu0 %v11754_v16 }
 0x785   : > { %10478 = vmatpush3.bf16.msra.mxu0 %v11754_v16 }
 0x786   : > { %10480 = vmatprep.subr.bf16.mxu0 %v11767_v21 }
 0x789   : > { %10482 = vmatpush3.bf16.msra.mxu0 %v11767_v21 }
 0x78a   : > { %10484 = vmatprep.subr.bf16.mxu0 %v11780_v24 }
 0x78d   : > { %10486 = vmatpush3.bf16.msra.mxu0 %v11780_v24 }
 0x78e   : > { %10488 = vmatprep.subr.bf16.mxu0 %v11790_v27 }
 0x791   : > { %10490 = vmatpush3.bf16.msra.mxu0 %v11790_v27 }
 0x792   : > { %10492 = vmatprep.subr.bf16.mxu0 %v11794_v28 }
 0x795   : > { %10494 = vmatpush3.bf16.msra.mxu0 %v11794_v28 }
 0x796   : > { %10496 = vmatprep.subr.bf16.mxu0 %v11805_v31 }
 0x799   : > { %10498 = vmatpush3.bf16.msra.mxu0 %v11805_v31 }
 0x79a   : > { %10500 = vmatprep.subr.bf16.mxu0 %v11723_v5 }
 0x84f   : > { %v9375_v63 = vpop.f32.mrb[8].mxu0 }
 0x850   : > { %v3204_v30 = vsub.f32 %v10792_v11, %v9375_v63  ;;  %v3194_v22 = vpop.f32.mrb[9].mxu0  ;;  %v12515_v11 = vld [vmem:[%s13905_s10] ss:$0 sm:$0xff] }
 0x851   : > { %v3203_v50 = vsub.f32 %v10791_v62, %v3194_v22  ;;  %v12508_v62 = vld [vmem:[%s13904_s9] ss:$0 sm:$0xff] }
 0x852   : > { %v3206_v38 = vmul.f32 %v3204_v30, %v3204_v30 }
 0x853   : > { %v3205_v36 = vmul.f32 %v3203_v50, %v3203_v50 }
 0x855   : > { %9408 = vmatprep.mubr.f32.mxu0 %v3205_v36 }
 0x856   : > { %9409 = vmatmul.mubr.f32.vlgmr.msra.gmra.mrb[10].mxu0 %v3206_v38 }
 0x857   : > { %10502 = vmatpush3.bf16.msra.mxu0 %v11723_v5 }
 0x858   : > { %10504 = vmatprep.subr.bf16.mxu0 %v11734_v9 }
 0x85b   : > { %10506 = vmatpush3.bf16.msra.mxu0 %v11734_v9 }
 0x85c   : > { %10508 = vmatprep.subr.bf16.mxu0 %v11754_v16 }
 0x85f   : > { %10510 = vmatpush3.bf16.msra.mxu0 %v11754_v16 }
 0x860   : > { %10512 = vmatprep.subr.bf16.mxu0 %v11767_v21 }
 0x863   : > { %10514 = vmatpush3.bf16.msra.mxu0 %v11767_v21 }
 0x864   : > { %10516 = vmatprep.subr.bf16.mxu0 %v11780_v24 }
 0x867   : > { %10518 = vmatpush3.bf16.msra.mxu0 %v11780_v24 }
 0x868   : > { %10520 = vmatprep.subr.bf16.mxu0 %v11790_v27 }
 0x86b   : > { %10522 = vmatpush3.bf16.msra.mxu0 %v11790_v27 }
 0x86c   : > { %10524 = vmatprep.subr.bf16.mxu0 %v11794_v28 }
 0x86f   : > { %10526 = vmatpush3.bf16.msra.mxu0 %v11794_v28 }
 0x870   : > { %10528 = vmatprep.subr.bf16.mxu0 %v11805_v31 }
 0x873   : > { %10530 = vmatpush3.bf16.msra.mxu0 %v11805_v31 }
 0x874   : > { %10532 = vmatprep.subr.bf16.mxu0 %v11723_v5 }
 0x929   : > { %v9410_v10 = vpop.f32.mrb[10].mxu0 }
 0x92a   : > { %v3279_v44 = vadd.f32 1e-05, %v9410_v10  ;;  %v3273_v19 = vpop.f32.mrb[11].mxu0 }
 0x92b   : > { %v3274_v48 = vadd.f32 1e-05, %v3273_v19 }
 0x92c   : > { %11362 = vrsqrt.f32 %v3279_v44 }
 0x92d   : > { %11364 = vrsqrt.f32 %v3274_v48 }
 0x936   : > { %v11363_v49 = vpop.eup %11362 }
 0x937   : > { %v11365_v56 = vpop.eup %11364  ;;  %v3285_v35 = vmul.f32 %v11363_v49, %v3204_v30 }
 0x938   : > { %v3284_v58 = vmul.f32 %v11365_v56, %v3203_v50 }
 0x939   : > { %v3287_v4 = vmul.f32 %v12508_v62, %v3285_v35 }
 0x93a   : > { %v3286_v7 = vmul.f32 %v12508_v62, %v3284_v58 }
 0x93b   : > { %v3289_v26 = vadd.f32 %v12515_v11, %v3287_v4 }
 0x93c   : > { %v3288_v63 = vadd.f32 %v12515_v11, %v3286_v7 }
 0x93d   : > { %v3293_v30 = vmul.f32 0.70710677, %v3289_v26 }
 0x93e   : > { %v3292_v22 = vmul.f32 0.70710677, %v3288_v63 }
 0x93f   : > { %v3299_v50 = vand.u32 2147483647, %v3293_v30  ;;  %vm3295_vm6 = vcmp.ge.f32.partialorder %v3293_v30, 0.0 }
 0x940   : > { %v3298_v36 = vand.u32 2147483647, %v3292_v22  ;;  %vm3294_vm7 = vcmp.ge.f32.partialorder %v3292_v22, 0.0 }
 0x941   : > { %v3301_v38 = vmul.f32 0.3275911, %v3299_v50  ;;  %v3327_v48 = vsub.f32 0.0, %v3299_v50 }
 0x942   : > { %v3300_v10 = vmul.f32 0.3275911, %v3298_v36  ;;  %v3326_v49 = vsub.f32 0.0, %v3298_v36 }
 0x943   : > { %v3303_v44 = vadd.f32 1.0, %v3301_v38  ;;  %v3329_v35 = vmul.f32 %v3327_v48, %v3299_v50 }
 0x944   : > { %v3302_v19 = vadd.f32 1.0, %v3300_v10  ;;  %v3328_v0 = vmul.f32 %v3326_v49, %v3298_v36 }
 0x945   : > { %11366 = vrcp.f32 %v3303_v44  ;;  %v3332_v53 = vmul.f32 1.442695, %v3329_v35 }
 0x946   : > { %11368 = vrcp.f32 %v3302_v19  ;;  %v3330_v15 = vmul.f32 1.442695, %v3328_v0 }
 0x947   : > { %11370 = vpow2.f32 %v3332_v53  ;;  %v14028_v53 = vmov -1.0  }
 0x948   : > { %11372 = vpow2.f32 %v3330_v15  ;;  %v3297_v15 = vsel %vm3295_vm6, 1.0, %v14028_v53 }
 0x94f   : > { %v11367_v56 = vpop.eup %11366 }
 0x950   : > { %v11369_v58 = vpop.eup %11368  ;;  %v3309_v45 = vmul.f32 1.0614054, %v11367_v56 }
 0x951   : > { %v3308_v4 = vmul.f32 1.0614054, %v11369_v58  ;;  %v11371_v3 = vpop.eup %11370 }
 0x952   : > { %v3311_v25 = vadd.f32 -1.4531521, %v3309_v45 }
 0x953   : > { %v3310_v7 = vadd.f32 -1.4531521, %v3308_v4  ;;  %v11373_v4 = vpop.eup %11372 }
 0x954   : > { %v3313_v41 = vmul.f32 %v11367_v56, %v3311_v25 }
 0x955   : > { %v3312_v29 = vmul.f32 %v11369_v58, %v3310_v7  ;;  %v3291_v7 = vmul.f32 0.5, %v3289_v26  ;;  %v11205_v26 = vld [vmem:[%s13906_s11 + $0x8] sm:$0xff]  }
 0x956   : > { %v3315_v59 = vadd.f32 1.4214138, %v3313_v41 }
 0x957   : > { %v3314_v13 = vadd.f32 1.4214138, %v3312_v29 }
 0x958   : > { %v3317_v38 = vmul.f32 %v11367_v56, %v3315_v59 }
 0x959   : > { %v3316_v10 = vmul.f32 %v11369_v58, %v3314_v13  ;;  %v3296_v13 = vsel %vm3294_vm7, 1.0, %v14028_v53 }
 0x95a   : > { %v3319_v44 = vadd.f32 -0.28449672, %v3317_v38 }
 0x95b   : > { %v3318_v19 = vadd.f32 -0.28449672, %v3316_v10 }
 0x95c   : > { %v3321_v33 = vmul.f32 %v11367_v56, %v3319_v44 }
 0x95d   : > { %v3320_v50 = vmul.f32 %v11369_v58, %v3318_v19 }
 0x95e   : > { %v3323_v48 = vadd.f32 0.2548296, %v3321_v33  ;;  %v3290_v33 = vmul.f32 0.5, %v3288_v63 }
 0x95f   : > { %v3322_v36 = vadd.f32 0.2548296, %v3320_v50 }
 0x960   : > { %v3325_v49 = vmul.f32 %v11367_v56, %v3323_v48 }
 0x961   : > { %v3324_v45 = vmul.f32 %v11369_v58, %v3322_v36  ;;  %v11206_v36 = vld [vmem:[%s13906_s11 + $0x10] sm:$0xff]  }
 0x962   : > { %v3335_v0 = vmul.f32 %v11371_v3, %v3325_v49  ;;  %v11207_v49 = vld [vmem:[%s13906_s11 + $0x18] sm:$0xff]  }
 0x963   : > { %v3334_v25 = vmul.f32 %v11373_v4, %v3324_v45  ;;  %v11208_v45 = vld [vmem:[%s13906_s11 + $0x20] sm:$0xff]   ;;  %v11209_v4 = vld [vmem:[%s13906_s11 + $0x28] sm:$0xff]  }
 0x964   : > { %v3337_v41 = vsub.f32 1.0, %v3335_v0  ;;  %v11210_v0 = vld [vmem:[%s13906_s11 + $0x30] sm:$0xff]  }
 0x965   : > { %v3336_v29 = vsub.f32 1.0, %v3334_v25  ;;  %v11211_v25 = vld [vmem:[%s13906_s11 + $0x38] sm:$0xff]  }
 0x966   : > { %v3339_v59 = vmul.f32 %v3337_v41, %v3297_v15 }
 0x967   : > { %v3338_v35 = vmul.f32 %v3336_v29, %v3296_v13 }
 0x968   : > { %v3341_v38 = vadd.f32 1.0, %v3339_v59 }
 0x969   : > { %v3340_v10 = vadd.f32 1.0, %v3338_v35 }
 0x96a   : > { %v3343_v56 = vmul.f32 %v3341_v38, %v3291_v7 }
 0x96b   : > { %v3342_v44 = vmul.f32 %v3340_v10, %v3290_v33 }
 0x96c   : > { %v12525_v3 = vadd.f32 %v3343_v56, %v11852_v55  ;;  %v11204_v55 = vld [vmem:[%s13906_s11] sm:$0xff]  }
 0x96d   : > { %v12522_v58 = vadd.f32 %v3342_v44, %v11850_v54  ;;  %v14029_v54 = vmov 0.0   ;;  %9898 = vmatpush3.bf16.msra.mxu1 %v11204_v55 }
 0x96e   : > { %9899 = vmatprep.subr.bf16.mxu1 %v14029_v54 }
 0x96f   : > { %9443 = vmatprep.mubr.f32.mxu0 %v12522_v58 }
 0x970   : > { %9444 = vmatmul.mubr.f32.vlgmr.msra.gmra.mrb[12].mxu0 %v12525_v3 }
 0x971   : > { %10534 = vmatpush3.bf16.msra.mxu0 %v11723_v5  ;;  %9900 = vmatpush3.bf16.msra.mxu1 %v11205_v26 }
 0x972   : > { %10536 = vmatprep.subr.bf16.mxu0 %v11734_v9  ;;  %9901 = vmatprep.subr.bf16.mxu1 %v14029_v54 }
 0x975   : > { %10538 = vmatpush3.bf16.msra.mxu0 %v11734_v9  ;;  %9902 = vmatpush3.bf16.msra.mxu1 %v11206_v36 }
 0x976   : > { %10540 = vmatprep.subr.bf16.mxu0 %v11754_v16  ;;  %9903 = vmatprep.subr.bf16.mxu1 %v14029_v54 }
 0x979   : > { %10542 = vmatpush3.bf16.msra.mxu0 %v11754_v16  ;;  %9904 = vmatpush3.bf16.msra.mxu1 %v11207_v49 }
 0x97a   : > { %10544 = vmatprep.subr.bf16.mxu0 %v11767_v21  ;;  %9905 = vmatprep.subr.bf16.mxu1 %v14029_v54 }
 0x97d   : > { %10546 = vmatpush3.bf16.msra.mxu0 %v11767_v21  ;;  %9906 = vmatpush3.bf16.msra.mxu1 %v11208_v45 }
 0x97e   : > { %10548 = vmatprep.subr.bf16.mxu0 %v11780_v24  ;;  %9907 = vmatprep.subr.bf16.mxu1 %v14029_v54 }
 0x981   : > { %10550 = vmatpush3.bf16.msra.mxu0 %v11780_v24  ;;  %9908 = vmatpush3.bf16.msra.mxu1 %v11209_v4 }
 0x982   : > { %10552 = vmatprep.subr.bf16.mxu0 %v11790_v27  ;;  %9909 = vmatprep.subr.bf16.mxu1 %v14029_v54 }
 0x985   : > { %10554 = vmatpush3.bf16.msra.mxu0 %v11790_v27  ;;  %9910 = vmatpush3.bf16.msra.mxu1 %v11210_v0 }
 0x986   : > { %10556 = vmatprep.subr.bf16.mxu0 %v11794_v28  ;;  %9911 = vmatprep.subr.bf16.mxu1 %v14029_v54 }
 0x989   : > { %10558 = vmatpush3.bf16.msra.mxu0 %v11794_v28  ;;  %9912 = vmatpush3.bf16.msra.mxu1 %v11211_v25 }
 0x98a   : > { %10560 = vmatprep.subr.bf16.mxu0 %v11805_v31  ;;  %9917 = vmatprep.subr.bf16.mxu1 %v14029_v54 }
 0x98d   : > { %10562 = vmatpush3.bf16.msra.mxu0 %v11805_v31 }
 0x98e   : > { %9481 = vmatprep.subr.bf16.mxu0 %v14029_v54 }
 0xa43   : > { %v9445_v63 = vpop.f32.mrb[12].mxu0 }
 0xa44   : > { %v3422_v30 = vsub.f32 %v12525_v3, %v9445_v63  ;;  %v3412_v22 = vpop.f32.mrb[13].mxu0 }
 0xa45   : > { %v3421_v19 = vsub.f32 %v12522_v58, %v3412_v22 }
 0xa46   : > { %v3424_v48 = vmul.f32 %v3422_v30, %v3422_v30 }
 0xa47   : > { %v3423_v50 = vmul.f32 %v3421_v19, %v3421_v19 }
 0xa49   : > { %9478 = vmatprep.mubr.f32.mxu0 %v3423_v50 }
 0xa4a   : > { %9479 = vmatmul.mubr.f32.vlgmr.msra.gmra.mrb[14].mxu0 %v3424_v48 }
 0xa4b   : > { %9482 = vmatpush3.bf16.msra.mxu0 %v11204_v55  ;;  %9497 = vmatprep.mubr.msk.bf16.mxu0 %vm11521_vm0, %v14029_v54 }
 0xa4c   : > { %9483 = vmatprep.subr.bf16.mxu0 %v14029_v54 }
 0xa4f   : > { %9484 = vmatpush3.bf16.msra.mxu0 %v11205_v26  ;;  %v8015_v26 = vld [vmem:[%s13907_s12] ss:$0 sm:$0xff] }
 0xa50   : > { %9485 = vmatprep.subr.bf16.mxu0 %v14029_v54 }
 0xa53   : > { %9486 = vmatpush3.bf16.msra.mxu0 %v11206_v36 }
 0xa54   : > { %9487 = vmatprep.subr.bf16.mxu0 %v14029_v54 }
 0xa57   : > { %9488 = vmatpush3.bf16.msra.mxu0 %v11207_v49 }
 0xa58   : > { %9489 = vmatprep.subr.bf16.mxu0 %v14029_v54 }
 0xa5b   : > { %9490 = vmatpush3.bf16.msra.mxu0 %v11208_v45 }
 0xa5c   : > { %9491 = vmatprep.subr.bf16.mxu0 %v14029_v54 }
 0xa5f   : > { %9492 = vmatpush3.bf16.msra.mxu0 %v11209_v4 }
 0xa60   : > { %9493 = vmatprep.subr.bf16.mxu0 %v14029_v54 }
 0xa63   : > { %9494 = vmatpush3.bf16.msra.mxu0 %v11210_v0 }
 0xa64   : > { %9495 = vmatprep.subr.bf16.mxu0 %v14029_v54 }
 0xa67   : > { %9496 = vmatpush3.bf16.msra.mxu0 %v11211_v25 }
 0xa68   : > { %10564 = vmatprep.subr.bf16.mxu0 %v11723_v5 }
 0xb1d   : > { %v9480_v41 = vpop.f32.mrb[14].mxu0 }
 0xb1e   : > { %v3497_v29 = vadd.f32 1e-05, %v9480_v41  ;;  %v3491_v15 = vpop.f32.mrb[15].mxu0 }
 0xb1f   : > { %v3492_v13 = vadd.f32 1e-05, %v3491_v15 }
 0xb20   : > { %11374 = vrsqrt.f32 %v3497_v29 }
 0xb21   : > { %11376 = vrsqrt.f32 %v3492_v13 }
 0xb2a   : > { %v11375_v59 = vpop.eup %11374 }
 0xb2b   : > { %v11377_v35 = vpop.eup %11376  ;;  %v3503_v7 = vmul.f32 %v11375_v59, %v3422_v30 }
 0xb2c   : > { %v3502_v38 = vmul.f32 %v11377_v35, %v3421_v19 }
 0xb2d   : > { %v3505_v33 = vmul.f32 %v12508_v62, %v3503_v7 }
 0xb2e   : > { %v3504_v10 = vmul.f32 %v12508_v62, %v3502_v38 }
 0xb2f   : > { %v3507_v56 = vadd.f32 %v12515_v11, %v3505_v33 }
 0xb30   : > { %v3506_v44 = vadd.f32 %v12515_v11, %v3504_v10 }
 0xb32   : > { %v3508_v55 = vpack.c.bf16 %v3507_v56, %v3506_v44 }
 0xb34   : > { %9498 = vmatmul.mubr.bf16.vlgmr.msra.gmra.mrb[16].mxu0 %v3508_v55 }
 0xb35   : > { %10566 = vmatpush3.bf16.msra.mxu0 %v11723_v5 }
 0xb36   : > { %10568 = vmatprep.subr.bf16.mxu0 %v11734_v9 }
 0xb39   : > { %10570 = vmatpush3.bf16.msra.mxu0 %v11734_v9 }
 0xb3a   : > { %10572 = vmatprep.subr.bf16.mxu0 %v11754_v16 }
 0xb3d   : > { %10574 = vmatpush3.bf16.msra.mxu0 %v11754_v16 }
 0xb3e   : > { %10576 = vmatprep.subr.bf16.mxu0 %v11767_v21 }
 0xb41   : > { %10578 = vmatpush3.bf16.msra.mxu0 %v11767_v21 }
 0xb42   : > { %10580 = vmatprep.subr.bf16.mxu0 %v11780_v24 }
 0xb45   : > { %10582 = vmatpush3.bf16.msra.mxu0 %v11780_v24 }
 0xb46   : > { %10584 = vmatprep.subr.bf16.mxu0 %v11790_v27 }
 0xb49   : > { %10586 = vmatpush3.bf16.msra.mxu0 %v11790_v27 }
 0xb4a   : > { %10588 = vmatprep.subr.bf16.mxu0 %v11794_v28 }
 0xb4d   : > { %10590 = vmatpush3.bf16.msra.mxu0 %v11794_v28 }
 0xb4e   : > { %10592 = vmatprep.subr.bf16.mxu0 %v11805_v31 }
 0xb51   : > { %10594 = vmatpush3.bf16.msra.mxu0 %v11805_v31 }
 0xb52   : > { %10596 = vmatprep.subr.bf16.mxu0 %v11723_v5 }
 0xc07   : > { %v3597_v63 = vpop.f32.mrb[16].mxu0 }
 0xc08   : > { %v3598_v30 = vadd.f32 %v8015_v26, %v3597_v63  ;;  %v9499_v22 = vpop.f32.mrb[17].mxu0 }
 0xc09   : > { %v3600_v19 = vpop.f32.mrb[18].mxu0 }
 0xc0a   : > { %v3606_v50 = vmul.f32 0.70710677, %v3598_v30  ;;  %v3601_v48 = vadd.f32 %v8015_v26, %v3600_v19  ;;  %v9500_v36 = vpop.f32.mrb[19].mxu0 }
 0xc0c   : > { %v3612_v49 = vand.u32 2147483647, %v3606_v50  ;;  %v3607_v45 = vmul.f32 0.70710677, %v3601_v48  ;;  %vm3608_vm8 = vcmp.ge.f32.partialorder %v3606_v50, 0.0 }
 0xc0e   : > { %v3614_v4 = vmul.f32 0.3275911, %v3612_v49  ;;  %v3613_v0 = vand.u32 2147483647, %v3607_v45  ;;  %v3640_v15 = vsub.f32 0.0, %v3612_v49  ;;  %vm3609_vm9 = vcmp.ge.f32.partialorder %v3607_v45, 0.0 }
 0xc10   : > { %v3616_v25 = vadd.f32 1.0, %v3614_v4  ;;  %v3615_v41 = vmul.f32 0.3275911, %v3613_v0  ;;  %v3641_v13 = vsub.f32 0.0, %v3613_v0  ;;  %v3642_v35 = vmul.f32 %v3640_v15, %v3612_v49 }
 0xc12   : > { %11378 = vrcp.f32 %v3616_v25  ;;  %v3617_v29 = vadd.f32 1.0, %v3615_v41  ;;  %v3643_v10 = vmul.f32 %v3641_v13, %v3613_v0  ;;  %v3644_v56 = vmul.f32 1.442695, %v3642_v35 }
 0xc14   : > { %11380 = vrcp.f32 %v3617_v29  ;;  %v3646_v22 = vmul.f32 1.442695, %v3643_v10  ;;  %v3610_v10 = vsel %vm3608_vm8, 1.0, %v14028_v53 }
 0xc15   : > { %11382 = vpow2.f32 %v3644_v56 }
 0xc16   : > { %11384 = vpow2.f32 %v3646_v22 }
 0xc1c   : > { %v11379_v59 = vpop.eup %11378 }
 0xc1d   : > { %v3622_v7 = vmul.f32 1.0614054, %v11379_v59 }
 0xc1e   : > { %v11381_v38 = vpop.eup %11380 }
 0xc1f   : > { %v3624_v33 = vadd.f32 -1.4531521, %v3622_v7  ;;  %v3623_v44 = vmul.f32 1.0614054, %v11381_v38  ;;  %v11383_v7 = vpop.eup %11382 }
 0xc21   : > { %v3626_v55 = vmul.f32 %v11379_v59, %v3624_v33  ;;  %v3625_v26 = vadd.f32 -1.4531521, %v3623_v44  ;;  %v11385_v33 = vpop.eup %11384 }
 0xc23   : > { %v3628_v63 = vadd.f32 1.4214138, %v3626_v55  ;;  %v3627_v19 = vmul.f32 %v11381_v38, %v3625_v26 }
 0xc25   : > { %v3630_v36 = vmul.f32 %v11379_v59, %v3628_v63  ;;  %v3629_v4 = vadd.f32 1.4214138, %v3627_v19  ;;  %v3604_v63 = vmul.f32 0.5, %v3598_v30  ;;  %v3611_v19 = vsel %vm3609_vm9, 1.0, %v14028_v53 }
 0xc27   : > { %v3632_v25 = vadd.f32 -0.28449672, %v3630_v36  ;;  %v3631_v41 = vmul.f32 %v11381_v38, %v3629_v4 }
 0xc29   : > { %v3634_v29 = vmul.f32 %v11379_v59, %v3632_v25  ;;  %v3633_v42 = vadd.f32 -0.28449672, %v3631_v41 }
 0xc2b   : > { %v3636_v49 = vadd.f32 0.2548296, %v3634_v29  ;;  %v3635_v15 = vmul.f32 %v11381_v38, %v3633_v42 }
 0xc2d   : > { %v3638_v23 = vmul.f32 %v11379_v59, %v3636_v49  ;;  %v3637_v0 = vadd.f32 0.2548296, %v3635_v15  ;;  %v3605_v59 = vmul.f32 0.5, %v3601_v48 }
 0xc2f   : > { %v3648_v13 = vmul.f32 %v11383_v7, %v3638_v23  ;;  %v3639_v35 = vmul.f32 %v11381_v38, %v3637_v0 }
 0xc31   : > { %v3650_v44 = vsub.f32 1.0, %v3648_v13  ;;  %v3649_v56 = vmul.f32 %v11385_v33, %v3639_v35 }
 0xc33   : > { %v3652_v55 = vmul.f32 %v3650_v44, %v3610_v10  ;;  %v3651_v26 = vsub.f32 1.0, %v3649_v56 }
 0xc35   : > { %v3654_v22 = vadd.f32 1.0, %v3652_v55  ;;  %v3653_v36 = vmul.f32 %v3651_v26, %v3611_v19 }
 0xc37   : > { %v3656_v42 = vmul.f32 %v3654_v22, %v3604_v63  ;;  %v3655_v4 = vadd.f32 1.0, %v3653_v36 }
 0xc39   : > { %v12615_v50 = vadd.f32 %v3656_v42, %v12522_v58  ;;  %v3657_v23 = vmul.f32 %v3655_v4, %v3605_v59 }
 0xc3b   : > { %9533 = vmatprep.mubr.f32.mxu0 %v12615_v50  ;;  %v12619_v38 = vadd.f32 %v3657_v23, %v12525_v3 }
 0xc3d   : > { %9534 = vmatmul.mubr.f32.vlgmr.msra.gmra.mrb[20].mxu0 %v12619_v38 }
 0xc3e   : > { %10598 = vmatpush3.bf16.msra.mxu0 %v11723_v5 }
 0xc3f   : > { %10600 = vmatprep.subr.bf16.mxu0 %v11734_v9 }
 0xc42   : > { %10602 = vmatpush3.bf16.msra.mxu0 %v11734_v9 }
 0xc43   : > { %10604 = vmatprep.subr.bf16.mxu0 %v11754_v16 }
 0xc46   : > { %10606 = vmatpush3.bf16.msra.mxu0 %v11754_v16 }
 0xc47   : > { %10608 = vmatprep.subr.bf16.mxu0 %v11767_v21 }
 0xc4a   : > { %10610 = vmatpush3.bf16.msra.mxu0 %v11767_v21 }
 0xc4b   : > { %10612 = vmatprep.subr.bf16.mxu0 %v11780_v24 }
 0xc4e   : > { %10614 = vmatpush3.bf16.msra.mxu0 %v11780_v24 }
 0xc4f   : > { %10616 = vmatprep.subr.bf16.mxu0 %v11790_v27 }
 0xc52   : > { %10618 = vmatpush3.bf16.msra.mxu0 %v11790_v27 }
 0xc53   : > { %10620 = vmatprep.subr.bf16.mxu0 %v11794_v28 }
 0xc56   : > { %10622 = vmatpush3.bf16.msra.mxu0 %v11794_v28 }
 0xc57   : > { %10624 = vmatprep.subr.bf16.mxu0 %v11805_v31 }
 0xc5a   : > { %10626 = vmatpush3.bf16.msra.mxu0 %v11805_v31 }
 0xc5b   : > { %9571 = vmatprep.subr.bf16.mxu0 %v14029_v54 }
 0xd10   : > { %v9535_v58 = vpop.f32.mrb[20].mxu0 }
 0xd11   : > { %v3736_v3 = vsub.f32 %v12619_v38, %v9535_v58  ;;  %v3726_v30 = vpop.f32.mrb[21].mxu0 }
 0xd12   : > { %v3735_v48 = vsub.f32 %v12615_v50, %v3726_v30  ;;  %v11423_v30 = vld [vmem:[%s13901_s6 + $0x8] sm:$0xff]  }
 0xd13   : > { %v3738_v25 = vmul.f32 %v3736_v3, %v3736_v3 }
 0xd14   : > { %v3737_v45 = vmul.f32 %v3735_v48, %v3735_v48 }
 0xd16   : > { %9568 = vmatprep.mubr.f32.mxu0 %v3737_v45 }
 0xd17   : > { %9569 = vmatmul.mubr.f32.vlgmr.msra.gmra.mrb[22].mxu0 %v3738_v25 }
 0xd18   : > { %9573 = vmatprep.mubr.msk.bf16.mxu0 %vm11521_vm0, %v14029_v54 }
 0xdea   : > { %v9570_v41 = vpop.f32.mrb[22].mxu0 }
 0xdeb   : > { %v3811_v29 = vadd.f32 1e-05, %v9570_v41  ;;  %v3805_v49 = vpop.f32.mrb[23].mxu0 }
 0xdec   : > { %v3806_v15 = vadd.f32 1e-05, %v3805_v49 }
 0xded   : > { %11386 = vrsqrt.f32 %v3811_v29  ;;  %v11424_v29 = vld [vmem:[%s13901_s6 + $0x10] sm:$0xff]  }
 0xdee   : > { %11388 = vrsqrt.f32 %v3806_v15 }
 0xdf7   : > { %v11387_v7 = vpop.eup %11386 }
 0xdf8   : > { %v11389_v0 = vpop.eup %11388  ;;  %v3817_v13 = vmul.f32 %v11387_v7, %v3736_v3 }
 0xdf9   : > { %v3816_v35 = vmul.f32 %v11389_v0, %v3735_v48 }
 0xdfa   : > { %v3819_v33 = vmul.f32 %v12508_v62, %v3817_v13  ;;  %v11425_v13 = vld [vmem:[%s13901_s6 + $0x18] sm:$0xff]  }
 0xdfb   : > { %v3818_v44 = vmul.f32 %v12508_v62, %v3816_v35 }
 0xdfc   : > { %v12645_v10 = vadd.f32 %v12515_v11, %v3819_v33 }
 0xdfd   : > { %v12648_v56 = vadd.f32 %v12515_v11, %v3818_v44 }
 0xdfe   : > { %3824 = vrot.lane.b32.xlu1 %v12645_v10, %s11525_s28 }
 0xdff   : > { %3822 = vrot.lane.b32.xlu0 %v12648_v56, %s11525_s28  ;;  %s14031_s28 = smov 8  }
 0xe02   : > { %3874 = vrot.lane.b32.xlu1 %v12645_v10, %s11524_s4 }
 0xe03   : > { %3872 = vrot.lane.b32.xlu0 %v12648_v56, %s11524_s4  ;;  %s14030_s4 = smov 9  }
 0xe06   : > { %3924 = vrot.lane.b32.xlu1 %v12645_v10, %s11526_s27 }
 0xe07   : > { %3922 = vrot.lane.b32.xlu0 %v12648_v56, %s11526_s27  ;;  %s14032_s27 = smov 7  }
 0xe0a   : > { %3974 = vrot.lane.b32.xlu1 %v12645_v10, %s11527_s3 }
 0xe0b   : > { %3972 = vrot.lane.b32.xlu0 %v12648_v56, %s11527_s3  ;;  %s14033_s3 = smov 6  }
 0xe0e   : > { %4024 = vrot.lane.b32.xlu1 %v12645_v10, %s11528_s24 }
 0xe0f   : > { %4022 = vrot.lane.b32.xlu0 %v12648_v56, %s11528_s24  ;;  %s14034_s24 = smov 5  }
 0xe12   : > { %4074 = vrot.lane.b32.xlu1 %v12645_v10, %s11529_s25 }
 0xe13   : > { %4072 = vrot.lane.b32.xlu0 %v12648_v56, %s11529_s25  ;;  %s14035_s25 = smov 4  }
 0xe16   : > { %4124 = vrot.lane.b32.xlu1 %v12645_v10, %s14030_s4 }
 0xe17   : > { %4122 = vrot.lane.b32.xlu0 %v12648_v56, %s14030_s4  ;;  %s14042_s4 = smov 124  }
 0xe1a   : > { %4174 = vrot.lane.b32.xlu1 %v12645_v10, %s14031_s28 }
 0xe1b   : > { %4172 = vrot.lane.b32.xlu0 %v12648_v56, %s14031_s28  ;;  %s14043_s28 = smov 123  }
 0xe1e   : > { %4224 = vrot.lane.b32.xlu1 %v12645_v10, %s14032_s27 }
 0xe1f   : > { %4222 = vrot.lane.b32.xlu0 %v12648_v56, %s14032_s27  ;;  %s14044_s27 = smov 122  }
 0xe22   : > { %4274 = vrot.lane.b32.xlu1 %v12645_v10, %s14033_s3 }
 0xe23   : > { %4272 = vrot.lane.b32.xlu0 %v12648_v56, %s14033_s3  ;;  %s14045_s3 = smov 121  }
 0xe26   : > { %4324 = vrot.lane.b32.xlu1 %v12645_v10, %s14034_s24 }
 0xe27   : > { %4322 = vrot.lane.b32.xlu0 %v12648_v56, %s14034_s24  ;;  %s14046_s24 = smov 120  }
 0xe2a   : > { %4374 = vrot.lane.b32.xlu1 %v12645_v10, %s14035_s25 }
 0xe2b   : > { %4372 = vrot.lane.b32.xlu0 %v12648_v56, %s14035_s25  ;;  %s14047_s25 = smov 119  }
 0xe2e   : > { %4424 = vrot.lane.b32.xlu1 %v12645_v10, %s14036_s1 }
 0xe2f   : > { %4422 = vrot.lane.b32.xlu0 %v12648_v56, %s14036_s1  ;;  %s14048_s1 = smov 118  }
 0xe32   : > { %4474 = vrot.lane.b32.xlu1 %v12645_v10, %s14037_s30 }
 0xe33   : > { %4472 = vrot.lane.b32.xlu0 %v12648_v56, %s14037_s30  ;;  %s14049_s30 = smov 116  }
 0xe36   : > { %4524 = vrot.lane.b32.xlu1 %v12645_v10, %s14038_s20 }
 0xe37   : > { %4522 = vrot.lane.b32.xlu0 %v12648_v56, %s14038_s20  ;;  %s14050_s20 = smov 115  }
 0xe3a   : > { %4618 = vrot.lane.b32.xlu1 %v12645_v10, %s14039_s0 }
 0xe3b   : > { %4616 = vrot.lane.b32.xlu0 %v12648_v56, %s14039_s0  ;;  %s14051_s0 = smov 114  }
 0xe3e   : > { %4668 = vrot.lane.b32.xlu1 %v12645_v10, %s14040_s29 }
 0xe3f   : > { %4666 = vrot.lane.b32.xlu0 %v12648_v56, %s14040_s29 }
 0xe42   : > { %4718 = vrot.lane.b32.xlu1 %v12645_v10, %s14041_s26 }
 0xe43   : > { %4716 = vrot.lane.b32.xlu0 %v12648_v56, %s14041_s26 }
 0xe46   : > { %4768 = vrot.lane.b32.xlu1 %v12645_v10, %s14042_s4 }
 0xe47   : > { %4766 = vrot.lane.b32.xlu0 %v12648_v56, %s14042_s4  ;;  %s618_s4 = sand.u32 1, %s11510_s22  }
 0xe4a   : > { %4818 = vrot.lane.b32.xlu1 %v12645_v10, %s14043_s28 }
 0xe4b   : > { %4816 = vrot.lane.b32.xlu0 %v12648_v56, %s14043_s28  ;;  %s7945_s28 = sshll.u32 %s618_s4, 3 }
 0xe4e   : > { %4868 = vrot.lane.b32.xlu1 %v12645_v10, %s14044_s27 }
 0xe4f   : > { %4866 = vrot.lane.b32.xlu0 %v12648_v56, %s14044_s27  ;;  %s11555_s27 = smov [#allocation2]  }
 0xe52   : > { %4918 = vrot.lane.b32.xlu1 %v12645_v10, %s14045_s3 }
 0xe53   : > { %4916 = vrot.lane.b32.xlu0 %v12648_v56, %s14045_s3  ;;  %s11460_s3 = sshll.u32 %s11555_s27, 4  ;;  %s11461_s3 = int_to_ptr.vmem [resolvable:$false] %s11460_s3 }
 0xe54   : > { %s11462_s5 = scalar_lea.vmem %s11461_s3, 256 }
 0xe56   : > { %4968 = vrot.lane.b32.xlu1 %v12645_v10, %s14046_s24 }
 0xe57   : > { %4966 = vrot.lane.b32.xlu0 %v12648_v56, %s14046_s24 }
 0xe5a   : > { %5018 = vrot.lane.b32.xlu1 %v12645_v10, %s14047_s25 }
 0xe5b   : > { %5016 = vrot.lane.b32.xlu0 %v12648_v56, %s14047_s25  ;;  %s8433_s25 = sshll.u32 %s11682_s2, 7  ;;  %s7869_s2 = scalar_lea.sflag [#allocation3], %s618_s4 }
 0xe5e   : > { %5068 = vrot.lane.b32.xlu1 %v12645_v10, %s14048_s1 }
 0xe5f   : > { %5066 = vrot.lane.b32.xlu0 %v12648_v56, %s14048_s1  ;;  %s620_s1 = scalar_lea.vmem [#allocation2], %s7945_s28 }
 0xe62   : > { %5118 = vrot.lane.b32.xlu1 %v12645_v10, %s11549_s23 }
 0xe63   : > { %5116 = vrot.lane.b32.xlu0 %v12648_v56, %s11549_s23  ;;  %s14052_s23 = smov 113  }
 0xe66   : > { %5168 = vrot.lane.b32.xlu1 %v12645_v10, %s14049_s30 }
 0xe67   : > { %5166 = vrot.lane.b32.xlu0 %v12648_v56, %s14049_s30  ;;  %s7882_s30 = sshll.u32 %s620_s1, 4  ;;  %s13855_s30 = int_to_ptr.vmem [resolvable:$true] %s7882_s30 }
 0xe68   : > { %s11456_s28 = scalar_lea.vmem %s13855_s30, 128  ;;  %p11463_p0 = scmp.lt.s32.totalorder %s13855_s30, %s11461_s3 }
 0xe69   : > { %p11457_p11 = scmp.ne.s32.totalorder %s13855_s30, %s11456_s28  ;;  %p11464_p1 = scmp.lt.s32.totalorder %s11462_s5, %s11456_s28 }
 0xe6a   : > { %5218 = vrot.lane.b32.xlu1 %v12645_v10, %s14050_s20 }
 0xe6b   : > { %5216 = vrot.lane.b32.xlu0 %v12648_v56, %s14050_s20  ;;  %p11458_p12 = pnand %p11457_p11, %p11699_p5  ;;  %p11465_p2 = por %p11464_p1, %p11463_p0 }
 0xe6d   : > { %p11459_p13 = pneg %p11458_p12 }
 0xe6e   : > { %5268 = vrot.lane.b32.xlu1 %v12645_v10, %s14051_s0 }
 0xe6f   : > { %5266 = vrot.lane.b32.xlu0 %v12648_v56, %s14051_s0  ;;  %p11466_p3 = pnand %p11465_p2, %p11459_p13 }
 0xe70   : > { %v3825_v62 = vpop.permute.xlu1 %3824 }
 0xe71   : > { %v3827_v11 = vmul.f32 %v3825_v62, %v12046_v32  ;;  %v3823_v55 = vpop.permute.xlu0 %3822 }
 0xe72   : > { %v3826_v26 = vmul.f32 %v3823_v55, %v12046_v32  ;;  %5318 = vrot.lane.b32.xlu1 %v12645_v10, %s14052_s23  ;;  %v11422_v32 = vld [vmem:[%s13901_s6] sm:$0xff]  }
 0xe73   : > { %5316 = vrot.lane.b32.xlu0 %v12648_v56, %s14052_s23  ;;  %s14065_s23 = sld [smem:[#allocation29_spill]] }
 0xe74   : > { %v3828_v63 = vpack.c.bf16 %v3827_v11, %v3826_v26  ;;  %v3875_v22 = vpop.permute.xlu1 %3874  ;;  %v11426_v11 = vld [vmem:[%s13901_s6 + $0x20] sm:$0xff]  }
 0xe75   : > { %v3877_v19 = vmul.f32 %v3875_v22, %v12052_v34  ;;  %v3873_v36 = vpop.permute.xlu0 %3872 }
 0xe76   : > { %v3876_v42 = vmul.f32 %v3873_v36, %v12052_v34  ;;  %9572 = vmatpush3.bf16.msra.mxu0 %v3828_v63 }
 0xe77   : > { %9577 = vmatprep.subr.bf16.mxu0 %v14029_v54 }
 0xe78   : > { %v3878_v59 = vpack.c.bf16 %v3877_v19, %v3876_v42  ;;  %v3925_v4 = vpop.permute.xlu1 %3924  ;;  %v11427_v19 = vld [vmem:[%s13901_s6 + $0x28] sm:$0xff]  }
 0xe79   : > { %9574 = vmatmul.mubr.msk.bf16.vlgmr.msra.gmra.mrb[24].mxu0 %vm1171_vm5, %v11422_v32  ;;  %v3923_v23 = vpop.permute.xlu0 %3922  ;;  %v3927_v34 = vmul.f32 %v3925_v4, %v12073_v47  ;;  %v11428_v4 = vld [vmem:[%s13901_s6 + $0x30] sm:$0xff]   ;;  %s14066_s29 = smov %s14065_s23  ;;  %s13853_s26 = scalar_lea.hbm %s14065_s23, %s8433_s25 }
 0xe7a   : > { %9578 = vmatpush3.bf16.msra.mxu0 %v3878_v59  ;;  %9579 = vmatprep.mubr.msk.bf16.mxu0 %vm11521_vm0, %v14029_v54  ;;  %v3926_v58 = vmul.f32 %v3923_v23, %v12073_v47 }
 0xe7b   : > { %9583 = vmatprep.subr.bf16.mxu0 %v14029_v54 }
 0xe7c   : > { %v3928_v3 = vpack.c.bf16 %v3927_v34, %v3926_v58  ;;  %v3975_v48 = vpop.permute.xlu1 %3974 }
 0xe7d   : > { %v3973_v45 = vpop.permute.xlu0 %3972  ;;  %v3977_v25 = vmul.f32 %v3975_v48, %v12089_v57 }
 0xe7e   : > { %v3976_v41 = vmul.f32 %v3973_v45, %v12089_v57 }
 0xe80   : > { %v3978_v47 = vpack.c.bf16 %v3977_v25, %v3976_v41  ;;  %v4025_v49 = vpop.permute.xlu1 %4024 }
 0xe81   : > { %v4023_v15 = vpop.permute.xlu0 %4022  ;;  %v4027_v7 = vmul.f32 %v4025_v49, %v12105_v2 }
 0xe82   : > { %v4026_v0 = vmul.f32 %v4023_v15, %v12105_v2 }
 0xe84   : > { %v4028_v57 = vpack.c.bf16 %v4027_v7, %v4026_v0  ;;  %v4075_v35 = vpop.permute.xlu1 %4074  ;;  %v11431_v0 = vld [vmem:[%s13901_s6 + $0x48] sm:$0xff]  }
 0xe85   : > { %9580 = vmatmul.mubr.msk.bf16.vlgmr.msra.gmra.mrb[24].mxu0 %vm1171_vm5, %v11423_v30  ;;  %v4073_v33 = vpop.permute.xlu0 %4072  ;;  %v4077_v44 = vmul.f32 %v4075_v35, %v12121_v12  ;;  %v11429_v30 = vld [vmem:[%s13901_s6 + $0x38] sm:$0xff]  }
 0xe86   : > { %9584 = vmatpush3.bf16.msra.mxu0 %v3928_v3  ;;  %9585 = vmatprep.mubr.msk.bf16.mxu0 %vm11521_vm0, %v14029_v54  ;;  %v4076_v62 = vmul.f32 %v4073_v33, %v12121_v12 }
 0xe87   : > { %9589 = vmatprep.subr.bf16.mxu0 %v14029_v54 }
 0xe88   : > { %v4078_v2 = vpack.c.bf16 %v4077_v44, %v4076_v62  ;;  %v4125_v55 = vpop.permute.xlu1 %4124  ;;  %v11432_v44 = vld [vmem:[%s13901_s6 + $0x50] sm:$0xff]  }
 0xe89   : > { %v4123_v26 = vpop.permute.xlu0 %4122  ;;  %v4127_v63 = vmul.f32 %v4125_v55, %v12137_v37 }
 0xe8a   : > { %v4126_v22 = vmul.f32 %v4123_v26, %v12137_v37  ;;  %v11433_v26 = vld [vmem:[%s13901_s6 + $0x58] sm:$0xff]  }
 0xe8c   : > { %v4128_v12 = vpack.c.bf16 %v4127_v63, %v4126_v22  ;;  %v4175_v36 = vpop.permute.xlu1 %4174 }
 0xe8d   : > { %v4173_v42 = vpop.permute.xlu0 %4172  ;;  %v4177_v59 = vmul.f32 %v4175_v36, %v11921_v20  ;;  %v11434_v36 = vld [vmem:[%s13901_s6 + $0x60] sm:$0xff]  }
 0xe8e   : > { %v4176_v32 = vmul.f32 %v4173_v42, %v11921_v20 }
 0xe90   : > { %v4178_v37 = vpack.c.bf16 %v4177_v59, %v4176_v32  ;;  %v4225_v23 = vpop.permute.xlu1 %4224 }
 0xe91   : > { %9586 = vmatmul.mubr.msk.bf16.vlgmr.msra.gmra.mrb[24].mxu0 %vm1171_vm5, %v11424_v29  ;;  %v4223_v34 = vpop.permute.xlu0 %4222  ;;  %v4227_v58 = vmul.f32 %v4225_v23, %v12164_v52  ;;  %v4572_v23 = vpack.c.bf16 %v12645_v10, %v12648_v56  ;;  %v11437_v10 = vld [vmem:[%s13901_s6 + $0x78] sm:$0xff]  }
 0xe92   : > { %9590 = vmatpush3.bf16.msra.mxu0 %v3978_v47  ;;  %9591 = vmatprep.mubr.msk.bf16.mxu0 %vm11521_vm0, %v14029_v54  ;;  %v4226_v3 = vmul.f32 %v4223_v34, %v12164_v52  ;;  %v11430_v47 = vld [vmem:[%s13901_s6 + $0x40] sm:$0xff]  }
 0xe93   : > { %9595 = vmatprep.subr.bf16.mxu0 %v14029_v54 }
 0xe94   : > { %v4228_v20 = vpack.c.bf16 %v4227_v58, %v4226_v3  ;;  %v4275_v48 = vpop.permute.xlu1 %4274 }
 0xe95   : > { %v4273_v45 = vpop.permute.xlu0 %4272  ;;  %v4277_v25 = vmul.f32 %v4275_v48, %v12177_v1 }
 0xe96   : > { %v4276_v41 = vmul.f32 %v4273_v45, %v12177_v1 }
 0xe98   : > { %v4278_v52 = vpack.c.bf16 %v4277_v25, %v4276_v41  ;;  %v4325_v29 = vpop.permute.xlu1 %4324  ;;  %v11438_v41 = vld [vmem:[%s13901_s6 + $0x80] sm:$0xff]  }
 0xe99   : > { %v4323_v49 = vpop.permute.xlu0 %4322  ;;  %v4327_v15 = vmul.f32 %v4325_v29, %v12190_v14 }
 0xe9a   : > { %v4326_v7 = vmul.f32 %v4323_v49, %v12190_v14 }
 0xe9c   : > { %v4328_v1 = vpack.c.bf16 %v4327_v15, %v4326_v7  ;;  %v11439_v15 = vld [vmem:[%s13901_s6 + $0x88] sm:$0xff]  }
 0xe9d   : > { %9592 = vmatmul.mubr.msk.bf16.vlgmr.msra.gmra.mrb[24].mxu0 %vm1171_vm5, %v11425_v13  ;;  %v4373_v13 = vpop.permute.xlu0 %4372 }
 0xe9e   : > { %9596 = vmatpush3.bf16.msra.mxu0 %v4028_v57  ;;  %9597 = vmatprep.mubr.msk.bf16.mxu0 %vm11521_vm0, %v14029_v54  ;;  %v4375_v57 = vpop.permute.xlu1 %4374  ;;  %v4376_v33 = vmul.f32 %v4373_v13, %v12203_v39  ;;  %v11440_v13 = vld [vmem:[%s13901_s6 + $0x90] sm:$0xff]  }
 0xe9f   : > { %9601 = vmatprep.subr.bf16.mxu0 %v14029_v54  ;;  %v4377_v35 = vmul.f32 %v4375_v57, %v12203_v39 }
 0xea1   : > { %v4378_v14 = vpack.c.bf16 %v4377_v35, %v4376_v33 }
 0xea2   : > { %v4425_v62 = vpop.permute.xlu1 %4424 }
 0xea6   : > { %v4475_v63 = vpop.permute.xlu1 %4474 }
 0xea9   : > { %9598 = vmatmul.mubr.msk.bf16.vlgmr.msra.gmra.mrb[24].mxu0 %vm1171_vm5, %v11426_v11  ;;  %v4427_v11 = vmul.f32 %v4425_v62, %v12216_v46  ;;  %v11441_v62 = vld [vmem:[%s13901_s6 + $0x98] sm:$0xff]  }
 0xeaa   : > { %9602 = vmatpush3.bf16.msra.mxu0 %v4078_v2  ;;  %9603 = vmatprep.mubr.msk.bf16.mxu0 %vm11521_vm0, %v14029_v54  ;;  %v4423_v2 = vpop.permute.xlu0 %4422  ;;  %v4525_v42 = vpop.permute.xlu1 %4524 }
 0xeab   : > { %9607 = vmatprep.subr.bf16.mxu0 %v14029_v54  ;;  %v4426_v55 = vmul.f32 %v4423_v2, %v12216_v46  ;;  %v4527_v32 = vmul.f32 %v4525_v42, %v12242_v8 }
 0xead   : > { %v4428_v39 = vpack.c.bf16 %v4427_v11, %v4426_v55 }
 0xeae   : > { %v4473_v22 = vpop.permute.xlu0 %4472  ;;  %v4619_v34 = vpop.permute.xlu1 %4618 }
 0xeaf   : > { %v4621_v3 = vmul.f32 %v4619_v34, %v12264_v40 }
 0xeb2   : > { %v4523_v59 = vpop.permute.xlu0 %4522  ;;  %v4669_v56 = vpop.permute.xlu1 %4668 }
 0xeb3   : > { %v4671_v45 = vmul.f32 %v4669_v56, %v12277_v43  ;;  %v14055_v56 = vld [vmem:[#allocation15_spill] sm:$0xff] }
 0xeb5   : > { %9604 = vmatmul.mubr.msk.bf16.vlgmr.msra.gmra.mrb[24].mxu0 %vm1171_vm5, %v11427_v19  ;;  %v4476_v19 = vmul.f32 %v4473_v22, %v12229_v60 }
 0xeb6   : > { %9608 = vmatpush3.bf16.msra.mxu0 %v4128_v12  ;;  %9609 = vmatprep.mubr.msk.bf16.mxu0 %vm11521_vm0, %v14029_v54  ;;  %v4477_v12 = vmul.f32 %v4475_v63, %v12229_v60  ;;  %v4617_v58 = vpop.permute.xlu0 %4616 }
 0xeb7   : > { %9613 = vmatprep.subr.bf16.mxu0 %v14029_v54 }
 0xeb8   : > { %v4478_v46 = vpack.c.bf16 %v4477_v12, %v4476_v19 }
 0xeba   : > { %v4667_v48 = vpop.permute.xlu0 %4666 }
 0xebb   : > { %v4670_v25 = vmul.f32 %v4667_v48, %v12277_v43 }
 0xec1   : > { %9610 = vmatmul.mubr.msk.bf16.vlgmr.msra.gmra.mrb[24].mxu0 %vm1171_vm5, %v11428_v4  ;;  %v11435_v4 = vld [vmem:[%s13901_s6 + $0x68] sm:$0xff]  }
 0xec2   : > { %9614 = vmatpush3.bf16.msra.mxu0 %v4178_v37  ;;  %9615 = vmatprep.mubr.msk.bf16.mxu0 %vm11521_vm0, %v14029_v54  ;;  %v4526_v37 = vmul.f32 %v4523_v59, %v12242_v8  ;;  %v11436_v8 = vld [vmem:[%s13901_s6 + $0x70] sm:$0xff]  }
 0xec3   : > { %9619 = vmatprep.subr.bf16.mxu0 %v14029_v54  ;;  %v14053_v59 = vld [vmem:[#allocation12_spill] sm:$0xff] }
 0xec4   : > { %v4528_v60 = vpack.c.bf16 %v4527_v32, %v4526_v37 }
 0xecd   : > { %9616 = vmatmul.mubr.msk.bf16.vlgmr.msra.gmra.mrb[24].mxu0 %vm1171_vm5, %v11429_v30 }
 0xece   : > { %9620 = vmatpush3.bf16.msra.mxu0 %v4228_v20  ;;  %9621 = vmatprep.mubr.msk.bf16.mxu0 %vm11521_vm0, %v14029_v54  ;;  %v4620_v20 = vmul.f32 %v4617_v58, %v12264_v40  ;;  %v4672_v40 = vpack.c.bf16 %v4671_v45, %v4670_v25 }
 0xecf   : > { %9625 = vmatprep.subr.bf16.mxu0 %v14029_v54 }
 0xed0   : > { %v4622_v30 = vpack.c.bf16 %v4621_v3, %v4620_v20  ;;  %v11445_v20 = vld [vmem:[%s13901_s6 + $0xb8] sm:$0xff]  }
 0xed9   : > { %9622 = vmatmul.mubr.msk.bf16.vlgmr.msra.gmra.mrb[24].mxu0 %vm1171_vm5, %v11430_v47  ;;  %v4717_v47 = vpop.permute.xlu0 %4716 }
 0xeda   : > { %9626 = vmatpush3.bf16.msra.mxu0 %v4278_v52  ;;  %9627 = vmatprep.mubr.msk.bf16.mxu0 %vm11521_vm0, %v14029_v54  ;;  %v4719_v52 = vpop.permute.xlu1 %4718  ;;  %v4720_v49 = vmul.f32 %v4717_v47, %v12290_v61  ;;  %v14056_v47 = vld [vmem:[#allocation16_spill] sm:$0xff] }
 0xedb   : > { %9631 = vmatprep.subr.bf16.mxu0 %v14029_v54  ;;  %v4721_v29 = vmul.f32 %v4719_v52, %v12290_v61 }
 0xedd   : > { %v4722_v43 = vpack.c.bf16 %v4721_v29, %v4720_v49 }
 0xede   : > { %v4769_v7 = vpop.permute.xlu1 %4768 }
 0xee2   : > { %v4819_v35 = vpop.permute.xlu1 %4818 }
 0xee5   : > { %9628 = vmatmul.mubr.msk.bf16.vlgmr.msra.gmra.mrb[24].mxu0 %vm1171_vm5, %v11431_v0  ;;  %v4771_v0 = vmul.f32 %v4769_v7, %v12303_v18 }
 0xee6   : > { %9632 = vmatpush3.bf16.msra.mxu0 %v4328_v1  ;;  %9633 = vmatprep.mubr.msk.bf16.mxu0 %vm11521_vm0, %v14029_v54  ;;  %v4767_v1 = vpop.permute.xlu0 %4766  ;;  %v4869_v2 = vpop.permute.xlu1 %4868 }
 0xee7   : > { %9637 = vmatprep.subr.bf16.mxu0 %v14029_v54  ;;  %v4770_v57 = vmul.f32 %v4767_v1, %v12303_v18  ;;  %v4871_v55 = vmul.f32 %v4869_v2, %v12332_v51 }
 0xee9   : > { %v4772_v61 = vpack.c.bf16 %v4771_v0, %v4770_v57  ;;  %v14057_v0 = vld [vmem:[#allocation17_spill] sm:$0xff] }
 0xeea   : > { %v4817_v33 = vpop.permute.xlu0 %4816  ;;  %v4919_v63 = vpop.permute.xlu1 %4918 }
 0xeeb   : > { %v4921_v12 = vmul.f32 %v4919_v63, %v12345_v6 }
 0xeee   : > { %v4867_v11 = vpop.permute.xlu0 %4866 }
 0xef1   : > { %9634 = vmatmul.mubr.msk.bf16.vlgmr.msra.gmra.mrb[24].mxu0 %vm1171_vm5, %v11432_v44  ;;  %v4820_v44 = vmul.f32 %v4817_v33, %v12316_v17 }
 0xef2   : > { %9638 = vmatpush3.bf16.msra.mxu0 %v4378_v14  ;;  %9639 = vmatprep.mubr.msk.bf16.mxu0 %vm11521_vm0, %v14029_v54  ;;  %v4821_v14 = vmul.f32 %v4819_v35, %v12316_v17  ;;  %v4917_v22 = vpop.permute.xlu0 %4916  ;;  %v11448_v35 = vld [vmem:[%s13901_s6 + $0xd0] sm:$0xff]  }
 0xef3   : > { %9643 = vmatprep.subr.bf16.mxu0 %v14029_v54  ;;  %v4920_v19 = vmul.f32 %v4917_v22, %v12345_v6 }
 0xef4   : > { %v4822_v18 = vpack.c.bf16 %v4821_v14, %v4820_v44  ;;  %v14058_v44 = vld [vmem:[#allocation18_spill] sm:$0xff] }
 0xef6   : > { %v4967_v42 = vpop.permute.xlu0 %4966 }
 0xef7   : > { %v4970_v37 = vmul.f32 %v4967_v42, %v14053_v59 }
 0xefd   : > { %9640 = vmatmul.mubr.msk.bf16.vlgmr.msra.gmra.mrb[24].mxu0 %vm1171_vm5, %v11433_v26  ;;  %v11442_v26 = vld [vmem:[%s13901_s6 + $0xa0] sm:$0xff]  }
 0xefe   : > { %9644 = vmatpush3.bf16.msra.mxu0 %v4428_v39  ;;  %9645 = vmatprep.mubr.msk.bf16.mxu0 %vm11521_vm0, %v14029_v54  ;;  %v4870_v39 = vmul.f32 %v4867_v11, %v12332_v51  ;;  %v4922_v51 = vpack.c.bf16 %v4921_v12, %v4920_v19  ;;  %v11449_v11 = vld [vmem:[%s13901_s6 + $0xd8] sm:$0xff]   ;;  %v11450_v12 = vld [vmem:[%s13901_s6 + $0xe0] sm:$0xff]  }
 0xeff   : > { %9649 = vmatprep.subr.bf16.mxu0 %v14029_v54 }
 0xf00   : > { %v4872_v17 = vpack.c.bf16 %v4871_v55, %v4870_v39 }
 0xf09   : > { %9646 = vmatmul.mubr.msk.bf16.vlgmr.msra.gmra.mrb[24].mxu0 %vm1171_vm5, %v11434_v36  ;;  %v4969_v36 = vpop.permute.xlu1 %4968 }
 0xf0a   : > { %9650 = vmatpush3.bf16.msra.mxu0 %v4478_v46  ;;  %9651 = vmatprep.mubr.msk.bf16.mxu0 %vm11521_vm0, %v14029_v54  ;;  %v11443_v46 = vld [vmem:[%s13901_s6 + $0xa8] sm:$0xff]   ;;  %v4971_v32 = vmul.f32 %v4969_v36, %v14053_v59 }
 0xf0b   : > { %9655 = vmatprep.subr.bf16.mxu0 %v14029_v54 }
 0xf0c   : > { %v4972_v6 = vpack.c.bf16 %v4971_v32, %v4970_v37  ;;  %v11451_v32 = vld [vmem:[%s13901_s6 + $0xe8] sm:$0xff]   ;;  %v11452_v37 = vld [vmem:[%s13901_s6 + $0xf0] sm:$0xff]  }
 0xf15   : > { %9652 = vmatmul.mubr.msk.bf16.vlgmr.msra.gmra.mrb[24].mxu0 %vm1171_vm5, %v11435_v4  ;;  %v5019_v4 = vpop.permute.xlu1 %5018 }
 0xf16   : > { %9656 = vmatpush3.bf16.msra.mxu0 %v4528_v60  ;;  %9657 = vmatprep.mubr.msk.bf16.mxu0 %vm11521_vm0, %v14029_v54  ;;  %v11444_v60 = vld [vmem:[%s13901_s6 + $0xb0] sm:$0xff]  }
 0xf17   : > { %9661 = vmatprep.subr.bf16.mxu0 %v14029_v54 }
 0xf21   : > { %9658 = vmatmul.mubr.msk.bf16.vlgmr.msra.gmra.mrb[24].mxu0 %vm1171_vm5, %v11436_v8  ;;  %v14054_v8 = vld [vmem:[#allocation14_spill] sm:$0xff] }
 0xf22   : > { %9662 = vmatpush3.bf16.msra.mxu0 %v4572_v23  ;;  %9663 = vmatprep.mubr.msk.bf16.mxu0 %vm11521_vm0, %v14029_v54  ;;  %v5017_v23 = vpop.permute.xlu0 %5016  ;;  %v5021_v34 = vmul.f32 %v5019_v4, %v14054_v8 }
 0xf23   : > { %9667 = vmatprep.subr.bf16.mxu0 %v14029_v54  ;;  %v5020_v58 = vmul.f32 %v5017_v23, %v14054_v8 }
 0xf25   : > { %v5022_v3 = vpack.c.bf16 %v5021_v34, %v5020_v58  ;;  %v14062_v34 = vld [vmem:[#allocation22_spill] sm:$0xff] }
 0xf2d   : > { %9664 = vmatmul.mubr.msk.bf16.vlgmr.msra.gmra.mrb[24].mxu0 %vm1171_vm5, %v11437_v10  ;;  %v5067_v10 = vpop.permute.xlu0 %5066 }
 0xf2e   : > { %9668 = vmatpush3.bf16.msra.mxu0 %v4622_v30  ;;  %9669 = vmatprep.mubr.msk.bf16.mxu0 %vm11521_vm0, %v14029_v54  ;;  %v5069_v30 = vpop.permute.xlu1 %5068  ;;  %v5070_v45 = vmul.f32 %v5067_v10, %v14055_v56 }
 0xf2f   : > { %9673 = vmatprep.subr.bf16.mxu0 %v14029_v54  ;;  %v5071_v48 = vmul.f32 %v5069_v30, %v14055_v56 }
 0xf31   : > { %v5072_v25 = vpack.c.bf16 %v5071_v48, %v5070_v45  ;;  %v5117_v52 = vpop.permute.xlu0 %5116 }
 0xf32   : > { %v5120_v49 = vmul.f32 %v5117_v52, %v14056_v47 }
 0xf35   : > { %v5167_v1 = vpop.permute.xlu0 %5166 }
 0xf39   : > { %9670 = vmatmul.mubr.msk.bf16.vlgmr.msra.gmra.mrb[24].mxu0 %vm1171_vm5, %v11438_v41  ;;  %v5119_v41 = vpop.permute.xlu1 %5118  ;;  %v5217_v14 = vpop.permute.xlu0 %5216 }
 0xf3a   : > { %9674 = vmatpush3.bf16.msra.mxu0 %v4672_v40  ;;  %9675 = vmatprep.mubr.msk.bf16.mxu0 %vm11521_vm0, %v14029_v54  ;;  %v11446_v40 = vld [vmem:[%s13901_s6 + $0xc0] sm:$0xff]   ;;  %v5121_v29 = vmul.f32 %v5119_v41, %v14056_v47 }
 0xf3b   : > { %9679 = vmatprep.subr.bf16.mxu0 %v14029_v54 }
 0xf3d   : > { %v5169_v7 = vpop.permute.xlu1 %5168  ;;  %v5267_v39 = vpop.permute.xlu0 %5266 }
 0xf3e   : > { %v5171_v57 = vmul.f32 %v5169_v7, %v14057_v0 }
 0xf41   : > { %v5219_v33 = vpop.permute.xlu1 %5218 }
 0xf45   : > { %9676 = vmatmul.mubr.msk.bf16.vlgmr.msra.gmra.mrb[24].mxu0 %vm1171_vm5, %v11439_v15  ;;  %v11447_v15 = vld [vmem:[%s13901_s6 + $0xc8] sm:$0xff]   ;;  %v5269_v55 = vpop.permute.xlu1 %5268 }
 0xf46   : > { %9680 = vmatpush3.bf16.msra.mxu0 %v4722_v43  ;;  %9681 = vmatprep.mubr.msk.bf16.mxu0 %vm11521_vm0, %v14029_v54  ;;  %v5122_v43 = vpack.c.bf16 %v5121_v29, %v5120_v49 }
 0xf47   : > { %9685 = vmatprep.subr.bf16.mxu0 %v14029_v54 }
 0xf49   : > { %v5319_v19 = vpop.permute.xlu1 %5318 }
 0xf51   : > { %9682 = vmatmul.mubr.msk.bf16.vlgmr.msra.gmra.mrb[24].mxu0 %vm1171_vm5, %v11440_v13 }
 0xf52   : > { %9686 = vmatpush3.bf16.msra.mxu0 %v4772_v61  ;;  %9687 = vmatprep.mubr.msk.bf16.mxu0 %vm11521_vm0, %v14029_v54  ;;  %v5170_v61 = vmul.f32 %v5167_v1, %v14057_v0  ;;  %v13107_v0 = vld [vmem:[%s13905_s10] ss:$0 sm:$0xff] }
 0xf53   : > { %9691 = vmatprep.subr.bf16.mxu0 %v14029_v54 }
 0xf54   : > { %v5172_v13 = vpack.c.bf16 %v5171_v57, %v5170_v61 }
 0xf5d   : > { %9688 = vmatmul.mubr.msk.bf16.vlgmr.msra.gmra.mrb[24].mxu0 %vm1171_vm5, %v11441_v62  ;;  %v5220_v62 = vmul.f32 %v5217_v14, %v14058_v44 }
 0xf5e   : > { %9692 = vmatpush3.bf16.msra.mxu0 %v4822_v18  ;;  %9693 = vmatprep.mubr.msk.bf16.mxu0 %vm11521_vm0, %v14029_v54  ;;  %v5221_v18 = vmul.f32 %v5219_v33, %v14058_v44 }
 0xf5f   : > { %9697 = vmatprep.subr.bf16.mxu0 %v14029_v54 }
 0xf60   : > { %v5222_v2 = vpack.c.bf16 %v5221_v18, %v5220_v62 }
 0xf69   : > { %9694 = vmatmul.mubr.msk.bf16.vlgmr.msra.gmra.mrb[24].mxu0 %vm1171_vm5, %v11442_v26 }
 0xf6a   : > { %9698 = vmatpush3.bf16.msra.mxu0 %v4872_v17  ;;  %9699 = vmatprep.mubr.msk.bf16.mxu0 %vm11521_vm0, %v14029_v54  ;;  %v14059_v17 = vld [vmem:[#allocation19_spill] sm:$0xff] }
 0xf6b   : > { %9703 = vmatprep.subr.bf16.mxu0 %v14029_v54  ;;  %v5271_v26 = vmul.f32 %v5269_v55, %v14059_v17  ;;  %v5270_v63 = vmul.f32 %v5267_v39, %v14059_v17 }
 0xf6d   : > { %v5272_v22 = vpack.c.bf16 %v5271_v26, %v5270_v63 }
 0xf75   : > { %9700 = vmatmul.mubr.msk.bf16.vlgmr.msra.gmra.mrb[24].mxu0 %vm1171_vm5, %v11443_v46  ;;  %v14060_v46 = vld [vmem:[#allocation20_spill] sm:$0xff] }
 0xf76   : > { %9704 = vmatpush3.bf16.msra.mxu0 %v4922_v51  ;;  %9705 = vmatprep.mubr.msk.bf16.mxu0 %vm11521_vm0, %v14029_v54  ;;  %v5317_v51 = vpop.permute.xlu0 %5316  ;;  %v5321_v36 = vmul.f32 %v5319_v19, %v14060_v46 }
 0xf77   : > { %9709 = vmatprep.subr.bf16.mxu0 %v14029_v54  ;;  %v5320_v42 = vmul.f32 %v5317_v51, %v14060_v46 }
 0xf79   : > { %v5322_v59 = vpack.c.bf16 %v5321_v36, %v5320_v42 }
 0xf81   : > { %9706 = vmatmul.mubr.msk.bf16.vlgmr.msra.gmra.mrb[24].mxu0 %vm1171_vm5, %v11444_v60  ;;  %v14061_v60 = vld [vmem:[#allocation21_spill] sm:$0xff] }
 0xf82   : > { %9710 = vmatpush3.bf16.msra.mxu0 %v4972_v6  ;;  %9711 = vmatprep.mubr.msk.bf16.mxu0 %vm11521_vm0, %v14029_v54 }
 0xf83   : > { %9715 = vmatprep.subr.bf16.mxu0 %v14029_v54 }
 0xf8d   : > { %9712 = vmatmul.mubr.msk.bf16.vlgmr.msra.gmra.mrb[24].mxu0 %vm1171_vm5, %v11445_v20 }
 0xf8e   : > { %9716 = vmatpush3.bf16.msra.mxu0 %v5022_v3  ;;  %9717 = vmatprep.mubr.msk.bf16.mxu0 %vm11521_vm0, %v14029_v54 }
 0xf8f   : > { %9721 = vmatprep.subr.bf16.mxu0 %v14029_v54 }
 0xf99   : > { %9718 = vmatmul.mubr.msk.bf16.vlgmr.msra.gmra.mrb[24].mxu0 %vm1171_vm5, %v11446_v40 }
 0xf9a   : > { %9722 = vmatpush3.bf16.msra.mxu0 %v5072_v25  ;;  %9723 = vmatprep.mubr.msk.bf16.mxu0 %vm11521_vm0, %v14029_v54 }
 0xf9b   : > { %9727 = vmatprep.subr.bf16.mxu0 %v14029_v54 }
 0xfa5   : > { %9724 = vmatmul.mubr.msk.bf16.vlgmr.msra.gmra.mrb[24].mxu0 %vm1171_vm5, %v11447_v15  ;;  %v13100_v15 = vld [vmem:[%s13904_s9] ss:$0 sm:$0xff] }
 0xfa6   : > { %9728 = vmatpush3.bf16.msra.mxu0 %v5122_v43  ;;  %9729 = vmatprep.mubr.msk.bf16.mxu0 %vm11521_vm0, %v14029_v54 }
 0xfa7   : > { %9733 = vmatprep.subr.bf16.mxu0 %v14029_v54 }
 0xfb1   : > { %9730 = vmatmul.mubr.msk.bf16.vlgmr.msra.gmra.mrb[24].mxu0 %vm1171_vm5, %v11448_v35 }
 0xfb2   : > { %9734 = vmatpush3.bf16.msra.mxu0 %v5172_v13  ;;  %9735 = vmatprep.mubr.msk.bf16.mxu0 %vm11521_vm0, %v14029_v54 }
 0xfb3   : > { %9739 = vmatprep.subr.bf16.mxu0 %v14029_v54 }
 0xfbd   : > { %9736 = vmatmul.mubr.msk.bf16.vlgmr.msra.gmra.mrb[24].mxu0 %vm1171_vm5, %v11449_v11 }
 0xfbe   : > { %9740 = vmatpush3.bf16.msra.mxu0 %v5222_v2  ;;  %9741 = vmatprep.mubr.msk.bf16.mxu0 %vm11521_vm0, %v14029_v54 }
 0xfbf   : > { %9745 = vmatprep.subr.bf16.mxu0 %v14029_v54 }
 0xfc9   : > { %9742 = vmatmul.mubr.msk.bf16.vlgmr.msra.gmra.mrb[24].mxu0 %vm1171_vm5, %v11450_v12 }
 0xfca   : > { %9746 = vmatpush3.bf16.msra.mxu0 %v5272_v22  ;;  %9747 = vmatprep.mubr.msk.bf16.mxu0 %vm11521_vm0, %v14029_v54 }
 0xfcb   : > { %9751 = vmatprep.subr.bf16.mxu0 %v14029_v54 }
 0xfd5   : > { %9748 = vmatmul.mubr.msk.bf16.vlgmr.msra.gmra.mrb[24].mxu0 %vm1171_vm5, %v11451_v32 }
 0xfd6   : > { %9752 = vmatpush3.bf16.msra.mxu0 %v5322_v59  ;;  %9753 = vmatprep.mubr.msk.bf16.mxu0 %vm11521_vm0, %v14029_v54 }
 0xfd7   : > { %10628 = vmatprep.subr.bf16.mxu0 %v11723_v5 }
 0xfe1   : > { %9754 = vmatmul.mubr.msk.bf16.vlgmr.msra.gmra.mrb[24].mxu0 %vm1171_vm5, %v11452_v37 }
 0xfe2   : > { %10630 = vmatpush3.bf16.msra.mxu0 %v11723_v5 }
 0xfe3   : > { %10632 = vmatprep.subr.bf16.mxu0 %v11734_v9 }
 0xfe6   : > { %10634 = vmatpush3.bf16.msra.mxu0 %v11734_v9 }
 0xfe7   : > { %10636 = vmatprep.subr.bf16.mxu0 %v11754_v16 }
 0xfea   : > { %10638 = vmatpush3.bf16.msra.mxu0 %v11754_v16 }
 0xfeb   : > { %10640 = vmatprep.subr.bf16.mxu0 %v11767_v21 }
 0xfee   : > { %10642 = vmatpush3.bf16.msra.mxu0 %v11767_v21 }
 0xfef   : > { %10644 = vmatprep.subr.bf16.mxu0 %v11780_v24 }
 0xff2   : > { %10646 = vmatpush3.bf16.msra.mxu0 %v11780_v24 }
 0xff3   : > { %10648 = vmatprep.subr.bf16.mxu0 %v11790_v27 }
 0xff6   : > { %10650 = vmatpush3.bf16.msra.mxu0 %v11790_v27 }
 0xff7   : > { %10652 = vmatprep.subr.bf16.mxu0 %v11794_v28 }
 0xffa   : > { %10654 = vmatpush3.bf16.msra.mxu0 %v11794_v28 }
 0xffb   : > { %10656 = vmatprep.subr.bf16.mxu0 %v11805_v31 }
 0xffe   : > { %10658 = vmatpush3.bf16.msra.mxu0 %v11805_v31 }
 0xfff   : > { %10660 = vmatprep.subr.bf16.mxu0 %v11723_v5 }
0x10b4   : > { %v5357_v6 = vpop.f32.mrb[24].mxu0 }
0x10b5   : > { %v10793_v4 = vadd.f32 %v5357_v6, %v14061_v60  ;;  %v9755_v23 = vpop.f32.mrb[25].mxu0 }
0x10b6   : > { %v5360_v8 = vpop.f32.mrb[26].mxu0 }
0x10b7   : > { %v10794_v58 = vadd.f32 %v5360_v8, %v14062_v34  ;;  %v9756_v3 = vpop.f32.mrb[27].mxu0  ;;  %9789 = vmatprep.mubr.f32.mxu0 %v10793_v4 }
0x10b9   : > { %9790 = vmatmul.mubr.f32.vlgmr.msra.gmra.mrb[28].mxu0 %v10794_v58 }
0x10ba   : > { %10662 = vmatpush3.bf16.msra.mxu0 %v11723_v5 }
0x10bb   : > { %10664 = vmatprep.subr.bf16.mxu0 %v11734_v9 }
0x10be   : > { %10666 = vmatpush3.bf16.msra.mxu0 %v11734_v9 }
0x10bf   : > { %10668 = vmatprep.subr.bf16.mxu0 %v11754_v16 }
0x10c2   : > { %10670 = vmatpush3.bf16.msra.mxu0 %v11754_v16 }
0x10c3   : > { %10672 = vmatprep.subr.bf16.mxu0 %v11767_v21 }
0x10c6   : > { %10674 = vmatpush3.bf16.msra.mxu0 %v11767_v21 }
0x10c7   : > { %10676 = vmatprep.subr.bf16.mxu0 %v11780_v24 }
0x10ca   : > { %10678 = vmatpush3.bf16.msra.mxu0 %v11780_v24 }
0x10cb   : > { %10680 = vmatprep.subr.bf16.mxu0 %v11790_v27 }
0x10ce   : > { %10682 = vmatpush3.bf16.msra.mxu0 %v11790_v27 }
0x10cf   : > { %10684 = vmatprep.subr.bf16.mxu0 %v11794_v28 }
0x10d2   : > { %10686 = vmatpush3.bf16.msra.mxu0 %v11794_v28 }
0x10d3   : > { %10688 = vmatprep.subr.bf16.mxu0 %v11805_v31 }
0x10d6   : > { %10690 = vmatpush3.bf16.msra.mxu0 %v11805_v31 }
0x10d7   : > { %10692 = vmatprep.subr.bf16.mxu0 %v11723_v5 }
0x118c   : > { %v9791_v20 = vpop.f32.mrb[28].mxu0 }
0x118d   : > { %v5442_v30 = vsub.f32 %v10794_v58, %v9791_v20  ;;  %v5432_v10 = vpop.f32.mrb[29].mxu0 }
0x118e   : > { %v5441_v56 = vsub.f32 %v10793_v4, %v5432_v10 }
0x118f   : > { %v5444_v45 = vmul.f32 %v5442_v30, %v5442_v30 }
0x1190   : > { %v5443_v48 = vmul.f32 %v5441_v56, %v5441_v56 }
0x1192   : > { %9824 = vmatprep.mubr.f32.mxu0 %v5443_v48 }
0x1193   : > { %9825 = vmatmul.mubr.f32.vlgmr.msra.gmra.mrb[30].mxu0 %v5444_v45 }
0x1194   : > { %10694 = vmatpush3.bf16.msra.mxu0 %v11723_v5 }
0x1195   : > { %10696 = vmatprep.subr.bf16.mxu0 %v11734_v9 }
0x1198   : > { %10698 = vmatpush3.bf16.msra.mxu0 %v11734_v9 }
0x1199   : > { %10700 = vmatprep.subr.bf16.mxu0 %v11754_v16 }
0x119c   : > { %10702 = vmatpush3.bf16.msra.mxu0 %v11754_v16 }
0x119d   : > { %10704 = vmatprep.subr.bf16.mxu0 %v11767_v21 }
0x11a0   : > { %10706 = vmatpush3.bf16.msra.mxu0 %v11767_v21 }
0x11a1   : > { %10708 = vmatprep.subr.bf16.mxu0 %v11780_v24 }
0x11a4   : > { %10710 = vmatpush3.bf16.msra.mxu0 %v11780_v24 }
0x11a5   : > { %10712 = vmatprep.subr.bf16.mxu0 %v11790_v27 }
0x11a8   : > { %10714 = vmatpush3.bf16.msra.mxu0 %v11790_v27 }
0x11a9   : > { %10716 = vmatprep.subr.bf16.mxu0 %v11794_v28 }
0x11ac   : > { %10718 = vmatpush3.bf16.msra.mxu0 %v11794_v28 }
0x11ad   : > { %10720 = vmatprep.subr.bf16.mxu0 %v11805_v31 }
0x11b0   : > { %10722 = vmatpush3.bf16.msra.mxu0 %v11805_v31 }
0x11b1   : > { %10724 = vmatprep.subr.bf16.mxu0 %v11723_v5 }
0x1266   : > { %v9826_v25 = vpop.f32.mrb[30].mxu0 }
0x1267   : > { %v5517_v40 = vadd.f32 1e-05, %v9826_v25  ;;  %v5511_v41 = vpop.f32.mrb[31].mxu0 }
0x1268   : > { %v5512_v52 = vadd.f32 1e-05, %v5511_v41 }
0x1269   : > { %11390 = vrsqrt.f32 %v5517_v40 }
0x126a   : > { %11392 = vrsqrt.f32 %v5512_v52 }
0x1273   : > { %v11391_v47 = vpop.eup %11390 }
0x1274   : > { %v11393_v29 = vpop.eup %11392  ;;  %v5523_v49 = vmul.f32 %v11391_v47, %v5442_v30 }
0x1275   : > { %v5522_v43 = vmul.f32 %v11393_v29, %v5441_v56 }
0x1276   : > { %v5525_v7 = vmul.f32 %v13100_v15, %v5523_v49 }
0x1277   : > { %v5524_v1 = vmul.f32 %v13100_v15, %v5522_v43 }
0x1278   : > { %v5527_v57 = vadd.f32 %v13107_v0, %v5525_v7 }
0x1279   : > { %v5526_v61 = vadd.f32 %v13107_v0, %v5524_v1 }
0x127a   : > { %v5531_v13 = vmul.f32 0.70710677, %v5527_v57  ;;  %v5529_v49 = vmul.f32 0.5, %v5527_v57 }
0x127b   : > { %v5530_v35 = vmul.f32 0.70710677, %v5526_v61  ;;  %v5528_v7 = vmul.f32 0.5, %v5526_v61 }
0x127c   : > { %v5537_v33 = vand.u32 2147483647, %v5531_v13  ;;  %vm5533_vm10 = vcmp.ge.f32.partialorder %v5531_v13, 0.0 }
0x127d   : > { %v5536_v14 = vand.u32 2147483647, %v5530_v35  ;;  %vm5532_vm11 = vcmp.ge.f32.partialorder %v5530_v35, 0.0  ;;  %v5535_v41 = vsel %vm5533_vm10, 1.0, %v14028_v53 }
0x127e   : > { %v5539_v44 = vmul.f32 0.3275911, %v5537_v33  ;;  %v5565_v11 = vsub.f32 0.0, %v5537_v33  ;;  %v5534_v52 = vsel %vm5532_vm11, 1.0, %v14028_v53 }
0x127f   : > { %v5538_v18 = vmul.f32 0.3275911, %v5536_v14  ;;  %v5564_v55 = vsub.f32 0.0, %v5536_v14 }
0x1280   : > { %v5541_v62 = vadd.f32 1.0, %v5539_v44  ;;  %v5567_v17 = vmul.f32 %v5565_v11, %v5537_v33 }
0x1281   : > { %v5540_v2 = vadd.f32 1.0, %v5538_v18  ;;  %v5566_v63 = vmul.f32 %v5564_v55, %v5536_v14 }
0x1282   : > { %11394 = vrcp.f32 %v5541_v62  ;;  %v5570_v46 = vmul.f32 1.442695, %v5567_v17  ;;  %v11212_v17 = vld [vmem:[%s13908_s13] sm:$0xff]  }
0x1283   : > { %11396 = vrcp.f32 %v5540_v2  ;;  %v5568_v36 = vmul.f32 1.442695, %v5566_v63  ;;  %v11216_v63 = vld [vmem:[%s13908_s13 + $0x20] sm:$0xff]  }
0x1284   : > { %11398 = vpow2.f32 %v5570_v46  ;;  %v13181_v46 = vld [vmem:[%s13907_s12] ss:$0 sm:$0xff] }
0x1285   : > { %11400 = vpow2.f32 %v5568_v36 }
0x128c   : > { %v11395_v39 = vpop.eup %11394 }
0x128d   : > { %v11397_v26 = vpop.eup %11396  ;;  %v5547_v22 = vmul.f32 1.0614054, %v11395_v39 }
0x128e   : > { %v5546_v12 = vmul.f32 1.0614054, %v11397_v26  ;;  %v11399_v30 = vpop.eup %11398 }
0x128f   : > { %v5549_v19 = vadd.f32 -1.4531521, %v5547_v22  ;;  %v11401_v56 = vpop.eup %11400  ;;  %v11217_v22 = vld [vmem:[%s13908_s13 + $0x28] sm:$0xff]  }
0x1290   : > { %v5548_v51 = vadd.f32 -1.4531521, %v5546_v12  ;;  %v11218_v12 = vld [vmem:[%s13908_s13 + $0x30] sm:$0xff]  }
0x1291   : > { %v5551_v42 = vmul.f32 %v11395_v39, %v5549_v19  ;;  %v11219_v19 = vld [vmem:[%s13908_s13 + $0x38] sm:$0xff]  }
0x1292   : > { %v5550_v59 = vmul.f32 %v11397_v26, %v5548_v51 }
0x1293   : > { %v5553_v32 = vadd.f32 1.4214138, %v5551_v42 }
0x1294   : > { %v5552_v37 = vadd.f32 1.4214138, %v5550_v59 }
0x1295   : > { %v5555_v6 = vmul.f32 %v11395_v39, %v5553_v32 }
0x1296   : > { %v5554_v60 = vmul.f32 %v11397_v26, %v5552_v37 }
0x1297   : > { %v5557_v4 = vadd.f32 -0.28449672, %v5555_v6 }
0x1298   : > { %v5556_v23 = vadd.f32 -0.28449672, %v5554_v60 }
0x1299   : > { %v5559_v8 = vmul.f32 %v11395_v39, %v5557_v4 }
0x129a   : > { %v5558_v34 = vmul.f32 %v11397_v26, %v5556_v23 }
0x129b   : > { %v5561_v58 = vadd.f32 0.2548296, %v5559_v8 }
0x129c   : > { %v5560_v3 = vadd.f32 0.2548296, %v5558_v34 }
0x129d   : > { %v5563_v20 = vmul.f32 %v11395_v39, %v5561_v58 }
0x129e   : > { %v5562_v10 = vmul.f32 %v11397_v26, %v5560_v3  ;;  %v11215_v26 = vld [vmem:[%s13908_s13 + $0x18] sm:$0xff]  }
0x129f   : > { %v5573_v48 = vmul.f32 %v11399_v30, %v5563_v20 }
0x12a0   : > { %v5572_v45 = vmul.f32 %v11401_v56, %v5562_v10 }
0x12a1   : > { %v5575_v25 = vsub.f32 1.0, %v5573_v48 }
0x12a2   : > { %v5574_v40 = vsub.f32 1.0, %v5572_v45 }
0x12a3   : > { %v5577_v47 = vmul.f32 %v5575_v25, %v5535_v41 }
0x12a4   : > { %v5576_v29 = vmul.f32 %v5574_v40, %v5534_v52 }
0x12a5   : > { %v5579_v43 = vadd.f32 1.0, %v5577_v47 }
0x12a6   : > { %v5578_v1 = vadd.f32 1.0, %v5576_v29 }
0x12a7   : > { %v5581_v33 = vmul.f32 %v5579_v43, %v5529_v49 }
0x12a8   : > { %v5580_v14 = vmul.f32 %v5578_v1, %v5528_v7 }
0x12a9   : > { %v13117_v13 = vadd.f32 %v5581_v33, %v12619_v38 }
0x12aa   : > { %v13114_v44 = vadd.f32 %v5580_v14, %v12615_v50  ;;  %v11220_v14 = vld [vmem:[%s13908_s13 + $0x40] sm:$0xff]  }
0x12ac   : > { %9859 = vmatprep.mubr.f32.mxu0 %v13114_v44 }
0x12ad   : > { %9860 = vmatmul.mubr.f32.vlgmr.msra.gmra.mrb[32].mxu0 %v13117_v13 }
0x12ae   : > { %10726 = vmatpush3.bf16.msra.mxu0 %v11723_v5 }
0x12af   : > { %10728 = vmatprep.subr.bf16.mxu0 %v11734_v9 }
0x12b2   : > { %10730 = vmatpush3.bf16.msra.mxu0 %v11734_v9 }
0x12b3   : > { %10732 = vmatprep.subr.bf16.mxu0 %v11754_v16 }
0x12b6   : > { %10734 = vmatpush3.bf16.msra.mxu0 %v11754_v16 }
0x12b7   : > { %10736 = vmatprep.subr.bf16.mxu0 %v11767_v21 }
0x12ba   : > { %10738 = vmatpush3.bf16.msra.mxu0 %v11767_v21 }
0x12bb   : > { %10740 = vmatprep.subr.bf16.mxu0 %v11780_v24 }
0x12be   : > { %10742 = vmatpush3.bf16.msra.mxu0 %v11780_v24 }
0x12bf   : > { %10744 = vmatprep.subr.bf16.mxu0 %v11790_v27 }
0x12c2   : > { %10746 = vmatpush3.bf16.msra.mxu0 %v11790_v27 }
0x12c3   : > { %10748 = vmatprep.subr.bf16.mxu0 %v11794_v28 }
0x12c6   : > { %10750 = vmatpush3.bf16.msra.mxu0 %v11794_v28 }
0x12c7   : > { %10752 = vmatprep.subr.bf16.mxu0 %v11805_v31 }
0x12ca   : > { %10754 = vmatpush3.bf16.msra.mxu0 %v11805_v31 }
0x1380   : > { %v9861_v5 = vpop.f32.mrb[32].mxu0 }
0x1381   : > { %v5660_v9 = vsub.f32 %v13117_v13, %v9861_v5  ;;  %v5650_v16 = vpop.f32.mrb[33].mxu0 }
0x1382   : > { %v5659_v21 = vsub.f32 %v13114_v44, %v5650_v16  ;;  %v11223_v16 = vld [vmem:[%s13908_s13 + $0x58] sm:$0xff]  }
0x1383   : > { %v5662_v24 = vmul.f32 %v5660_v9, %v5660_v9 }
0x1384   : > { %v5661_v50 = vmul.f32 %v5659_v21, %v5659_v21 }
0x1386   : > { %9894 = vmatprep.mubr.f32.mxu0 %v5661_v50  ;;  %v11225_v50 = vld [vmem:[%s13908_s13 + $0x68] sm:$0xff]  }
0x1387   : > { %9895 = vmatmul.mubr.f32.vlgmr.msra.gmra.mrb[34].mxu0 %v5662_v24  ;;  %v11226_v24 = vld [vmem:[%s13908_s13 + $0x70] sm:$0xff]  }
0x1388   : > { %10261 = vmatprep.mubr.msk.f32.mxu0 %vm11521_vm0, %v14029_v54 }
0x145a   : > { %v9896_v27 = vpop.f32.mrb[34].mxu0 }
0x145b   : > { %v5735_v38 = vadd.f32 1e-05, %v9896_v27  ;;  %v5729_v28 = vpop.f32.mrb[35].mxu0  ;;  %v11227_v27 = vld [vmem:[%s13908_s13 + $0x78] sm:$0xff]  }
0x145c   : > { %v5730_v57 = vadd.f32 1e-05, %v5729_v28 }
0x145d   : > { %11402 = vrsqrt.f32 %v5735_v38  ;;  %v11228_v38 = vld [vmem:[%s13908_s13 + $0x80] sm:$0xff]  }
0x145e   : > { %11404 = vrsqrt.f32 %v5730_v57  ;;  %v11229_v57 = vld [vmem:[%s13908_s13 + $0x88] sm:$0xff]  }
0x1467   : > { %v11403_v31 = vpop.eup %11402 }
0x1468   : > { %v11405_v61 = vpop.eup %11404  ;;  %v5741_v35 = vmul.f32 %v11403_v31, %v5660_v9  ;;  %v11221_v9 = vld [vmem:[%s13908_s13 + $0x48] sm:$0xff]   ;;  %v11230_v31 = vld [vmem:[%s13908_s13 + $0x90] sm:$0xff]  }
0x1469   : > { %v5740_v18 = vmul.f32 %v11405_v61, %v5659_v21  ;;  %v11224_v21 = vld [vmem:[%s13908_s13 + $0x60] sm:$0xff]   ;;  %v11231_v61 = vld [vmem:[%s13908_s13 + $0x98] sm:$0xff]  }
0x146a   : > { %v5743_v62 = vmul.f32 %v13100_v15, %v5741_v35  ;;  %v11232_v35 = vld [vmem:[%s13908_s13 + $0xa0] sm:$0xff]  }
0x146b   : > { %v5742_v2 = vmul.f32 %v13100_v15, %v5740_v18  ;;  %v11213_v15 = vld [vmem:[%s13908_s13 + $0x8] sm:$0xff]  }
0x146c   : > { %v5745_v11 = vadd.f32 %v13107_v0, %v5743_v62  ;;  %v11233_v18 = vld [vmem:[%s13908_s13 + $0xa8] sm:$0xff]   ;;  %v11234_v62 = vld [vmem:[%s13908_s13 + $0xb0] sm:$0xff]  }
0x146d   : > { %v5744_v55 = vadd.f32 %v13107_v0, %v5742_v2  ;;  %v11214_v0 = vld [vmem:[%s13908_s13 + $0x10] sm:$0xff]   ;;  %v11235_v2 = vld [vmem:[%s13908_s13 + $0xb8] sm:$0xff]  }
0x146f   : > { %v5746_v39 = vpack.c.bf16 %v5745_v11, %v5744_v55  ;;  %v11236_v11 = vld [vmem:[%s13908_s13 + $0xc0] sm:$0xff]  }
0x1471   : > { %9914 = vmatmul.mubr.bf16.vlgmr.msra.gmra.mrb[8].mxu1 %v5746_v39  ;;  %v11237_v39 = vld [vmem:[%s13908_s13 + $0xc8] sm:$0xff]  }
0x1472   : > { %9933 = vmatprep.mubr.msk.bf16.mxu1 %vm11521_vm0, %v14029_v54  ;;  %9918 = vmatpush3.bf16.msra.mxu1 %v11212_v17  ;;  %v11238_v17 = vld [vmem:[%s13908_s13 + $0xd0] sm:$0xff]  }
0x1473   : > { %9919 = vmatprep.subr.bf16.mxu1 %v14029_v54 }
0x1476   : > { %9920 = vmatpush3.bf16.msra.mxu1 %v11213_v15  ;;  %v11239_v15 = vld [vmem:[%s13908_s13 + $0xd8] sm:$0xff]  }
0x1477   : > { %9921 = vmatprep.subr.bf16.mxu1 %v14029_v54 }
0x147a   : > { %9922 = vmatpush3.bf16.msra.mxu1 %v11214_v0  ;;  %v11240_v0 = vld [vmem:[%s13908_s13 + $0xe0] sm:$0xff]  }
0x147b   : > { %9923 = vmatprep.subr.bf16.mxu1 %v14029_v54 }
0x147e   : > { %9924 = vmatpush3.bf16.msra.mxu1 %v11215_v26  ;;  %v11241_v26 = vld [vmem:[%s13908_s13 + $0xe8] sm:$0xff]  }
0x147f   : > { %9925 = vmatprep.subr.bf16.mxu1 %v14029_v54 }
0x1482   : > { %9926 = vmatpush3.bf16.msra.mxu1 %v11216_v63  ;;  %v11242_v63 = vld [vmem:[%s13908_s13 + $0xf0] sm:$0xff]  }
0x1483   : > { %9927 = vmatprep.subr.bf16.mxu1 %v14029_v54 }
0x1486   : > { %9928 = vmatpush3.bf16.msra.mxu1 %v11217_v22  ;;  %v11243_v22 = vld [vmem:[%s13908_s13 + $0xf8] sm:$0xff]  }
0x1487   : > { %9929 = vmatprep.subr.bf16.mxu1 %v14029_v54 }
0x148a   : > { %9930 = vmatpush3.bf16.msra.mxu1 %v11218_v12  ;;  %v11244_v12 = vld [vmem:[%s13908_s13 + $0x100] sm:$0xff]  }
0x148b   : > { %9931 = vmatprep.subr.bf16.mxu1 %v14029_v54 }
0x148e   : > { %9932 = vmatpush3.bf16.msra.mxu1 %v11219_v19 }
0x148f   : > { %9937 = vmatprep.subr.bf16.mxu1 %v14029_v54 }
0x1544   : > { %v5781_v51 = vpop.f32.mrb[8].mxu1 }
0x1545   : > { %v5782_v36 = vadd.f32 %v13181_v46, %v5781_v51  ;;  %v9915_v42 = vpop.f32.mrb[9].mxu1  ;;  %v11245_v51 = vld [vmem:[%s13908_s13 + $0x108] sm:$0xff]  }
0x1546   : > { %v13184_v59 = vpop.f32.mrb[10].mxu1  ;;  %v11247_v42 = vld [vmem:[%s13908_s13 + $0x118] sm:$0xff]  }
0x1547   : > { %v5790_v32 = vmul.f32 0.70710677, %v5782_v36  ;;  %v9916_v37 = vpop.f32.mrb[11].mxu1  ;;  %v5788_v43 = vmul.f32 0.5, %v5782_v36  ;;  %v11246_v36 = vld [vmem:[%s13908_s13 + $0x110] sm:$0xff]  }
0x1548   : > { %v11249_v37 = vld [vmem:[%s13908_s13 + $0x128] sm:$0xff]  }
0x1549   : > { %v5796_v6 = vand.u32 2147483647, %v5790_v32  ;;  %vm5792_vm12 = vcmp.ge.f32.partialorder %v5790_v32, 0.0  ;;  %v11248_v32 = vld [vmem:[%s13908_s13 + $0x120] sm:$0xff]  }
0x154a   : > { %v5794_v29 = vsel %vm5792_vm12, 1.0, %v14028_v53 }
0x154b   : > { %v5798_v60 = vmul.f32 0.3275911, %v5796_v6  ;;  %v5824_v23 = vsub.f32 0.0, %v5796_v6 }
0x154d   : > { %v5800_v4 = vadd.f32 1.0, %v5798_v60  ;;  %v5826_v34 = vmul.f32 %v5824_v23, %v5796_v6  ;;  %v11250_v6 = vld [vmem:[%s13908_s13 + $0x130] sm:$0xff]   ;;  %v11251_v60 = vld [vmem:[%s13908_s13 + $0x138] sm:$0xff]  }
0x154f   : > { %11406 = vrcp.f32 %v5800_v4  ;;  %v5828_v20 = vmul.f32 1.442695, %v5826_v34  ;;  %v11252_v4 = vld [vmem:[%s13908_s13 + $0x140] sm:$0xff]   ;;  %v11254_v34 = vld [vmem:[%s13908_s13 + $0x150] sm:$0xff]  }
0x1551   : > { %11408 = vpow2.f32 %v5828_v20  ;;  %v11257_v20 = vld [vmem:[%s13908_s13 + $0x168] sm:$0xff]  }
0x1559   : > { %v11407_v8 = vpop.eup %11406 }
0x155a   : > { %v5806_v58 = vmul.f32 1.0614054, %v11407_v8 }
0x155b   : > { %v11409_v41 = vpop.eup %11408 }
0x155c   : > { %v5808_v3 = vadd.f32 -1.4531521, %v5806_v58  ;;  %v11255_v58 = vld [vmem:[%s13908_s13 + $0x158] sm:$0xff]  }
0x155e   : > { %v5810_v30 = vmul.f32 %v11407_v8, %v5808_v3  ;;  %v11256_v3 = vld [vmem:[%s13908_s13 + $0x160] sm:$0xff]  }
0x1560   : > { %v5812_v10 = vadd.f32 1.4214138, %v5810_v30  ;;  %v11258_v30 = vld [vmem:[%s13908_s13 + $0x170] sm:$0xff]  }
0x1562   : > { %v5814_v56 = vmul.f32 %v11407_v8, %v5812_v10  ;;  %v11259_v10 = vld [vmem:[%s13908_s13 + $0x178] sm:$0xff]  }
0x1564   : > { %v5816_v48 = vadd.f32 -0.28449672, %v5814_v56  ;;  %v11260_v56 = vld [vmem:[%s13908_s13 + $0x180] sm:$0xff]  }
0x1566   : > { %v5818_v45 = vmul.f32 %v11407_v8, %v5816_v48 }
0x1568   : > { %v5820_v25 = vadd.f32 0.2548296, %v5818_v45  ;;  %v13374_v45 = vadd.f32 %v13181_v46, %v13184_v59  ;;  %v11263_v59 = vld [vmem:[%s13908_s13 + $0x198] sm:$0xff]  }
0x156a   : > { %v5822_v40 = vmul.f32 %v11407_v8, %v5820_v25  ;;  %v11253_v8 = vld [vmem:[%s13908_s13 + $0x148] sm:$0xff]  }
0x156b   : > { %v11261_v25 = vld [vmem:[%s13908_s13 + $0x188] sm:$0xff]  }
0x156c   : > { %v5832_v52 = vmul.f32 %v11409_v41, %v5822_v40  ;;  %v13383_v40 = vmul.f32 0.70710677, %v13374_v45  ;;  %v11262_v41 = vld [vmem:[%s13908_s13 + $0x190] sm:$0xff]  }
0x156e   : > { %v5834_v47 = vsub.f32 1.0, %v5832_v52  ;;  %v5797_v46 = vand.u32 2147483647, %v13383_v40  ;;  %vm5793_vm13 = vcmp.ge.f32.partialorder %v13383_v40, 0.0  ;;  %v11294_v40 = vld [vmem:[%s13908_s13 + $0x290] sm:$0xff]  }
0x1570   : > { %v5836_v49 = vmul.f32 %v5834_v47, %v5794_v29  ;;  %v5799_v52 = vmul.f32 0.3275911, %v5797_v46  ;;  %v11264_v47 = vld [vmem:[%s13908_s13 + $0x1a0] sm:$0xff]  }
0x1572   : > { %v5838_v7 = vadd.f32 1.0, %v5836_v49  ;;  %v5801_v29 = vadd.f32 1.0, %v5799_v52  ;;  %v11265_v49 = vld [vmem:[%s13908_s13 + $0x1a8] sm:$0xff]   ;;  %v11298_v52 = vld [vmem:[%s13908_s13 + $0x2b0] sm:$0xff]  }
0x1574   : > { %v5840_v1 = vmul.f32 %v5838_v7, %v5788_v43  ;;  %11410 = vrcp.f32 %v5801_v29  ;;  %v11266_v43 = vld [vmem:[%s13908_s13 + $0x1b0] sm:$0xff]   ;;  %v11267_v7 = vld [vmem:[%s13908_s13 + $0x1b8] sm:$0xff]   ;;  %v11300_v29 = vld [vmem:[%s13908_s13 + $0x2c0] sm:$0xff]  }
0x1576   : > { %v5842_v33 = vadd.f32 %v5840_v1, %v13114_v44  ;;  %v11222_v44 = vld [vmem:[%s13908_s13 + $0x50] sm:$0xff]   ;;  %v11268_v1 = vld [vmem:[%s13908_s13 + $0x1c0] sm:$0xff]  }
0x1578   : > { %v13191_v5 = vpack.c.bf16 %v5842_v33, %v5842_v33 }
0x157a   : > { %9934 = vmatmul.mubr.bf16.vlgmr.msra.gmra.mrb[12].mxu1 %v13191_v5  ;;  %v13228_v28 = vshrl.u32 %v13191_v5, 16  ;;  %v6079_v55 = vrot.slane %v13191_v5, 1  ;;  %v6295_v23 = vrot.slane %v13191_v5, 2  ;;  %v6511_v33 = vrot.slane %v13191_v5, 3  ;;  %v11270_v5 = vld [vmem:[%s13908_s13 + $0x1d0] sm:$0xff]  }
0x157b   : > { %9938 = vmatpush3.bf16.msra.mxu1 %v11220_v14  ;;  %9953 = vmatprep.mubr.msk.bf16.mxu1 %vm11521_vm0, %v14029_v54 }
0x157c   : > { %9939 = vmatprep.subr.bf16.mxu1 %v14029_v54  ;;  %v6187_v19 = vrot.slane %v13228_v28, 1  ;;  %v6403_v48 = vrot.slane %v13228_v28, 2 }
0x157e   : > { %v11411_v14 = vpop.eup %11410 }
0x157f   : > { %9940 = vmatpush3.bf16.msra.mxu1 %v11221_v9  ;;  %v11269_v9 = vld [vmem:[%s13908_s13 + $0x1c8] sm:$0xff]  }
0x1580   : > { %9941 = vmatprep.subr.bf16.mxu1 %v14029_v54 }
0x1583   : > { %9942 = vmatpush3.bf16.msra.mxu1 %v11222_v44  ;;  %v5807_v44 = vmul.f32 1.0614054, %v11411_v14 }
0x1584   : > { %9943 = vmatprep.subr.bf16.mxu1 %v14029_v54 }
0x1587   : > { %9944 = vmatpush3.bf16.msra.mxu1 %v11223_v16  ;;  %v5809_v16 = vadd.f32 -1.4531521, %v5807_v44  ;;  %v11307_v44 = vld [vmem:[%s13908_s13 + $0x2f8] sm:$0xff]  }
0x1588   : > { %9945 = vmatprep.subr.bf16.mxu1 %v14029_v54 }
0x158b   : > { %9946 = vmatpush3.bf16.msra.mxu1 %v11224_v21  ;;  %v11271_v21 = vld [vmem:[%s13908_s13 + $0x1d8] sm:$0xff]  }
0x158c   : > { %9947 = vmatprep.subr.bf16.mxu1 %v14029_v54 }
0x158f   : > { %9948 = vmatpush3.bf16.msra.mxu1 %v11225_v50  ;;  %v5811_v50 = vmul.f32 %v11411_v14, %v5809_v16 }
0x1590   : > { %9949 = vmatprep.subr.bf16.mxu1 %v14029_v54 }
0x1593   : > { %9950 = vmatpush3.bf16.msra.mxu1 %v11226_v24  ;;  %v11272_v24 = vld [vmem:[%s13908_s13 + $0x1e0] sm:$0xff]  }
0x1594   : > { %9951 = vmatprep.subr.bf16.mxu1 %v14029_v54 }
0x1597   : > { %9952 = vmatpush3.bf16.msra.mxu1 %v11227_v27  ;;  %v5813_v27 = vadd.f32 1.4214138, %v5811_v50  ;;  %v7579_v50 = vld [vmem:[%s13910_s15 + $0x8] sm:$0xff] }
0x1598   : > { %9957 = vmatprep.subr.bf16.mxu1 %v14029_v54 }
0x159a   : > { %9954 = vmatmul.mubr.bf16.vlgmr.msra.gmra.mrb[12].mxu1 %v13228_v28 }
0x159b   : > { %9958 = vmatpush3.bf16.msra.mxu1 %v11228_v38  ;;  %9973 = vmatprep.mubr.msk.bf16.mxu1 %vm11521_vm0, %v14029_v54  ;;  %v5825_v38 = vsub.f32 0.0, %v5797_v46 }
0x159c   : > { %9959 = vmatprep.subr.bf16.mxu1 %v14029_v54 }
0x159f   : > { %9960 = vmatpush3.bf16.msra.mxu1 %v11229_v57  ;;  %v11273_v57 = vld [vmem:[%s13908_s13 + $0x1e8] sm:$0xff]  }
0x15a0   : > { %9961 = vmatprep.subr.bf16.mxu1 %v14029_v54 }
0x15a3   : > { %9962 = vmatpush3.bf16.msra.mxu1 %v11230_v31  ;;  %v5815_v31 = vmul.f32 %v11411_v14, %v5813_v27  ;;  %v11309_v27 = vld [vmem:[%s13908_s13 + $0x308] sm:$0xff]  }
0x15a4   : > { %9963 = vmatprep.subr.bf16.mxu1 %v14029_v54 }
0x15a7   : > { %9964 = vmatpush3.bf16.msra.mxu1 %v11231_v61  ;;  %v5827_v61 = vmul.f32 %v5825_v38, %v5797_v46  ;;  %v11296_v46 = vld [vmem:[%s13908_s13 + $0x2a0] sm:$0xff]  }
0x15a8   : > { %9965 = vmatprep.subr.bf16.mxu1 %v14029_v54 }
0x15ab   : > { %9966 = vmatpush3.bf16.msra.mxu1 %v11232_v35  ;;  %v11274_v35 = vld [vmem:[%s13908_s13 + $0x1f0] sm:$0xff]  }
0x15ac   : > { %9967 = vmatprep.subr.bf16.mxu1 %v14029_v54 }
0x15af   : > { %9968 = vmatpush3.bf16.msra.mxu1 %v11233_v18  ;;  %v5817_v18 = vadd.f32 -0.28449672, %v5815_v31  ;;  %v11554_v31 = vmov 0.0|0.0  }
0x15b0   : > { %9969 = vmatprep.subr.bf16.mxu1 %v14029_v54  ;;  %10755 = vmatprep.subr.bf16.mxu0 %v11554_v31 }
0x15b3   : > { %9970 = vmatpush3.bf16.msra.mxu1 %v11234_v62  ;;  %v5830_v62 = vmul.f32 1.442695, %v5827_v61 }
0x15b4   : > { %9971 = vmatprep.subr.bf16.mxu1 %v14029_v54 }
0x15b5   : > { %11412 = vpow2.f32 %v5830_v62  ;;  %v11310_v62 = vld [vmem:[%s13908_s13 + $0x310] sm:$0xff]  }
0x15b7   : > { %9972 = vmatpush3.bf16.msra.mxu1 %v11235_v2  ;;  %v11275_v2 = vld [vmem:[%s13908_s13 + $0x1f8] sm:$0xff]  }
0x15b8   : > { %9977 = vmatprep.subr.bf16.mxu1 %v14029_v54 }
0x15ba   : > { %9974 = vmatmul.mubr.bf16.vlgmr.msra.gmra.mrb[12].mxu1 %v6079_v55  ;;  %v11276_v55 = vld [vmem:[%s13908_s13 + $0x200] sm:$0xff]  }
0x15bb   : > { %9978 = vmatpush3.bf16.msra.mxu1 %v11236_v11  ;;  %9993 = vmatprep.mubr.msk.bf16.mxu1 %vm11521_vm0, %v14029_v54  ;;  %v5819_v11 = vmul.f32 %v11411_v14, %v5817_v18  ;;  %v7583_v18 = vld [vmem:[%s13910_s15 + $0x28] sm:$0xff] }
0x15bc   : > { %9979 = vmatprep.subr.bf16.mxu1 %v14029_v54 }
0x15bf   : > { %9980 = vmatpush3.bf16.msra.mxu1 %v11237_v39  ;;  %v5821_v39 = vadd.f32 0.2548296, %v5819_v11  ;;  %v7584_v11 = vld [vmem:[%s13910_s15 + $0x30] sm:$0xff] }
0x15c0   : > { %9981 = vmatprep.subr.bf16.mxu1 %v14029_v54 }
0x15c3   : > { %9982 = vmatpush3.bf16.msra.mxu1 %v11238_v17  ;;  %v6619_v17 = vrot.slane %v13228_v28, 3  ;;  %v11278_v28 = vld [vmem:[%s13908_s13 + $0x210] sm:$0xff]  }
0x15c4   : > { %9983 = vmatprep.subr.bf16.mxu1 %v14029_v54 }
0x15c7   : > { %9984 = vmatpush3.bf16.msra.mxu1 %v11239_v15  ;;  %v11277_v15 = vld [vmem:[%s13908_s13 + $0x208] sm:$0xff]  }
0x15c8   : > { %9985 = vmatprep.subr.bf16.mxu1 %v14029_v54 }
0x15cb   : > { %9986 = vmatpush3.bf16.msra.mxu1 %v11240_v0  ;;  %v5823_v0 = vmul.f32 %v11411_v14, %v5821_v39  ;;  %v11305_v14 = vld [vmem:[%s13908_s13 + $0x2e8] sm:$0xff]   ;;  %v11311_v39 = vld [vmem:[%s13908_s13 + $0x318] sm:$0xff]  }
0x15cc   : > { %9987 = vmatprep.subr.bf16.mxu1 %v14029_v54 }
0x15cf   : > { %9988 = vmatpush3.bf16.msra.mxu1 %v11241_v26  ;;  %v11413_v26 = vpop.eup %11412 }
0x15d0   : > { %9989 = vmatprep.subr.bf16.mxu1 %v14029_v54 }
0x15d3   : > { %9990 = vmatpush3.bf16.msra.mxu1 %v11242_v63  ;;  %v5833_v63 = vmul.f32 %v11413_v26, %v5823_v0  ;;  %v7587_v0 = vld [vmem:[%s13910_s15 + $0x48] sm:$0xff]  ;;  %v11312_v26 = vld [vmem:[%s13908_s13 + $0x320] sm:$0xff]  }
0x15d4   : > { %9991 = vmatprep.subr.bf16.mxu1 %v14029_v54 }
0x15d7   : > { %9992 = vmatpush3.bf16.msra.mxu1 %v11243_v22  ;;  %v11279_v22 = vld [vmem:[%s13908_s13 + $0x218] sm:$0xff]  }
0x15d8   : > { %9997 = vmatprep.subr.bf16.mxu1 %v14029_v54 }
0x15da   : > { %9994 = vmatmul.mubr.bf16.vlgmr.msra.gmra.mrb[12].mxu1 %v6187_v19  ;;  %v5795_v19 = vsel %vm5793_vm13, 1.0, %v14028_v53 }
0x15db   : > { %9998 = vmatpush3.bf16.msra.mxu1 %v11244_v12  ;;  %10013 = vmatprep.mubr.msk.bf16.mxu1 %vm11521_vm0, %v14029_v54  ;;  %v5835_v12 = vsub.f32 1.0, %v5833_v63  ;;  %v11313_v63 = vld [vmem:[%s13908_s13 + $0x328] sm:$0xff]  }
0x15dc   : > { %9999 = vmatprep.subr.bf16.mxu1 %v14029_v54 }
0x15df   : > { %10000 = vmatpush3.bf16.msra.mxu1 %v11245_v51  ;;  %v11280_v51 = vld [vmem:[%s13908_s13 + $0x220] sm:$0xff]  }
0x15e0   : > { %10001 = vmatprep.subr.bf16.mxu1 %v14029_v54 }
0x15e3   : > { %10002 = vmatpush3.bf16.msra.mxu1 %v11246_v36  ;;  %v5837_v36 = vmul.f32 %v5835_v12, %v5795_v19  ;;  %v11315_v12 = vld [vmem:[%s13908_s13 + $0x338] sm:$0xff]   ;;  %v11316_v19 = vld [vmem:[%s13908_s13 + $0x340] sm:$0xff]  }
0x15e4   : > { %10003 = vmatprep.subr.bf16.mxu1 %v14029_v54 }
0x15e7   : > { %10004 = vmatpush3.bf16.msra.mxu1 %v11247_v42  ;;  %v11281_v42 = vld [vmem:[%s13908_s13 + $0x228] sm:$0xff]  }
0x15e8   : > { %10005 = vmatprep.subr.bf16.mxu1 %v14029_v54 }
0x15eb   : > { %10006 = vmatpush3.bf16.msra.mxu1 %v11248_v32  ;;  %v5839_v32 = vadd.f32 1.0, %v5837_v36  ;;  %v11317_v36 = vld [vmem:[%s13908_s13 + $0x348] sm:$0xff]  }
0x15ec   : > { %10007 = vmatprep.subr.bf16.mxu1 %v14029_v54 }
0x15ef   : > { %10008 = vmatpush3.bf16.msra.mxu1 %v11249_v37  ;;  %v5789_v37 = vmul.f32 0.5, %v13374_v45 }
0x15f0   : > { %10009 = vmatprep.subr.bf16.mxu1 %v14029_v54 }
0x15f3   : > { %10010 = vmatpush3.bf16.msra.mxu1 %v11250_v6  ;;  %v11282_v6 = vld [vmem:[%s13908_s13 + $0x230] sm:$0xff]  }
0x15f4   : > { %10011 = vmatprep.subr.bf16.mxu1 %v14029_v54 }
0x15f7   : > { %10012 = vmatpush3.bf16.msra.mxu1 %v11251_v60  ;;  %v5841_v60 = vmul.f32 %v5839_v32, %v5789_v37  ;;  %v11319_v32 = vld [vmem:[%s13908_s13 + $0x358] sm:$0xff]   ;;  %v11320_v37 = vld [vmem:[%s13908_s13 + $0x360] sm:$0xff]  }
0x15f8   : > { %10017 = vmatprep.subr.bf16.mxu1 %v14029_v54 }
0x15fa   : > { %10014 = vmatmul.mubr.bf16.vlgmr.msra.gmra.mrb[12].mxu1 %v6295_v23  ;;  %v5843_v23 = vadd.f32 %v5841_v60, %v13117_v13  ;;  %v11286_v13 = vld [vmem:[%s13908_s13 + $0x250] sm:$0xff]  }
0x15fb   : > { %10018 = vmatpush3.bf16.msra.mxu1 %v11252_v4  ;;  %10033 = vmatprep.mubr.msk.bf16.mxu1 %vm11521_vm0, %v14029_v54  ;;  %v11283_v4 = vld [vmem:[%s13908_s13 + $0x238] sm:$0xff]   ;;  %v11322_v60 = vld [vmem:[%s13908_s13 + $0x370] sm:$0xff]  }
0x15fc   : > { %10019 = vmatprep.subr.bf16.mxu1 %v14029_v54 }
0x15ff   : > { %10020 = vmatpush3.bf16.msra.mxu1 %v11253_v8  ;;  %v11284_v8 = vld [vmem:[%s13908_s13 + $0x240] sm:$0xff]  }
0x1600   : > { %10021 = vmatprep.subr.bf16.mxu1 %v14029_v54 }
0x1603   : > { %10022 = vmatpush3.bf16.msra.mxu1 %v11254_v34  ;;  %v13487_v34 = vpack.c.bf16 %v5843_v23, %v5843_v23  ;;  %v11324_v23 = vld [vmem:[%s13908_s13 + $0x380] sm:$0xff]  }
0x1604   : > { %10023 = vmatprep.subr.bf16.mxu1 %v14029_v54 }
0x1605   : > { %v13525_v45 = vshrl.u32 %v13487_v34, 16 }
0x1607   : > { %10024 = vmatpush3.bf16.msra.mxu1 %v11255_v58  ;;  %v11285_v58 = vld [vmem:[%s13908_s13 + $0x248] sm:$0xff]   ;;  %v7053_v16 = vrot.slane %v13525_v45, 1 }
0x1608   : > { %10025 = vmatprep.subr.bf16.mxu1 %v14029_v54 }
0x160b   : > { %10026 = vmatpush3.bf16.msra.mxu1 %v11256_v3  ;;  %v11287_v3 = vld [vmem:[%s13908_s13 + $0x258] sm:$0xff]  }
0x160c   : > { %10027 = vmatprep.subr.bf16.mxu1 %v14029_v54 }
0x160f   : > { %10028 = vmatpush3.bf16.msra.mxu1 %v11257_v20  ;;  %v11288_v20 = vld [vmem:[%s13908_s13 + $0x260] sm:$0xff]  }
0x1610   : > { %10029 = vmatprep.subr.bf16.mxu1 %v14029_v54 }
0x1613   : > { %10030 = vmatpush3.bf16.msra.mxu1 %v11258_v30  ;;  %v11289_v30 = vld [vmem:[%s13908_s13 + $0x268] sm:$0xff]  }
0x1614   : > { %10031 = vmatprep.subr.bf16.mxu1 %v14029_v54 }
0x1617   : > { %10032 = vmatpush3.bf16.msra.mxu1 %v11259_v10  ;;  %v11290_v10 = vld [vmem:[%s13908_s13 + $0x270] sm:$0xff]  }
0x1618   : > { %10037 = vmatprep.subr.bf16.mxu1 %v14029_v54 }
0x161a   : > { %10034 = vmatmul.mubr.bf16.vlgmr.msra.gmra.mrb[12].mxu1 %v6403_v48  ;;  %v11292_v48 = vld [vmem:[%s13908_s13 + $0x280] sm:$0xff]  }
0x161b   : > { %10038 = vmatpush3.bf16.msra.mxu1 %v11260_v56  ;;  %10053 = vmatprep.mubr.msk.bf16.mxu1 %vm11521_vm0, %v14029_v54  ;;  %v11291_v56 = vld [vmem:[%s13908_s13 + $0x278] sm:$0xff]  }
0x161c   : > { %10039 = vmatprep.subr.bf16.mxu1 %v14029_v54 }
0x161f   : > { %10040 = vmatpush3.bf16.msra.mxu1 %v11261_v25  ;;  %v11293_v25 = vld [vmem:[%s13908_s13 + $0x288] sm:$0xff]  }
0x1620   : > { %10041 = vmatprep.subr.bf16.mxu1 %v14029_v54 }
0x1623   : > { %10042 = vmatpush3.bf16.msra.mxu1 %v11262_v41  ;;  %v11295_v41 = vld [vmem:[%s13908_s13 + $0x298] sm:$0xff]  }
0x1624   : > { %10043 = vmatprep.subr.bf16.mxu1 %v14029_v54 }
0x1627   : > { %10044 = vmatpush3.bf16.msra.mxu1 %v11263_v59  ;;  %v11297_v59 = vld [vmem:[%s13908_s13 + $0x2a8] sm:$0xff]  }
0x1628   : > { %10045 = vmatprep.subr.bf16.mxu1 %v14029_v54 }
0x162b   : > { %10046 = vmatpush3.bf16.msra.mxu1 %v11264_v47  ;;  %v11299_v47 = vld [vmem:[%s13908_s13 + $0x2b8] sm:$0xff]  }
0x162c   : > { %10047 = vmatprep.subr.bf16.mxu1 %v14029_v54 }
0x162f   : > { %10048 = vmatpush3.bf16.msra.mxu1 %v11265_v49  ;;  %v6945_v49 = vrot.slane %v13487_v34, 1 }
0x1630   : > { %10049 = vmatprep.subr.bf16.mxu1 %v14029_v54 }
0x1633   : > { %10050 = vmatpush3.bf16.msra.mxu1 %v11266_v43  ;;  %v11301_v43 = vld [vmem:[%s13908_s13 + $0x2c8] sm:$0xff]  }
0x1634   : > { %10051 = vmatprep.subr.bf16.mxu1 %v14029_v54 }
0x1637   : > { %10052 = vmatpush3.bf16.msra.mxu1 %v11267_v7  ;;  %v11302_v7 = vld [vmem:[%s13908_s13 + $0x2d0] sm:$0xff]  }
0x1638   : > { %10057 = vmatprep.subr.bf16.mxu1 %v14029_v54 }
0x163a   : > { %10054 = vmatmul.mubr.bf16.vlgmr.msra.gmra.mrb[12].mxu1 %v6511_v33  ;;  %v11304_v33 = vld [vmem:[%s13908_s13 + $0x2e0] sm:$0xff]  }
0x163b   : > { %10058 = vmatpush3.bf16.msra.mxu1 %v11268_v1  ;;  %10073 = vmatprep.mubr.msk.bf16.mxu1 %vm11521_vm0, %v14029_v54  ;;  %v11303_v1 = vld [vmem:[%s13908_s13 + $0x2d8] sm:$0xff]  }
0x163c   : > { %10059 = vmatprep.subr.bf16.mxu1 %v14029_v54 }
0x163f   : > { %10060 = vmatpush3.bf16.msra.mxu1 %v11269_v9  ;;  %v11306_v9 = vld [vmem:[%s13908_s13 + $0x2f0] sm:$0xff]  }
0x1640   : > { %10061 = vmatprep.subr.bf16.mxu1 %v14029_v54 }
0x1643   : > { %10062 = vmatpush3.bf16.msra.mxu1 %v11270_v5  ;;  %v11308_v5 = vld [vmem:[%s13908_s13 + $0x300] sm:$0xff]  }
0x1644   : > { %10063 = vmatprep.subr.bf16.mxu1 %v14029_v54 }
0x1647   : > { %10064 = vmatpush3.bf16.msra.mxu1 %v11271_v21  ;;  %v7578_v21 = vld [vmem:[%s13910_s15] sm:$0xff] }
0x1648   : > { %10065 = vmatprep.subr.bf16.mxu1 %v14029_v54  ;;  %v13613_v38 = vpack.c.bf16 %v7579_v50, %v7578_v21 }
0x164a   : > { %10757 = vmatpush3.bf16.msra.mxu0 %v13613_v38 }
0x164b   : > { %10066 = vmatpush3.bf16.msra.mxu1 %v11272_v24  ;;  %v7580_v24 = vld [vmem:[%s13910_s15 + $0x10] sm:$0xff]  ;;  %10758 = vmatprep.subr.bf16.mxu0 %v11554_v31 }
0x164c   : > { %10067 = vmatprep.subr.bf16.mxu1 %v14029_v54 }
0x164f   : > { %10068 = vmatpush3.bf16.msra.mxu1 %v11273_v57  ;;  %v7581_v57 = vld [vmem:[%s13910_s15 + $0x18] sm:$0xff] }
0x1650   : > { %10069 = vmatprep.subr.bf16.mxu1 %v14029_v54  ;;  %v13621_v61 = vpack.c.bf16 %v7581_v57, %v7580_v24  ;;  %v11340_v24 = vld [vmem:[%s13913_s18] sm:$0xff]   ;;  %v11343_v57 = vld [vmem:[%s13913_s18 + $0x18] sm:$0xff]  }
0x1652   : > { %10760 = vmatpush3.bf16.msra.mxu0 %v13621_v61 }
0x1653   : > { %10070 = vmatpush3.bf16.msra.mxu1 %v11274_v35  ;;  %v7582_v35 = vld [vmem:[%s13910_s15 + $0x20] sm:$0xff]  ;;  %10761 = vmatprep.subr.bf16.mxu0 %v11554_v31 }
0x1654   : > { %10071 = vmatprep.subr.bf16.mxu1 %v14029_v54 }
0x1657   : > { %10072 = vmatpush3.bf16.msra.mxu1 %v11275_v2  ;;  %v13635_v2 = vpack.c.bf16 %v7583_v18, %v7582_v35 }
0x1658   : > { %10077 = vmatprep.subr.bf16.mxu1 %v14029_v54 }
0x1659   : > { %10763 = vmatpush3.bf16.msra.mxu0 %v13635_v2 }
0x165a   : > { %10074 = vmatmul.mubr.bf16.vlgmr.msra.gmra.mrb[12].mxu1 %v6619_v17  ;;  %10764 = vmatprep.subr.bf16.mxu0 %v11554_v31 }
0x165b   : > { %10078 = vmatpush3.bf16.msra.mxu1 %v11276_v55  ;;  %10093 = vmatprep.mubr.msk.bf16.mxu1 %vm11521_vm0, %v14029_v54  ;;  %v7585_v55 = vld [vmem:[%s13910_s15 + $0x38] sm:$0xff] }
0x165c   : > { %10079 = vmatprep.subr.bf16.mxu1 %v14029_v54  ;;  %v13649_v17 = vpack.c.bf16 %v7585_v55, %v7584_v11  ;;  %v7576_v11 = vld [vmem:[%s13911_s16] sm:$0x1] }
0x165e   : > { %10766 = vmatpush3.bf16.msra.mxu0 %v13649_v17 }
0x165f   : > { %10080 = vmatpush3.bf16.msra.mxu1 %v11277_v15  ;;  %v7586_v15 = vld [vmem:[%s13910_s15 + $0x40] sm:$0xff]  ;;  %10767 = vmatprep.subr.bf16.mxu0 %v11554_v31 }
0x1660   : > { %10081 = vmatprep.subr.bf16.mxu1 %v14029_v54 }
0x1663   : > { %10082 = vmatpush3.bf16.msra.mxu1 %v11278_v28  ;;  %v13663_v28 = vpack.c.bf16 %v7587_v0, %v7586_v15 }
0x1664   : > { %10083 = vmatprep.subr.bf16.mxu1 %v14029_v54 }
0x1665   : > { %10769 = vmatpush3.bf16.msra.mxu0 %v13663_v28 }
0x1666   : > { %10770 = vmatprep.subr.bf16.mxu0 %v11554_v31 }
0x1667   : > { %10084 = vmatpush3.bf16.msra.mxu1 %v11279_v22  ;;  %v11314_v22 = vld [vmem:[%s13908_s13 + $0x330] sm:$0xff]  }
0x1668   : > { %10085 = vmatprep.subr.bf16.mxu1 %v14029_v54 }
0x166b   : > { %10086 = vmatpush3.bf16.msra.mxu1 %v11280_v51  ;;  %v7161_v51 = vrot.slane %v13487_v34, 2 }
0x166c   : > { %10087 = vmatprep.subr.bf16.mxu1 %v14029_v54 }
0x166f   : > { %10088 = vmatpush3.bf16.msra.mxu1 %v11281_v42  ;;  %v11318_v42 = vld [vmem:[%s13908_s13 + $0x350] sm:$0xff]  }
0x1670   : > { %10089 = vmatprep.subr.bf16.mxu1 %v14029_v54 }
0x1673   : > { %10090 = vmatpush3.bf16.msra.mxu1 %v11282_v6  ;;  %v11321_v6 = vld [vmem:[%s13908_s13 + $0x368] sm:$0xff]  }
0x1674   : > { %10091 = vmatprep.subr.bf16.mxu1 %v14029_v54 }
0x1677   : > { %10092 = vmatpush3.bf16.msra.mxu1 %v11283_v4  ;;  %v11323_v4 = vld [vmem:[%s13908_s13 + $0x378] sm:$0xff]  }
0x1678   : > { %10097 = vmatprep.subr.bf16.mxu1 %v14029_v54 }
0x167a   : > { %10094 = vmatmul.mubr.bf16.vlgmr.msra.gmra.mrb[12].mxu1 %v13487_v34 }
0x167b   : > { %10098 = vmatpush3.bf16.msra.mxu1 %v11284_v8  ;;  %10113 = vmatprep.mubr.msk.bf16.mxu1 %vm11521_vm0, %v14029_v54  ;;  %v7269_v8 = vrot.slane %v13525_v45, 2 }
0x167c   : > { %10099 = vmatprep.subr.bf16.mxu1 %v14029_v54 }
0x167f   : > { %10100 = vmatpush3.bf16.msra.mxu1 %v11285_v58  ;;  %v11325_v58 = vld [vmem:[%s13908_s13 + $0x388] sm:$0xff]  }
0x1680   : > { %10101 = vmatprep.subr.bf16.mxu1 %v14029_v54 }
0x1683   : > { %10102 = vmatpush3.bf16.msra.mxu1 %v11286_v13  ;;  %v11326_v13 = vld [vmem:[%s13908_s13 + $0x390] sm:$0xff]  }
0x1684   : > { %10103 = vmatprep.subr.bf16.mxu1 %v14029_v54 }
0x1687   : > { %10104 = vmatpush3.bf16.msra.mxu1 %v11287_v3  ;;  %v11327_v3 = vld [vmem:[%s13908_s13 + $0x398] sm:$0xff]  }
0x1688   : > { %10105 = vmatprep.subr.bf16.mxu1 %v14029_v54 }
0x168b   : > { %10106 = vmatpush3.bf16.msra.mxu1 %v11288_v20  ;;  %v11328_v20 = vld [vmem:[%s13908_s13 + $0x3a0] sm:$0xff]  }
0x168c   : > { %10107 = vmatprep.subr.bf16.mxu1 %v14029_v54 }
0x168f   : > { %10108 = vmatpush3.bf16.msra.mxu1 %v11289_v30  ;;  %v11329_v30 = vld [vmem:[%s13908_s13 + $0x3a8] sm:$0xff]  }
0x1690   : > { %10109 = vmatprep.subr.bf16.mxu1 %v14029_v54 }
0x1693   : > { %10110 = vmatpush3.bf16.msra.mxu1 %v11290_v10  ;;  %v11330_v10 = vld [vmem:[%s13908_s13 + $0x3b0] sm:$0xff]  }
0x1694   : > { %10111 = vmatprep.subr.bf16.mxu1 %v14029_v54 }
0x1697   : > { %10112 = vmatpush3.bf16.msra.mxu1 %v11291_v56  ;;  %v11331_v56 = vld [vmem:[%s13908_s13 + $0x3b8] sm:$0xff]  }
0x1698   : > { %10117 = vmatprep.subr.bf16.mxu1 %v14029_v54 }
0x169a   : > { %10114 = vmatmul.mubr.bf16.vlgmr.msra.gmra.mrb[12].mxu1 %v13525_v45 }
0x169b   : > { %10118 = vmatpush3.bf16.msra.mxu1 %v11292_v48  ;;  %10133 = vmatprep.mubr.msk.bf16.mxu1 %vm11521_vm0, %v14029_v54  ;;  %v11332_v48 = vld [vmem:[%s13908_s13 + $0x3c0] sm:$0xff]  }
0x169c   : > { %10119 = vmatprep.subr.bf16.mxu1 %v14029_v54 }
0x169f   : > { %10120 = vmatpush3.bf16.msra.mxu1 %v11293_v25  ;;  %v7377_v25 = vrot.slane %v13487_v34, 3  ;;  %v11335_v34 = vld [vmem:[%s13908_s13 + $0x3d8] sm:$0xff]  }
0x16a0   : > { %10121 = vmatprep.subr.bf16.mxu1 %v14029_v54 }
0x16a3   : > { %10122 = vmatpush3.bf16.msra.mxu1 %v11294_v40  ;;  %v11333_v40 = vld [vmem:[%s13908_s13 + $0x3c8] sm:$0xff]  }
0x16a4   : > { %10123 = vmatprep.subr.bf16.mxu1 %v14029_v54 }
0x16a7   : > { %10124 = vmatpush3.bf16.msra.mxu1 %v11295_v41  ;;  %v11334_v41 = vld [vmem:[%s13908_s13 + $0x3d0] sm:$0xff]  }
0x16a8   : > { %10125 = vmatprep.subr.bf16.mxu1 %v14029_v54 }
0x16ab   : > { %10126 = vmatpush3.bf16.msra.mxu1 %v11296_v46  ;;  %v11336_v46 = vld [vmem:[%s13908_s13 + $0x3e0] sm:$0xff]  }
0x16ac   : > { %10127 = vmatprep.subr.bf16.mxu1 %v14029_v54 }
0x16af   : > { %10128 = vmatpush3.bf16.msra.mxu1 %v11297_v59  ;;  %v11337_v59 = vld [vmem:[%s13908_s13 + $0x3e8] sm:$0xff]  }
0x16b0   : > { %10129 = vmatprep.subr.bf16.mxu1 %v14029_v54 }
0x16b3   : > { %10130 = vmatpush3.bf16.msra.mxu1 %v11298_v52  ;;  %v11338_v52 = vld [vmem:[%s13908_s13 + $0x3f0] sm:$0xff]  }
0x16b4   : > { %10131 = vmatprep.subr.bf16.mxu1 %v14029_v54 }
0x16b7   : > { %10132 = vmatpush3.bf16.msra.mxu1 %v11299_v47  ;;  %v11339_v47 = vld [vmem:[%s13908_s13 + $0x3f8] sm:$0xff]  }
0x16b8   : > { %10137 = vmatprep.subr.bf16.mxu1 %v14029_v54 }
0x16ba   : > { %10134 = vmatmul.mubr.bf16.vlgmr.msra.gmra.mrb[12].mxu1 %v6945_v49  ;;  %v7588_v49 = vld [vmem:[%s13910_s15 + $0x50] sm:$0xff] }
0x16bb   : > { %10138 = vmatpush3.bf16.msra.mxu1 %v11300_v29  ;;  %10153 = vmatprep.mubr.msk.bf16.mxu1 %vm11521_vm0, %v14029_v54  ;;  %v7485_v29 = vrot.slane %v13525_v45, 3 }
0x16bc   : > { %10139 = vmatprep.subr.bf16.mxu1 %v14029_v54 }
0x16bf   : > { %10140 = vmatpush3.bf16.msra.mxu1 %v11301_v43  ;;  %v7589_v43 = vld [vmem:[%s13910_s15 + $0x58] sm:$0xff] }
0x16c0   : > { %10141 = vmatprep.subr.bf16.mxu1 %v14029_v54 }
0x16c3   : > { %10142 = vmatpush3.bf16.msra.mxu1 %v11302_v7  ;;  %v10771_v7 = vpack.c.bf16 %v7589_v43, %v7588_v49 }
0x16c4   : > { %10143 = vmatprep.subr.bf16.mxu1 %v14029_v54 }
0x16c5   : > { %10772 = vmatpush3.bf16.msra.mxu0 %v10771_v7 }
0x16c6   : > { %10773 = vmatprep.subr.bf16.mxu0 %v11554_v31 }
0x16c7   : > { %10144 = vmatpush3.bf16.msra.mxu1 %v11303_v1  ;;  %v5844_v1 = vld [vmem:[%s13909_s14] sm:$0x1] }
0x16c8   : > { %10145 = vmatprep.subr.bf16.mxu1 %v14029_v54 }
0x16cb   : > { %10146 = vmatpush3.bf16.msra.mxu1 %v11304_v33 }
0x16cc   : > { %10147 = vmatprep.subr.bf16.mxu1 %v14029_v54 }
0x16cf   : > { %10148 = vmatpush3.bf16.msra.mxu1 %v11305_v14 }
0x16d0   : > { %10149 = vmatprep.subr.bf16.mxu1 %v14029_v54 }
0x16d3   : > { %10150 = vmatpush3.bf16.msra.mxu1 %v11306_v9 }
0x16d4   : > { %10151 = vmatprep.subr.bf16.mxu1 %v14029_v54 }
0x16d7   : > { %10152 = vmatpush3.bf16.msra.mxu1 %v11307_v44 }
0x16d8   : > { %10157 = vmatprep.subr.bf16.mxu1 %v14029_v54 }
0x16da   : > { %10154 = vmatmul.mubr.bf16.vlgmr.msra.gmra.mrb[12].mxu1 %v7053_v16 }
0x16db   : > { %10158 = vmatpush3.bf16.msra.mxu1 %v11308_v5  ;;  %10173 = vmatprep.mubr.msk.bf16.mxu1 %vm11521_vm0, %v14029_v54 }
0x16dc   : > { %10159 = vmatprep.subr.bf16.mxu1 %v14029_v54 }
0x16df   : > { %10160 = vmatpush3.bf16.msra.mxu1 %v11309_v27  ;;  %v11341_v27 = vld [vmem:[%s13913_s18 + $0x8] sm:$0xff]  }
0x16e0   : > { %10161 = vmatprep.subr.bf16.mxu1 %v14029_v54 }
0x16e3   : > { %10162 = vmatpush3.bf16.msra.mxu1 %v11310_v62 }
0x16e4   : > { %10163 = vmatprep.subr.bf16.mxu1 %v14029_v54 }
0x16e7   : > { %10164 = vmatpush3.bf16.msra.mxu1 %v11311_v39  ;;  %v7577_v39 = vld [vmem:[%s13912_s17] sm:$0x1] }
0x16e8   : > { %10165 = vmatprep.subr.bf16.mxu1 %v14029_v54 }
0x16eb   : > { %10166 = vmatpush3.bf16.msra.mxu1 %v11312_v26 }
0x16ec   : > { %10167 = vmatprep.subr.bf16.mxu1 %v14029_v54 }
0x16ef   : > { %10168 = vmatpush3.bf16.msra.mxu1 %v11313_v63 }
0x16f0   : > { %10169 = vmatprep.subr.bf16.mxu1 %v14029_v54 }
0x16f3   : > { %10170 = vmatpush3.bf16.msra.mxu1 %v11314_v22 }
0x16f4   : > { %10171 = vmatprep.subr.bf16.mxu1 %v14029_v54 }
0x16f7   : > { %10172 = vmatpush3.bf16.msra.mxu1 %v11315_v12 }
0x16f8   : > { %10177 = vmatprep.subr.bf16.mxu1 %v14029_v54 }
0x16fa   : > { %10174 = vmatmul.mubr.bf16.vlgmr.msra.gmra.mrb[12].mxu1 %v7161_v51 }
0x16fb   : > { %10178 = vmatpush3.bf16.msra.mxu1 %v11316_v19  ;;  %10193 = vmatprep.mubr.msk.bf16.mxu1 %vm11521_vm0, %v14029_v54 }
0x16fc   : > { %10179 = vmatprep.subr.bf16.mxu1 %v14029_v54 }
0x16ff   : > { %10180 = vmatpush3.bf16.msra.mxu1 %v11317_v36 }
0x1700   : > { %10181 = vmatprep.subr.bf16.mxu1 %v14029_v54 }
0x1703   : > { %10182 = vmatpush3.bf16.msra.mxu1 %v11318_v42 }
0x1704   : > { %10183 = vmatprep.subr.bf16.mxu1 %v14029_v54 }
0x1707   : > { %10184 = vmatpush3.bf16.msra.mxu1 %v11319_v32 }
0x1708   : > { %10185 = vmatprep.subr.bf16.mxu1 %v14029_v54 }
0x170b   : > { %10186 = vmatpush3.bf16.msra.mxu1 %v11320_v37 }
0x170c   : > { %10187 = vmatprep.subr.bf16.mxu1 %v14029_v54 }
0x170f   : > { %10188 = vmatpush3.bf16.msra.mxu1 %v11321_v6 }
0x1710   : > { %10189 = vmatprep.subr.bf16.mxu1 %v14029_v54 }
0x1713   : > { %10190 = vmatpush3.bf16.msra.mxu1 %v11322_v60 }
0x1714   : > { %10191 = vmatprep.subr.bf16.mxu1 %v14029_v54 }
0x1717   : > { %10192 = vmatpush3.bf16.msra.mxu1 %v11323_v4 }
0x1718   : > { %10197 = vmatprep.subr.bf16.mxu1 %v14029_v54 }
0x171a   : > { %10194 = vmatmul.mubr.bf16.vlgmr.msra.gmra.mrb[12].mxu1 %v7269_v8 }
0x171b   : > { %10198 = vmatpush3.bf16.msra.mxu1 %v11324_v23  ;;  %10213 = vmatprep.mubr.msk.bf16.mxu1 %vm11521_vm0, %v14029_v54 }
0x171c   : > { %10199 = vmatprep.subr.bf16.mxu1 %v14029_v54 }
0x171f   : > { %10200 = vmatpush3.bf16.msra.mxu1 %v11325_v58 }
0x1720   : > { %10201 = vmatprep.subr.bf16.mxu1 %v14029_v54 }
0x1723   : > { %10202 = vmatpush3.bf16.msra.mxu1 %v11326_v13 }
0x1724   : > { %10203 = vmatprep.subr.bf16.mxu1 %v14029_v54 }
0x1727   : > { %10204 = vmatpush3.bf16.msra.mxu1 %v11327_v3 }
0x1728   : > { %10205 = vmatprep.subr.bf16.mxu1 %v14029_v54 }
0x172b   : > { %10206 = vmatpush3.bf16.msra.mxu1 %v11328_v20 }
0x172c   : > { %10207 = vmatprep.subr.bf16.mxu1 %v14029_v54 }
0x172f   : > { %10208 = vmatpush3.bf16.msra.mxu1 %v11329_v30 }
0x1730   : > { %10209 = vmatprep.subr.bf16.mxu1 %v14029_v54 }
0x1733   : > { %10210 = vmatpush3.bf16.msra.mxu1 %v11330_v10 }
0x1734   : > { %10211 = vmatprep.subr.bf16.mxu1 %v14029_v54 }
0x1737   : > { %10212 = vmatpush3.bf16.msra.mxu1 %v11331_v56 }
0x1738   : > { %10217 = vmatprep.subr.bf16.mxu1 %v14029_v54 }
0x173a   : > { %10214 = vmatmul.mubr.bf16.vlgmr.msra.gmra.mrb[12].mxu1 %v7377_v25  ;;  %v7783_v25 = vld [vmem:[%s13914_s19] sm:$0x1] }
0x173b   : > { %10218 = vmatpush3.bf16.msra.mxu1 %v11332_v48  ;;  %10233 = vmatprep.mubr.msk.bf16.mxu1 %vm11521_vm0, %v14029_v54 }
0x173c   : > { %10219 = vmatprep.subr.bf16.mxu1 %v14029_v54 }
0x173f   : > { %10220 = vmatpush3.bf16.msra.mxu1 %v11333_v40 }
0x1740   : > { %10221 = vmatprep.subr.bf16.mxu1 %v14029_v54 }
0x1743   : > { %10222 = vmatpush3.bf16.msra.mxu1 %v11334_v41 }
0x1744   : > { %10223 = vmatprep.subr.bf16.mxu1 %v14029_v54 }
0x1747   : > { %10224 = vmatpush3.bf16.msra.mxu1 %v11335_v34 }
0x1748   : > { %10225 = vmatprep.subr.bf16.mxu1 %v14029_v54 }
0x174b   : > { %10226 = vmatpush3.bf16.msra.mxu1 %v11336_v46  ;;  %v14064_v46 = vld [vmem:[#allocation13_spill] sm:$0xff] }
0x174c   : > { %10227 = vmatprep.subr.bf16.mxu1 %v14029_v54 }
0x174f   : > { %10228 = vmatpush3.bf16.msra.mxu1 %v11337_v59 }
0x1750   : > { %10229 = vmatprep.subr.bf16.mxu1 %v14029_v54 }
0x1753   : > { %10230 = vmatpush3.bf16.msra.mxu1 %v11338_v52 }
0x1754   : > { %10231 = vmatprep.subr.bf16.mxu1 %v14029_v54 }
0x1757   : > { %10232 = vmatpush3.bf16.msra.mxu1 %v11339_v47 }
0x175a   : > { %10234 = vmatmul.mubr.bf16.vlgmr.msra.gmra.mrb[12].mxu1 %v7485_v29 }
0x182d   : > { %v7569_v33 = vpop.f32.mrb[12].mxu1 }
0x182e   : > { %v10795_v45 = vadd.f32 %v7569_v33, %v5844_v1  ;;  %v10235_v14 = vpop.f32.mrb[13].mxu1 }
0x182f   : > { %v7572_v9 = vpop.f32.mrb[14].mxu1 }
0x1830   : > { %v10236_v44 = vpop.f32.mrb[15].mxu1  ;;  %10262 = vmatmul.mubr.msk.f32.vlgmr.msra.gmra.mrb[36].mxu0 %vm7590_vm14, %v10795_v45 }
0x1831   : > { %10775 = vmatpush3.bf16.msra.mxu0 %v13613_v38  ;;  %10288 = vmatprep.mubr.msk.f32.mxu0 %vm11521_vm0, %v14029_v54  ;;  %v11342_v38 = vld [vmem:[%s13913_s18 + $0x10] sm:$0xff]  }
0x1832   : > { %10776 = vmatprep.subr.bf16.mxu0 %v11554_v31 }
0x1835   : > { %10778 = vmatpush3.bf16.msra.mxu0 %v13621_v61  ;;  %v11345_v61 = vld [vmem:[%s13913_s18 + $0x28] sm:$0xff]  }
0x1836   : > { %10779 = vmatprep.subr.bf16.mxu0 %v11554_v31 }
0x1839   : > { %10781 = vmatpush3.bf16.msra.mxu0 %v13635_v2 }
0x183a   : > { %10782 = vmatprep.subr.bf16.mxu0 %v11554_v31 }
0x183d   : > { %10784 = vmatpush3.bf16.msra.mxu0 %v13649_v17 }
0x183e   : > { %10785 = vmatprep.subr.bf16.mxu0 %v11554_v31 }
0x1841   : > { %10787 = vmatpush3.bf16.msra.mxu0 %v13663_v28 }
0x1842   : > { %10788 = vmatprep.subr.bf16.mxu0 %v11554_v31  ;;  %v11344_v31 = vld [vmem:[%s13913_s18 + $0x20] sm:$0xff]  }
0x1845   : > { %10790 = vmatpush3.bf16.msra.mxu0 %v10771_v7 }
0x1846   : > { %10291 = vmatprep.subr.bf16.mxu0 %v14029_v54 }
0x1903   : > { %v7660_v5 = vpop.f32.mrb[36].mxu0 }
0x1904   : > { %v7664_v16 = vsub.f32 %v10795_v45, %v7660_v5  ;;  %v10263_v21 = vpop.f32.mrb[37].mxu0 }
0x1906   : > { %v7665_v50 = vmul.f32 %v7664_v16, %v7664_v16 }
0x1908   : > { %10289 = vmatmul.mubr.msk.f32.vlgmr.msra.gmra.mrb[38].mxu0 %vm7590_vm14, %v7665_v50 }
0x1909   : > { %10303 = vmatprep.mubr.msk.bf16.mxu0 %vm11521_vm0, %v14029_v54  ;;  %10292 = vmatpush3.bf16.msra.mxu0 %v11340_v24 }
0x190a   : > { %10293 = vmatprep.subr.bf16.mxu0 %v14029_v54 }
0x190d   : > { %10294 = vmatpush3.bf16.msra.mxu0 %v11341_v27 }
0x190e   : > { %10295 = vmatprep.subr.bf16.mxu0 %v14029_v54 }
0x1911   : > { %10296 = vmatpush3.bf16.msra.mxu0 %v11342_v38 }
0x1912   : > { %10297 = vmatprep.subr.bf16.mxu0 %v14029_v54 }
0x1915   : > { %10298 = vmatpush3.bf16.msra.mxu0 %v11343_v57 }
0x1916   : > { %10299 = vmatprep.subr.bf16.mxu0 %v14029_v54 }
0x1919   : > { %10300 = vmatpush3.bf16.msra.mxu0 %v11344_v31 }
0x191a   : > { %10301 = vmatprep.subr.bf16.mxu0 %v14029_v54 }
0x191d   : > { %10302 = vmatpush3.bf16.msra.mxu0 %v11345_v61 }
0x19db   : > { %v7735_v35 = vpop.f32.mrb[38].mxu0 }
0x19dc   : > { %v7736_v18 = vadd.f32 1e-05, %v7735_v35  ;;  %v10290_v62 = vpop.f32.mrb[39].mxu0 }
0x19de   : > { %11414 = vrsqrt.f32 %v7736_v18 }
0x19e8   : > { %v11415_v2 = vpop.eup %11414 }
0x19e9   : > { %v7740_v55 = vmul.f32 %v11415_v2, %v7664_v16 }
0x19eb   : > { %v7741_v17 = vmul.f32 %v7740_v55, %v7576_v11 }
0x19ed   : > { %v7742_v15 = vadd.f32 %v7741_v17, %v7577_v39 }
0x19ef   : > { %v7744_v0 = vmul.f32 0.70710677, %v7742_v15  ;;  %v7743_v30 = vmul.f32 0.5, %v7742_v15 }
0x19f1   : > { %v7747_v26 = vand.u32 2147483647, %v7744_v0  ;;  %vm7745_vm15 = vcmp.ge.f32.partialorder %v7744_v0, 0.0 }
0x19f2   : > { %v7746_v3 = vsel %vm7745_vm15, 1.0, %v14028_v53 }
0x19f3   : > { %v7748_v54 = vmul.f32 0.3275911, %v7747_v26  ;;  %v7761_v63 = vsub.f32 0.0, %v7747_v26 }
0x19f5   : > { %v7749_v28 = vadd.f32 1.0, %v7748_v54  ;;  %v7762_v12 = vmul.f32 %v7761_v63, %v7747_v26 }
0x19f7   : > { %11416 = vrcp.f32 %v7749_v28  ;;  %v7763_v36 = vmul.f32 1.442695, %v7762_v12 }
0x19f9   : > { %11418 = vpow2.f32 %v7763_v36 }
0x1a01   : > { %v11417_v22 = vpop.eup %11416 }
0x1a02   : > { %v7752_v19 = vmul.f32 1.0614054, %v11417_v22 }
0x1a03   : > { %v11419_v8 = vpop.eup %11418 }
0x1a04   : > { %v7753_v51 = vadd.f32 -1.4531521, %v7752_v19 }
0x1a06   : > { %v7754_v42 = vmul.f32 %v11417_v22, %v7753_v51 }
0x1a08   : > { %v7755_v32 = vadd.f32 1.4214138, %v7754_v42 }
0x1a0a   : > { %v7756_v37 = vmul.f32 %v11417_v22, %v7755_v32 }
0x1a0c   : > { %v7757_v6 = vadd.f32 -0.28449672, %v7756_v37 }
0x1a0e   : > { %v7758_v60 = vmul.f32 %v11417_v22, %v7757_v6 }
0x1a10   : > { %v7759_v4 = vadd.f32 0.2548296, %v7758_v60 }
0x1a12   : > { %v7760_v23 = vmul.f32 %v11417_v22, %v7759_v4 }
0x1a14   : > { %v7765_v58 = vmul.f32 %v11419_v8, %v7760_v23 }
0x1a16   : > { %v7766_v13 = vsub.f32 1.0, %v7765_v58 }
0x1a18   : > { %v7767_v20 = vmul.f32 %v7766_v13, %v7746_v3 }
0x1a1a   : > { %v7768_v10 = vadd.f32 1.0, %v7767_v20 }
0x1a1c   : > { %v7769_v56 = vmul.f32 %v7768_v10, %v7743_v30 }
0x1a1e   : > { %v7770_v48 = vpack.c.bf16 %v7769_v56, %v7769_v56 }
0x1a20   : > { %10304 = vmatmul.mubr.msk.bf16.vlgmr.msra.gmra.mrb[40].mxu0 %vm7590_vm14, %v7770_v48 }
0x1af3   : > { %v7857_v40 = vpop.f32.mrb[40].mxu0 }
0x1af4   : > { %v7858_v41 = vadd.f32 %v7857_v40, %v7783_v25  ;;  %v10305_v53 = vpop.f32.mrb[41].mxu0 }
0x1af5   : > { %v7860_v34 = vpop.f32.mrb[42].mxu0 }
0x1af6   : > { %v7866_v59 = vrot.slane %v7858_v41, %v14064_v46  ;;  %v10306_v52 = vpop.f32.mrb[43].mxu0 }
0x1af8   : > { %7867 = vst [vmem:[%s620_s1] sm:$0xff] %v7866_v59 }
0x1af9   : > { %11469 = shalt.err (!%p11466_p3)
}
0x1afa   : > { %s11470_s4 = scalar_lea.hbm %s13853_s26, 128  ;;  %s11474_s20 = scalar_lea.hbm %s14066_s29, 256 }
0x1afb   : > { %p11471_p4 = scmp.ne.s32.totalorder %s13853_s26, %s11470_s4  ;;  %p11475_p9 = scmp.lt.u32.totalorder %s13853_s26, %s14066_s29 }
0x1afc   : > { %p11476_p10 = scmp.lt.u32.totalorder %s11474_s20, %s11470_s4  ;;  %p11478_p12 = scmp.lt.u32.totalorder %s11470_s4, %s13853_s26 }
0x1afd   : > { %p11472_p7 = pnand %p11471_p4, %p11699_p5 }
0x1afe   : > { %p11477_p11 = por %p11476_p10, %p11475_p9 }
0x1aff   : > { %p11473_p8 = pneg %p11472_p7 }
0x1b00   : > { %p11479_p13 = por %p11478_p12, %p11477_p11 }
0x1b02   : > { %p11480_p0 = pnand %p11479_p13, %p11473_p8 }
0x1b04   : > { %11483 = shalt.err (!%p11480_p0)
}
0x1b05   : > { %11096 = dma.vmem_to_hbm [thread:$0]  (%p11699_p5), %s13855_s30, 128, %s13853_s26, %s7869_s2  }
0x1b06 PF: > { %s14067_s5 = sld [smem:[#allocation7_spill]]  ;;  %s14068_s28 = sld [smem:[#allocation5_spill]] }
0x1b0c   : > { %p11102_p1 = scmp.ge.s32.totalorder %s14067_s5, 2  ;;  %s7894_s3 = sand.u32 1, %s14068_s28  }
0x1b0d   : > { %s7895_s25 = scalar_lea.sflag [#allocation3], %s7894_s3 }
0x1b0e   : > { %p11099_p2 = pnand %p11102_p1, %p11703_p6 }
0x1b10   : > { %11501 = dma.done.wait (!%p11099_p2), %s7895_s25, 128  }
0x1b11   : > { %11503 = vsyncadd (!%p11099_p2), %s7895_s25, 4294967168  ;;  %s14070_s24 = sld [smem:[#allocation8_spill]]  ;;  %s14071_s4 = sld [smem:[#allocation6_spill]] }
0x1b12   : > { %s14072_s23 = sld [smem:[#allocation9_spill]]  ;;  %s14073_s1 = smov %s11510_s22 }
0x1b17   : > { %p30_p3 = scmp.ge.s32.totalorder %s14070_s24, 4   ;;  %s14074_s22 = smov %s14071_s4 }
0x1b19   :  { %32 = sbr.rel (!%p30_p3) target bundleno = 11 (0xb), region = 150 }
0x1b20   :  { %7900 = vsyncpa [#allocation3], 1 }
0x1b21   :  { %7902 = vsyncpa [#allocation3 + $0x1], 1 }

</bundles_post_ra>
